<compile_context>
chip_gen: v6e
topology: v6e:2x2x1
jax: 0.10.0
libtpu: 0.0.40
codegen_flags: <defaults>
</compile_context>

<pallas_src>
import jax
import jax.numpy as jnp
from jax.experimental import pallas as pl
from jax.experimental.pallas import tpu as pltpu

EPS = 1e-5      # torch.nn.BatchNorm2d default
LANES = 128     # TPU lane width
XOFF = 16       # bf16 sublane-tile aligned column offset of the conv2 interior


def _bn_act(y, gamma, beta, relu):
    """Training-mode BN on a (rows, channels) f32 matrix.

    Mean-shifted statistics (var = E[(y-mu)^2], not E[y^2]-mu^2) to avoid
    catastrophic cancellation; normalization fused with the affine transform;
    rsqrt goes to the EUP (free slot)."""
    mu = jnp.mean(y, axis=0, keepdims=True)
    d = y - mu
    var = jnp.mean(d * d, axis=0, keepdims=True)        # biased variance
    out = d * (gamma * jax.lax.rsqrt(var + EPS)) + beta
    if relu:
        out = jnp.maximum(out, 0.0)
    return out


def bottleneck_kernel(x_ref,
                      w1_ref, g1_ref, b1_ref,
                      w2_ref, g2_ref, b2_ref,
                      w3_ref, g3_ref, b3_ref,
                      o_ref, ypad_ref):
    N, H, W, Cin = x_ref.shape
    Cp = w1_ref.shape[1]                  # padded bottleneck width
    Cout = w3_ref.shape[1]                # padded out_channels * expansion
    NHW = N * H * W

    # ---- conv1 (1x1) + BN1 + ReLU  (bf16 operands, f32 MXU accumulate) -----
    # x is consumed here only as a bf16 operand; the f32 residual is re-read
    # from x_ref at the end instead of holding the loaded value live.
    y1 = jnp.dot(x_ref[...].reshape(NHW, Cin).astype(jnp.bfloat16),
                 w1_ref[...], preferred_element_type=jnp.float32)
    y1 = _bn_act(y1, g1_ref[...], b1_ref[...], relu=True)

    # ---- conv2 (3x3, stride 1, padding 1) + BN2 + ReLU ----------------------
    # bf16 halo-padded scratch: zero only the halo cells the taps read, then
    # store the BN1+ReLU output (cast to bf16) at the aligned interior offset.
    zrow = jnp.zeros((N, 1, W + 2, Cp), jnp.bfloat16)
    zcol = jnp.zeros((N, H, 1, Cp), jnp.bfloat16)
    ypad_ref[:, 0:1, XOFF - 1:XOFF + W + 1, :] = zrow
    ypad_ref[:, H + 1:H + 2, XOFF - 1:XOFF + W + 1, :] = zrow
    ypad_ref[:, 1:H + 1, XOFF - 1:XOFF, :] = zcol
    ypad_ref[:, 1:H + 1, XOFF + W:XOFF + W + 1, :] = zcol
    ypad_ref[:, 1:H + 1, XOFF:XOFF + W, :] = \
        y1.astype(jnp.bfloat16).reshape(N, H, W, Cp)

    # Direct 9-tap accumulation (no im2col matrix).  Per ky: one aligned
    # full-width slab read; the three kx shifts are in-register slices.
    # TODO(synk): pack the 3 kx taps along K (K=3*Cp) on the 256-wide MXUs.
    y2 = jnp.zeros((NHW, Cp), jnp.float32)
    for ky in range(3):
        slab = ypad_ref[:, ky:ky + H, :, :]           # aligned, full-Wpad read
        for kx in range(3):
            tap = slab[:, :, XOFF - 1 + kx:XOFF - 1 + kx + W, :]
            y2 = y2 + jnp.dot(tap.reshape(NHW, Cp), w2_ref[ky * 3 + kx],
                              preferred_element_type=jnp.float32)
    y2 = _bn_act(y2, g2_ref[...], b2_ref[...], relu=True)

    # ---- conv3 (1x1) + BN3 --------------------------------------------------
    y3 = jnp.dot(y2.astype(jnp.bfloat16), w3_ref[...],
                 preferred_element_type=jnp.float32)
    y3 = _bn_act(y3, g3_ref[...], b3_ref[...], relu=False)

    # ---- residual add + ReLU (re-read x_ref: already VMEM-resident) --------
    out = jnp.maximum(y3 + x_ref[...].reshape(NHW, Cout), 0.0)
    o_ref[...] = out.reshape(N, H, W, Cout)


def _round_up(x, m):
    return (x + m - 1) // m * m


def _pad_to(a, shape):
    return jnp.pad(a, [(0, t - s) for s, t in zip(a.shape, shape)])


def prepare_params(p):
    """One-time parameter preparation (NOT per call): zero-pad channel dims to
    multiples of 128 (lane-dense) and cast matmul operands to bf16.  Padded
    gamma/beta are zero, so padded channels stay exactly 0 end-to-end."""
    Cin, C = p["w1"].shape
    Cout = p["w3"].shape[1]
    Cin_p, Cp, Cout_p = (_round_up(c, LANES) for c in (Cin, C, Cout))

    w1 = _pad_to(p["w1"], (Cin_p, Cp)).astype(jnp.bfloat16)
    # (3,3,Cin,Cout) -> (9, Cp, Cp), tap-major, for direct per-tap matmuls.
    w2 = _pad_to(p["w2"], (3, 3, Cp, Cp)).reshape(9, Cp, Cp).astype(jnp.bfloat16)
    w3 = _pad_to(p["w3"], (Cp, Cout_p)).astype(jnp.bfloat16)
    return {
        "w1": w1, "w2": w2, "w3": w3,
        "g1": _pad_to(p["g1"], (1, Cp)), "b1": _pad_to(p["b1"], (1, Cp)),
        "g2": _pad_to(p["g2"], (1, Cp)), "b2": _pad_to(p["b2"], (1, Cp)),
        "g3": _pad_to(p["g3"], (1, Cout_p)), "b3": _pad_to(p["b3"], (1, Cout_p)),
        "cin": Cin, "c": C, "cout": Cout,
        "cin_p": Cin_p, "cp": Cp, "cout_p": Cout_p,
    }


def block_forward_nhwc(x_nhwc_p, pp):
    """Fused block on channel-padded NHWC activations (f32 in, f32 out;
    padded channels are zero in and zero out).  This is the entry point a
    real network should use between blocks (no layout work per call).
    TODO(synk): optional bf16 output to halve HBM writeback if the consumer
                tolerates it."""
    N, H, W, Cin_p = x_nhwc_p.shape
    Cp, Cout_p = pp["cp"], pp["cout_p"]
    assert Cin_p == Cout_p, "demo block assumes in_channels == out_channels*expansion"
    Wpad = _round_up(XOFF + W + 1, 16)      # bf16 sublane-tile multiple

    vmem = pl.BlockSpec(memory_space=pltpu.MemorySpace.VMEM)
    return pl.pallas_call(
        bottleneck_kernel,
        out_shape=jax.ShapeDtypeStruct((N, H, W, Cout_p), jnp.float32),
        in_specs=[vmem] * 10,
        out_specs=vmem,
        scratch_shapes=[
            pltpu.VMEM((N, H + 2, Wpad, Cp), jnp.bfloat16),   # conv2 halo pad
        ],
        compiler_params=pltpu.CompilerParams(
            vmem_limit_bytes=32 * 1024 * 1024),
    )(x_nhwc_p,
      pp["w1"], pp["g1"], pp["b1"],
      pp["w2"], pp["g2"], pp["b2"],
      pp["w3"], pp["g3"], pp["b3"])


def block_forward(x_nchw, pp):
    """PyTorch-interface compatibility shim (NCHW f32 in / out) for the demo.
    The transposes/pads here are per-call HBM round trips; a real network
    should keep activations NHWC channel-padded and call block_forward_nhwc."""
    N, Cin, H, W = x_nchw.shape
    assert Cin == pp["cout"], "demo block assumes in_channels == out_channels*expansion"
    x = jnp.transpose(x_nchw, (0, 2, 3, 1)).astype(jnp.float32)
    x = _pad_to(x, (N, H, W, pp["cin_p"]))
    out = block_forward_nhwc(x, pp)
    out = out[..., :pp["cout"]]                 # drop padded channels
    return jnp.transpose(out, (0, 3, 1, 2))     # back to NCHW


def ref_forward(x_nchw, p):
    """Pure-JAX f32 reference with the module's math (conv biases omitted:
    they are exactly cancelled by the training-mode BN mean subtraction)."""
    x = jnp.transpose(x_nchw, (0, 2, 3, 1)).astype(jnp.float32)
    N, H, W, Cin = x.shape

    def bn(y, g, b):
        mu = jnp.mean(y, axis=(0, 1, 2), keepdims=True)
        var = jnp.mean((y - mu) ** 2, axis=(0, 1, 2), keepdims=True)
        return (y - mu) * jax.lax.rsqrt(var + EPS) * g.reshape(1, 1, 1, -1) \
            + b.reshape(1, 1, 1, -1)

    y = jnp.einsum("nhwc,cd->nhwd", x, p["w1"])
    y = jax.nn.relu(bn(y, p["g1"], p["b1"]))

    ypad = jnp.pad(y, ((0, 0), (1, 1), (1, 1), (0, 0)))
    y2 = sum(jnp.einsum("nhwc,cd->nhwd",
                        ypad[:, ky:ky + H, kx:kx + W, :], p["w2"][ky, kx])
             for ky in range(3) for kx in range(3))
    y2 = jax.nn.relu(bn(y2, p["g2"], p["b2"]))

    y3 = jnp.einsum("nhwc,cd->nhwd", y2, p["w3"])
    y3 = bn(y3, p["g3"], p["b3"])
    out = jax.nn.relu(y3 + x)
    return jnp.transpose(out, (0, 3, 1, 2))


def make_params(key, in_channels, out_channels, expansion=4):
    """Deterministic synthetic parameters, converted from torch (O,I,kh,kw)
    layout to channels-last matmul layout.  Conv biases are omitted: a bias
    immediately followed by training-mode BatchNorm is mathematically dead."""
    C, Cin, Cout = out_channels, in_channels, out_channels * expansion
    ks = jax.random.split(key, 9)

    w1_t = jax.random.normal(ks[0], (C, Cin, 1, 1), jnp.float32) * 0.05
    w2_t = jax.random.normal(ks[1], (C, C, 3, 3), jnp.float32) * 0.05
    w3_t = jax.random.normal(ks[2], (Cout, C, 1, 1), jnp.float32) * 0.05

    return {
        "w1": jnp.transpose(w1_t[:, :, 0, 0], (1, 0)),        # (Cin, C)
        "w2": jnp.transpose(w2_t, (2, 3, 1, 0)),               # (3, 3, C_in, C_out)
        "w3": jnp.transpose(w3_t[:, :, 0, 0], (1, 0)),         # (C, Cout)
        "g1": 1.0 + 0.1 * jax.random.normal(ks[3], (1, C), jnp.float32),
        "b1": 0.1 * jax.random.normal(ks[4], (1, C), jnp.float32),
        "g2": 1.0 + 0.1 * jax.random.normal(ks[5], (1, C), jnp.float32),
        "b2": 0.1 * jax.random.normal(ks[6], (1, C), jnp.float32),
        "g3": 1.0 + 0.1 * jax.random.normal(ks[7], (1, Cout), jnp.float32),
        "b3": 0.1 * jax.random.normal(ks[8], (1, Cout), jnp.float32),
    }


if __name__ == "__main__":
    key = jax.random.PRNGKey(0)
    k_x, k_p = jax.random.split(key)

    # small shapes: batch=2, out_channels=8, expansion=4 -> in_channels=32, 8x8 spatial
    N, out_channels, expansion, H, W = 2, 8, 4, 8, 8
    in_channels = out_channels * expansion

    x = jax.random.normal(k_x, (N, in_channels, H, W), jnp.float32)  # NCHW like PyTorch
    params = make_params(k_p, in_channels, out_channels, expansion)
    prepared = prepare_params(params)          # one-time pad/cast, not per call

    out = jax.block_until_ready(block_forward(x, prepared))
    ref = jax.block_until_ready(ref_forward(x, params))

    assert out.shape == (N, out_channels * expansion, H, W)
    # bf16 MXU operands vs f32 reference -> relaxed tolerance.
    assert jnp.allclose(out, ref, atol=5e-2, rtol=5e-2), "kernel mismatch vs reference"

    print("KERNEL_OK")
</pallas_src>

<mosaic_0001>
module attributes {stable_mosaic.version = 11 : i64} {
  func.func @bottleneck_kernel(%arg0: memref<2x8x8x128xf32, #tpu.memory_space<vmem>>, %arg1: memref<128x128xbf16, #tpu.memory_space<vmem>>, %arg2: memref<1x128xf32, #tpu.memory_space<vmem>>, %arg3: memref<1x128xf32, #tpu.memory_space<vmem>>, %arg4: memref<9x128x128xbf16, #tpu.memory_space<vmem>>, %arg5: memref<1x128xf32, #tpu.memory_space<vmem>>, %arg6: memref<1x128xf32, #tpu.memory_space<vmem>>, %arg7: memref<128x128xbf16, #tpu.memory_space<vmem>>, %arg8: memref<1x128xf32, #tpu.memory_space<vmem>>, %arg9: memref<1x128xf32, #tpu.memory_space<vmem>>, %arg10: memref<2x8x8x128xf32, #tpu.memory_space<vmem>>, %arg11: memref<2x10x32x128xbf16, #tpu.memory_space<vmem>>) attributes {dimension_semantics = [], scalar_prefetch = 0 : i64, scratch_operands = 1 : i64, tpu.core_type = #tpu.core_type<tc>} {
    %c0 = arith.constant 0 : index
    %c0_0 = arith.constant 0 : index
    %c0_1 = arith.constant 0 : index
    %c0_2 = arith.constant 0 : index
    %0 = vector.load %arg0[%c0, %c0_0, %c0_1, %c0_2] : memref<2x8x8x128xf32, #tpu.memory_space<vmem>>, vector<2x8x8x128xf32>
    %1 = vector.shape_cast %0 : vector<2x8x8x128xf32> to vector<128x128xf32>
    %2 = arith.truncf %1 : vector<128x128xf32> to vector<128x128xbf16>
    %c0_3 = arith.constant 0 : index
    %c0_4 = arith.constant 0 : index
    %3 = vector.load %arg1[%c0_3, %c0_4] : memref<128x128xbf16, #tpu.memory_space<vmem>>, vector<128x128xbf16>
    %cst = arith.constant dense<0.000000e+00> : vector<128x128xf32>
    %4 = tpu.matmul %2, %3, %cst {dimension_numbers = #tpu.dot_dimension_numbers<[1], [0], [0], [1], [0, 0, 1, 1], [], []>} : vector<128x128xbf16>, vector<128x128xbf16>, vector<128x128xf32> -> vector<128x128xf32>
    %c0_5 = arith.constant 0 : index
    %c0_6 = arith.constant 0 : index
    %5 = vector.load %arg2[%c0_5, %c0_6] : memref<1x128xf32, #tpu.memory_space<vmem>>, vector<1x128xf32>
    %c0_7 = arith.constant 0 : index
    %c0_8 = arith.constant 0 : index
    %6 = vector.load %arg3[%c0_7, %c0_8] : memref<1x128xf32, #tpu.memory_space<vmem>>, vector<1x128xf32>
    %cst_9 = arith.constant dense<0.000000e+00> : vector<128xf32>
    %7 = vector.multi_reduction <add>, %4, %cst_9 [0] : vector<128x128xf32> to vector<128xf32>
    %8 = vector.shape_cast %7 : vector<128xf32> to vector<1x128xf32>
    %cst_10 = arith.constant 1.280000e+02 : f32
    %9 = vector.broadcast %cst_10 : f32 to vector<1x128xf32>
    %10 = arith.divf %8, %9 : vector<1x128xf32>
    %11 = vector.broadcast %10 : vector<1x128xf32> to vector<128x128xf32>
    %12 = arith.subf %4, %11 : vector<128x128xf32>
    %13 = arith.mulf %12, %12 : vector<128x128xf32>
    %cst_11 = arith.constant dense<0.000000e+00> : vector<128xf32>
    %14 = vector.multi_reduction <add>, %13, %cst_11 [0] : vector<128x128xf32> to vector<128xf32>
    %15 = vector.shape_cast %14 : vector<128xf32> to vector<1x128xf32>
    %cst_12 = arith.constant 1.280000e+02 : f32
    %16 = vector.broadcast %cst_12 : f32 to vector<1x128xf32>
    %17 = arith.divf %15, %16 : vector<1x128xf32>
    %cst_13 = arith.constant 9.99999974E-6 : f32
    %18 = vector.broadcast %cst_13 : f32 to vector<1x128xf32>
    %19 = arith.addf %17, %18 : vector<1x128xf32>
    %20 = math.rsqrt %19 : vector<1x128xf32>
    %21 = arith.mulf %5, %20 : vector<1x128xf32>
    %22 = vector.broadcast %21 : vector<1x128xf32> to vector<128x128xf32>
    %23 = arith.mulf %12, %22 : vector<128x128xf32>
    %24 = vector.broadcast %6 : vector<1x128xf32> to vector<128x128xf32>
    %25 = arith.addf %23, %24 : vector<128x128xf32>
    %cst_14 = arith.constant 0.000000e+00 : f32
    %26 = vector.broadcast %cst_14 : f32 to vector<128x128xf32>
    %27 = arith.maximumf %25, %26 : vector<128x128xf32>
    %cst_15 = arith.constant 0.000000e+00 : bf16
    %28 = vector.broadcast %cst_15 : bf16 to vector<2x1x10x128xbf16>
    %cst_16 = arith.constant 0.000000e+00 : bf16
    %29 = vector.broadcast %cst_16 : bf16 to vector<2x8x1x128xbf16>
    %c0_17 = arith.constant 0 : index
    %c0_18 = arith.constant 0 : index
    %c15 = arith.constant 15 : index
    %c0_19 = arith.constant 0 : index
    %30 = vector.load %arg11[%c0_17, %c0_18, %c15, %c0_19] : memref<2x10x32x128xbf16, #tpu.memory_space<vmem>>, vector<2x1x10x128xbf16>
    tpu.vector_store %arg11[%c0_17, %c0_18, %c15, %c0_19], %28 {strides = array<i32>} : memref<2x10x32x128xbf16, #tpu.memory_space<vmem>>, vector<2x1x10x128xbf16>,
    %c0_20 = arith.constant 0 : index
    %c9 = arith.constant 9 : index
    %c15_21 = arith.constant 15 : index
    %c0_22 = arith.constant 0 : index
    %31 = vector.load %arg11[%c0_20, %c9, %c15_21, %c0_22] : memref<2x10x32x128xbf16, #tpu.memory_space<vmem>>, vector<2x1x10x128xbf16>
    tpu.vector_store %arg11[%c0_20, %c9, %c15_21, %c0_22], %28 {strides = array<i32>} : memref<2x10x32x128xbf16, #tpu.memory_space<vmem>>, vector<2x1x10x128xbf16>,
    %c0_23 = arith.constant 0 : index
    %c1 = arith.constant 1 : index
    %c15_24 = arith.constant 15 : index
    %c0_25 = arith.constant 0 : index
    %32 = vector.load %arg11[%c0_23, %c1, %c15_24, %c0_25] : memref<2x10x32x128xbf16, #tpu.memory_space<vmem>>, vector<2x8x1x128xbf16>
    tpu.vector_store %arg11[%c0_23, %c1, %c15_24, %c0_25], %29 {strides = array<i32>} : memref<2x10x32x128xbf16, #tpu.memory_space<vmem>>, vector<2x8x1x128xbf16>,
    %c0_26 = arith.constant 0 : index
    %c1_27 = arith.constant 1 : index
    %c24 = arith.constant 24 : index
    %c0_28 = arith.constant 0 : index
    %33 = vector.load %arg11[%c0_26, %c1_27, %c24, %c0_28] : memref<2x10x32x128xbf16, #tpu.memory_space<vmem>>, vector<2x8x1x128xbf16>
    tpu.vector_store %arg11[%c0_26, %c1_27, %c24, %c0_28], %29 {strides = array<i32>} : memref<2x10x32x128xbf16, #tpu.memory_space<vmem>>, vector<2x8x1x128xbf16>,
    %34 = arith.truncf %27 : vector<128x128xf32> to vector<128x128xbf16>
    %35 = vector.shape_cast %34 : vector<128x128xbf16> to vector<2x8x8x128xbf16>
    %c0_29 = arith.constant 0 : index
    %c1_30 = arith.constant 1 : index
    %c16 = arith.constant 16 : index
    %c0_31 = arith.constant 0 : index
    %36 = vector.load %arg11[%c0_29, %c1_30, %c16, %c0_31] : memref<2x10x32x128xbf16, #tpu.memory_space<vmem>>, vector<2x8x8x128xbf16>
    tpu.vector_store %arg11[%c0_29, %c1_30, %c16, %c0_31], %35 {strides = array<i32>} : memref<2x10x32x128xbf16, #tpu.memory_space<vmem>>, vector<2x8x8x128xbf16>,
    %cst_32 = arith.constant 0.000000e+00 : f32
    %37 = vector.broadcast %cst_32 : f32 to vector<128x128xf32>
    %c0_33 = arith.constant 0 : index
    %c0_34 = arith.constant 0 : index
    %c0_35 = arith.constant 0 : index
    %c0_36 = arith.constant 0 : index
    %38 = vector.load %arg11[%c0_33, %c0_34, %c0_35, %c0_36] : memref<2x10x32x128xbf16, #tpu.memory_space<vmem>>, vector<2x8x32x128xbf16>
    %39 = vector.extract_strided_slice %38 {offsets = [0, 0, 15, 0], sizes = [2, 8, 8, 128], strides = [1, 1, 1, 1]} : vector<2x8x32x128xbf16> to vector<2x8x8x128xbf16>
    %40 = vector.shape_cast %39 : vector<2x8x8x128xbf16> to vector<128x128xbf16>
    %c0_37 = arith.constant 0 : index
    %c0_38 = arith.constant 0 : index
    %c0_39 = arith.constant 0 : index
    %41 = vector.load %arg4[%c0_37, %c0_38, %c0_39] : memref<9x128x128xbf16, #tpu.memory_space<vmem>>, vector<1x128x128xbf16>
    %42 = vector.shape_cast %41 : vector<1x128x128xbf16> to vector<128x128xbf16>
    %cst_40 = arith.constant dense<0.000000e+00> : vector<128x128xf32>
    %43 = tpu.matmul %40, %42, %cst_40 {dimension_numbers = #tpu.dot_dimension_numbers<[1], [0], [0], [1], [0, 0, 1, 1], [], []>} : vector<128x128xbf16>, vector<128x128xbf16>, vector<128x128xf32> -> vector<128x128xf32>
    %44 = arith.addf %37, %43 : vector<128x128xf32>
    %45 = vector.extract_strided_slice %38 {offsets = [0, 0, 16, 0], sizes = [2, 8, 8, 128], strides = [1, 1, 1, 1]} : vector<2x8x32x128xbf16> to vector<2x8x8x128xbf16>
    %46 = vector.shape_cast %45 : vector<2x8x8x128xbf16> to vector<128x128xbf16>
    %c1_41 = arith.constant 1 : index
    %c0_42 = arith.constant 0 : index
    %c0_43 = arith.constant 0 : index
    %47 = vector.load %arg4[%c1_41, %c0_42, %c0_43] : memref<9x128x128xbf16, #tpu.memory_space<vmem>>, vector<1x128x128xbf16>
    %48 = vector.shape_cast %47 : vector<1x128x128xbf16> to vector<128x128xbf16>
    %cst_44 = arith.constant dense<0.000000e+00> : vector<128x128xf32>
    %49 = tpu.matmul %46, %48, %cst_44 {dimension_numbers = #tpu.dot_dimension_numbers<[1], [0], [0], [1], [0, 0, 1, 1], [], []>} : vector<128x128xbf16>, vector<128x128xbf16>, vector<128x128xf32> -> vector<128x128xf32>
    %50 = arith.addf %44, %49 : vector<128x128xf32>
    %51 = vector.extract_strided_slice %38 {offsets = [0, 0, 17, 0], sizes = [2, 8, 8, 128], strides = [1, 1, 1, 1]} : vector<2x8x32x128xbf16> to vector<2x8x8x128xbf16>
    %52 = vector.shape_cast %51 : vector<2x8x8x128xbf16> to vector<128x128xbf16>
    %c2 = arith.constant 2 : index
    %c0_45 = arith.constant 0 : index
    %c0_46 = arith.constant 0 : index
    %53 = vector.load %arg4[%c2, %c0_45, %c0_46] : memref<9x128x128xbf16, #tpu.memory_space<vmem>>, vector<1x128x128xbf16>
    %54 = vector.shape_cast %53 : vector<1x128x128xbf16> to vector<128x128xbf16>
    %cst_47 = arith.constant dense<0.000000e+00> : vector<128x128xf32>
    %55 = tpu.matmul %52, %54, %cst_47 {dimension_numbers = #tpu.dot_dimension_numbers<[1], [0], [0], [1], [0, 0, 1, 1], [], []>} : vector<128x128xbf16>, vector<128x128xbf16>, vector<128x128xf32> -> vector<128x128xf32>
    %56 = arith.addf %50, %55 : vector<128x128xf32>
    %c0_48 = arith.constant 0 : index
    %c1_49 = arith.constant 1 : index
    %c0_50 = arith.constant 0 : index
    %c0_51 = arith.constant 0 : index
    %57 = vector.load %arg11[%c0_48, %c1_49, %c0_50, %c0_51] : memref<2x10x32x128xbf16, #tpu.memory_space<vmem>>, vector<2x8x32x128xbf16>
    %58 = vector.extract_strided_slice %57 {offsets = [0, 0, 15, 0], sizes = [2, 8, 8, 128], strides = [1, 1, 1, 1]} : vector<2x8x32x128xbf16> to vector<2x8x8x128xbf16>
    %59 = vector.shape_cast %58 : vector<2x8x8x128xbf16> to vector<128x128xbf16>
    %c3 = arith.constant 3 : index
    %c0_52 = arith.constant 0 : index
    %c0_53 = arith.constant 0 : index
    %60 = vector.load %arg4[%c3, %c0_52, %c0_53] : memref<9x128x128xbf16, #tpu.memory_space<vmem>>, vector<1x128x128xbf16>
    %61 = vector.shape_cast %60 : vector<1x128x128xbf16> to vector<128x128xbf16>
    %cst_54 = arith.constant dense<0.000000e+00> : vector<128x128xf32>
    %62 = tpu.matmul %59, %61, %cst_54 {dimension_numbers = #tpu.dot_dimension_numbers<[1], [0], [0], [1], [0, 0, 1, 1], [], []>} : vector<128x128xbf16>, vector<128x128xbf16>, vector<128x128xf32> -> vector<128x128xf32>
    %63 = arith.addf %56, %62 : vector<128x128xf32>
    %64 = vector.extract_strided_slice %57 {offsets = [0, 0, 16, 0], sizes = [2, 8, 8, 128], strides = [1, 1, 1, 1]} : vector<2x8x32x128xbf16> to vector<2x8x8x128xbf16>
    %65 = vector.shape_cast %64 : vector<2x8x8x128xbf16> to vector<128x128xbf16>
    %c4 = arith.constant 4 : index
    %c0_55 = arith.constant 0 : index
    %c0_56 = arith.constant 0 : index
    %66 = vector.load %arg4[%c4, %c0_55, %c0_56] : memref<9x128x128xbf16, #tpu.memory_space<vmem>>, vector<1x128x128xbf16>
    %67 = vector.shape_cast %66 : vector<1x128x128xbf16> to vector<128x128xbf16>
    %cst_57 = arith.constant dense<0.000000e+00> : vector<128x128xf32>
    %68 = tpu.matmul %65, %67, %cst_57 {dimension_numbers = #tpu.dot_dimension_numbers<[1], [0], [0], [1], [0, 0, 1, 1], [], []>} : vector<128x128xbf16>, vector<128x128xbf16>, vector<128x128xf32> -> vector<128x128xf32>
    %69 = arith.addf %63, %68 : vector<128x128xf32>
    %70 = vector.extract_strided_slice %57 {offsets = [0, 0, 17, 0], sizes = [2, 8, 8, 128], strides = [1, 1, 1, 1]} : vector<2x8x32x128xbf16> to vector<2x8x8x128xbf16>
    %71 = vector.shape_cast %70 : vector<2x8x8x128xbf16> to vector<128x128xbf16>
    %c5 = arith.constant 5 : index
    %c0_58 = arith.constant 0 : index
    %c0_59 = arith.constant 0 : index
    %72 = vector.load %arg4[%c5, %c0_58, %c0_59] : memref<9x128x128xbf16, #tpu.memory_space<vmem>>, vector<1x128x128xbf16>
    %73 = vector.shape_cast %72 : vector<1x128x128xbf16> to vector<128x128xbf16>
    %cst_60 = arith.constant dense<0.000000e+00> : vector<128x128xf32>
    %74 = tpu.matmul %71, %73, %cst_60 {dimension_numbers = #tpu.dot_dimension_numbers<[1], [0], [0], [1], [0, 0, 1, 1], [], []>} : vector<128x128xbf16>, vector<128x128xbf16>, vector<128x128xf32> -> vector<128x128xf32>
    %75 = arith.addf %69, %74 : vector<128x128xf32>
    %c0_61 = arith.constant 0 : index
    %c2_62 = arith.constant 2 : index
    %c0_63 = arith.constant 0 : index
    %c0_64 = arith.constant 0 : index
    %76 = vector.load %arg11[%c0_61, %c2_62, %c0_63, %c0_64] : memref<2x10x32x128xbf16, #tpu.memory_space<vmem>>, vector<2x8x32x128xbf16>
    %77 = vector.extract_strided_slice %76 {offsets = [0, 0, 15, 0], sizes = [2, 8, 8, 128], strides = [1, 1, 1, 1]} : vector<2x8x32x128xbf16> to vector<2x8x8x128xbf16>
    %78 = vector.shape_cast %77 : vector<2x8x8x128xbf16> to vector<128x128xbf16>
    %c6 = arith.constant 6 : index
    %c0_65 = arith.constant 0 : index
    %c0_66 = arith.constant 0 : index
    %79 = vector.load %arg4[%c6, %c0_65, %c0_66] : memref<9x128x128xbf16, #tpu.memory_space<vmem>>, vector<1x128x128xbf16>
    %80 = vector.shape_cast %79 : vector<1x128x128xbf16> to vector<128x128xbf16>
    %cst_67 = arith.constant dense<0.000000e+00> : vector<128x128xf32>
    %81 = tpu.matmul %78, %80, %cst_67 {dimension_numbers = #tpu.dot_dimension_numbers<[1], [0], [0], [1], [0, 0, 1, 1], [], []>} : vector<128x128xbf16>, vector<128x128xbf16>, vector<128x128xf32> -> vector<128x128xf32>
    %82 = arith.addf %75, %81 : vector<128x128xf32>
    %83 = vector.extract_strided_slice %76 {offsets = [0, 0, 16, 0], sizes = [2, 8, 8, 128], strides = [1, 1, 1, 1]} : vector<2x8x32x128xbf16> to vector<2x8x8x128xbf16>
    %84 = vector.shape_cast %83 : vector<2x8x8x128xbf16> to vector<128x128xbf16>
    %c7 = arith.constant 7 : index
    %c0_68 = arith.constant 0 : index
    %c0_69 = arith.constant 0 : index
    %85 = vector.load %arg4[%c7, %c0_68, %c0_69] : memref<9x128x128xbf16, #tpu.memory_space<vmem>>, vector<1x128x128xbf16>
    %86 = vector.shape_cast %85 : vector<1x128x128xbf16> to vector<128x128xbf16>
    %cst_70 = arith.constant dense<0.000000e+00> : vector<128x128xf32>
    %87 = tpu.matmul %84, %86, %cst_70 {dimension_numbers = #tpu.dot_dimension_numbers<[1], [0], [0], [1], [0, 0, 1, 1], [], []>} : vector<128x128xbf16>, vector<128x128xbf16>, vector<128x128xf32> -> vector<128x128xf32>
    %88 = arith.addf %82, %87 : vector<128x128xf32>
    %89 = vector.extract_strided_slice %76 {offsets = [0, 0, 17, 0], sizes = [2, 8, 8, 128], strides = [1, 1, 1, 1]} : vector<2x8x32x128xbf16> to vector<2x8x8x128xbf16>
    %90 = vector.shape_cast %89 : vector<2x8x8x128xbf16> to vector<128x128xbf16>
    %c8 = arith.constant 8 : index
    %c0_71 = arith.constant 0 : index
    %c0_72 = arith.constant 0 : index
    %91 = vector.load %arg4[%c8, %c0_71, %c0_72] : memref<9x128x128xbf16, #tpu.memory_space<vmem>>, vector<1x128x128xbf16>
    %92 = vector.shape_cast %91 : vector<1x128x128xbf16> to vector<128x128xbf16>
    %cst_73 = arith.constant dense<0.000000e+00> : vector<128x128xf32>
    %93 = tpu.matmul %90, %92, %cst_73 {dimension_numbers = #tpu.dot_dimension_numbers<[1], [0], [0], [1], [0, 0, 1, 1], [], []>} : vector<128x128xbf16>, vector<128x128xbf16>, vector<128x128xf32> -> vector<128x128xf32>
    %94 = arith.addf %88, %93 : vector<128x128xf32>
    %c0_74 = arith.constant 0 : index
    %c0_75 = arith.constant 0 : index
    %95 = vector.load %arg5[%c0_74, %c0_75] : memref<1x128xf32, #tpu.memory_space<vmem>>, vector<1x128xf32>
    %c0_76 = arith.constant 0 : index
    %c0_77 = arith.constant 0 : index
    %96 = vector.load %arg6[%c0_76, %c0_77] : memref<1x128xf32, #tpu.memory_space<vmem>>, vector<1x128xf32>
    %cst_78 = arith.constant dense<0.000000e+00> : vector<128xf32>
    %97 = vector.multi_reduction <add>, %94, %cst_78 [0] : vector<128x128xf32> to vector<128xf32>
    %98 = vector.shape_cast %97 : vector<128xf32> to vector<1x128xf32>
    %cst_79 = arith.constant 1.280000e+02 : f32
    %99 = vector.broadcast %cst_79 : f32 to vector<1x128xf32>
    %100 = arith.divf %98, %99 : vector<1x128xf32>
    %101 = vector.broadcast %100 : vector<1x128xf32> to vector<128x128xf32>
    %102 = arith.subf %94, %101 : vector<128x128xf32>
    %103 = arith.mulf %102, %102 : vector<128x128xf32>
    %cst_80 = arith.constant dense<0.000000e+00> : vector<128xf32>
    %104 = vector.multi_reduction <add>, %103, %cst_80 [0] : vector<128x128xf32> to vector<128xf32>
    %105 = vector.shape_cast %104 : vector<128xf32> to vector<1x128xf32>
    %cst_81 = arith.constant 1.280000e+02 : f32
    %106 = vector.broadcast %cst_81 : f32 to vector<1x128xf32>
    %107 = arith.divf %105, %106 : vector<1x128xf32>
    %cst_82 = arith.constant 9.99999974E-6 : f32
    %108 = vector.broadcast %cst_82 : f32 to vector<1x128xf32>
    %109 = arith.addf %107, %108 : vector<1x128xf32>
    %110 = math.rsqrt %109 : vector<1x128xf32>
    %111 = arith.mulf %95, %110 : vector<1x128xf32>
    %112 = vector.broadcast %111 : vector<1x128xf32> to vector<128x128xf32>
    %113 = arith.mulf %102, %112 : vector<128x128xf32>
    %114 = vector.broadcast %96 : vector<1x128xf32> to vector<128x128xf32>
    %115 = arith.addf %113, %114 : vector<128x128xf32>
    %cst_83 = arith.constant 0.000000e+00 : f32
    %116 = vector.broadcast %cst_83 : f32 to vector<128x128xf32>
    %117 = arith.maximumf %115, %116 : vector<128x128xf32>
    %118 = arith.truncf %117 : vector<128x128xf32> to vector<128x128xbf16>
    %c0_84 = arith.constant 0 : index
    %c0_85 = arith.constant 0 : index
    %119 = vector.load %arg7[%c0_84, %c0_85] : memref<128x128xbf16, #tpu.memory_space<vmem>>, vector<128x128xbf16>
    %cst_86 = arith.constant dense<0.000000e+00> : vector<128x128xf32>
    %120 = tpu.matmul %118, %119, %cst_86 {dimension_numbers = #tpu.dot_dimension_numbers<[1], [0], [0], [1], [0, 0, 1, 1], [], []>} : vector<128x128xbf16>, vector<128x128xbf16>, vector<128x128xf32> -> vector<128x128xf32>
    %c0_87 = arith.constant 0 : index
    %c0_88 = arith.constant 0 : index
    %121 = vector.load %arg8[%c0_87, %c0_88] : memref<1x128xf32, #tpu.memory_space<vmem>>, vector<1x128xf32>
    %c0_89 = arith.constant 0 : index
    %c0_90 = arith.constant 0 : index
    %122 = vector.load %arg9[%c0_89, %c0_90] : memref<1x128xf32, #tpu.memory_space<vmem>>, vector<1x128xf32>
    %cst_91 = arith.constant dense<0.000000e+00> : vector<128xf32>
    %123 = vector.multi_reduction <add>, %120, %cst_91 [0] : vector<128x128xf32> to vector<128xf32>
    %124 = vector.shape_cast %123 : vector<128xf32> to vector<1x128xf32>
    %cst_92 = arith.constant 1.280000e+02 : f32
    %125 = vector.broadcast %cst_92 : f32 to vector<1x128xf32>
    %126 = arith.divf %124, %125 : vector<1x128xf32>
    %127 = vector.broadcast %126 : vector<1x128xf32> to vector<128x128xf32>
    %128 = arith.subf %120, %127 : vector<128x128xf32>
    %129 = arith.mulf %128, %128 : vector<128x128xf32>
    %cst_93 = arith.constant dense<0.000000e+00> : vector<128xf32>
    %130 = vector.multi_reduction <add>, %129, %cst_93 [0] : vector<128x128xf32> to vector<128xf32>
    %131 = vector.shape_cast %130 : vector<128xf32> to vector<1x128xf32>
    %cst_94 = arith.constant 1.280000e+02 : f32
    %132 = vector.broadcast %cst_94 : f32 to vector<1x128xf32>
    %133 = arith.divf %131, %132 : vector<1x128xf32>
    %cst_95 = arith.constant 9.99999974E-6 : f32
    %134 = vector.broadcast %cst_95 : f32 to vector<1x128xf32>
    %135 = arith.addf %133, %134 : vector<1x128xf32>
    %136 = math.rsqrt %135 : vector<1x128xf32>
    %137 = arith.mulf %121, %136 : vector<1x128xf32>
    %138 = vector.broadcast %137 : vector<1x128xf32> to vector<128x128xf32>
    %139 = arith.mulf %128, %138 : vector<128x128xf32>
    %140 = vector.broadcast %122 : vector<1x128xf32> to vector<128x128xf32>
    %141 = arith.addf %139, %140 : vector<128x128xf32>
    %c0_96 = arith.constant 0 : index
    %c0_97 = arith.constant 0 : index
    %c0_98 = arith.constant 0 : index
    %c0_99 = arith.constant 0 : index
    %142 = vector.load %arg0[%c0_96, %c0_97, %c0_98, %c0_99] : memref<2x8x8x128xf32, #tpu.memory_space<vmem>>, vector<2x8x8x128xf32>
    %143 = vector.shape_cast %142 : vector<2x8x8x128xf32> to vector<128x128xf32>
    %144 = arith.addf %141, %143 : vector<128x128xf32>
    %cst_100 = arith.constant 0.000000e+00 : f32
    %145 = vector.broadcast %cst_100 : f32 to vector<128x128xf32>
    %146 = arith.maximumf %144, %145 : vector<128x128xf32>
    %147 = vector.shape_cast %146 : vector<128x128xf32> to vector<2x8x8x128xf32>
    %c0_101 = arith.constant 0 : index
    %c0_102 = arith.constant 0 : index
    %c0_103 = arith.constant 0 : index
    %c0_104 = arith.constant 0 : index
    %148 = vector.load %arg10[%c0_101, %c0_102, %c0_103, %c0_104] : memref<2x8x8x128xf32, #tpu.memory_space<vmem>>, vector<2x8x8x128xf32>
    tpu.vector_store %arg10[%c0_101, %c0_102, %c0_103, %c0_104], %147 {strides = array<i32>} : memref<2x8x8x128xf32, #tpu.memory_space<vmem>>, vector<2x8x8x128xf32>,
    return
  }
}

</mosaic_0001>

<bundles_post_ra>
// kernel: tpu_custom_call.1
= control target key start
LH: loop header
LB: loop body
LE: loop exit
PB: predicated region body
PF: predicated region fallthrough
CT: control target
= control target key end

     0   :  { %15 = vsyncpa [#allocation4], 0  ;;  %s7142_s0 = inlined_call_operand.hbm [shape: f32[2,8,8,128], index: 0, kind: input, shape index: {}]   ;;  %s7143_s1 = inlined_call_operand.hbm [shape: bf16[128,128], index: 1, kind: input, shape index: {}]   ;;  %s7144_s2 = inlined_call_operand.vmem [shape: f32[1,128], index: 2, kind: input, shape index: {}]   ;;  %s7145_s3 = inlined_call_operand.vmem [shape: f32[1,128], index: 3, kind: input, shape index: {}]   ;;  %s7146_s4 = inlined_call_operand.hbm [shape: bf16[9,128,128], index: 4, kind: input, shape index: {}]   ;;  %s7147_s5 = inlined_call_operand.vmem [shape: f32[1,128], index: 5, kind: input, shape index: {}]   ;;  %s7148_s6 = inlined_call_operand.vmem [shape: f32[1,128], index: 6, kind: input, shape index: {}]   ;;  %s7149_s7 = inlined_call_operand.hbm [shape: bf16[128,128], index: 7, kind: input, shape index: {}]   ;;  %s7150_s8 = inlined_call_operand.vmem [shape: f32[1,128], index: 8, kind: input, shape index: {}]   ;;  %s7151_s9 = inlined_call_operand.vmem [shape: f32[1,128], index: 9, kind: input, shape index: {}]   ;;  %s7152_s10 = inlined_call_operand.hbm [shape: f32[2,8,8,128], index: 10, kind: output, shape index: {}]  }
   0x1   :  { %16 = vsyncpa [#allocation7], 0 }
   0x2   :  { %17 = vsyncpa [#allocation10], 0 }
   0x3   :  { %18 = vsyncpa [#allocation5], 0  ;;  %s5285_s13 = smov [#allocation6]  }
   0x4   :  { %s36_s14 = sshll.u32 %s5285_s13, 4  ;;  %s37_s14 = int_to_ptr.vmem [resolvable:$true] %s36_s14 }
   0x5   :  { %s5185_s15 = scalar_lea.vmem %s37_s14, 1024  ;;  %p5190_p1 = scmp.lt.s32.totalorder %s37_s14, %s37_s14 }
   0x6   :  { %p5186_p0 = scmp.ne.s32.totalorder %s37_s14, %s5185_s15  ;;  %p5191_p2 = scmp.lt.s32.totalorder %s5185_s15, %s5185_s15 }
   0x8   :  { %p5192_p3 = por %p5191_p2, %p5190_p1 }
   0xa   :  { %p5193_p4 = pnand %p5192_p3, %p5186_p0 }
   0xc   :  { %5196 = shalt.err (!%p5193_p4)
}
   0xd   :  { %s5286_s16 = smov 64   ;;  %s5287_s17 = smov 4  }
   0xe   :  { %42 = dma.hbm_to_vmem [thread:$0]  %s7143_s1, 1024, %s37_s14, [#allocation7], %s5286_s16, %s5286_s16, %s5287_s17  }
   0xf   :  { %s5288_s20 = smov [#allocation3]  }
  0x10   :  { %s24_s21 = sshll.u32 %s5288_s20, 4  ;;  %s25_s21 = int_to_ptr.vmem [resolvable:$true] %s24_s21 }
  0x11   :  { %s5205_s22 = scalar_lea.vmem %s25_s21, 2048  ;;  %p5210_p6 = scmp.lt.s32.totalorder %s25_s21, %s25_s21 }
  0x12   :  { %p5206_p5 = scmp.ne.s32.totalorder %s25_s21, %s5205_s22  ;;  %p5211_p7 = scmp.lt.s32.totalorder %s5205_s22, %s5205_s22 }
  0x14   :  { %p5212_p8 = por %p5211_p7, %p5210_p6 }
  0x16   :  { %p5213_p9 = pnand %p5212_p8, %p5206_p5 }
  0x18   :  { %5216 = shalt.err (!%p5213_p9)
}
  0x19   :  { %s5289_s23 = smov 128   ;;  %s5290_s24 = smov 8  }
  0x1a   :  { %30 = dma.hbm_to_vmem [thread:$0]  %s7142_s0, 2048, %s25_s21, [#allocation4], %s5289_s23, %s5289_s23, %s5290_s24  }
  0x1b   :  { %s5291_s1 = smov [#allocation8]   ;;  %s5292_s28 = smov [#allocation9]  }
  0x1c   :  { %s52_s27 = sshll.u32 %s5291_s1, 4  ;;  %s68_s29 = sshll.u32 %s5292_s28, 4  ;;  %s53_s27 = int_to_ptr.vmem [resolvable:$true] %s52_s27  ;;  %s69_s29 = int_to_ptr.vmem [resolvable:$true] %s68_s29 }
  0x1d   :  { %s5225_s30 = scalar_lea.vmem %s53_s27, 9216  ;;  %p5230_p11 = scmp.lt.s32.totalorder %s53_s27, %s53_s27 }
  0x1e   :  { %p5226_p10 = scmp.ne.s32.totalorder %s53_s27, %s5225_s30  ;;  %p5231_p12 = scmp.lt.s32.totalorder %s5225_s30, %s5225_s30 }
  0x20   :  { %p5232_p13 = por %p5231_p12, %p5230_p11 }
  0x22   :  { %p5233_p0 = pnand %p5232_p13, %p5226_p10 }
  0x24   :  { %5236 = shalt.err (!%p5233_p0)
}
  0x25   :  { %58 = dma.hbm_to_vmem [thread:$0]  %s7146_s4, 9216, %s53_s27, [#allocation7], %s5286_s16, %s5286_s16, %s5287_s17  }
  0x26   :  { %s5245_s0 = scalar_lea.vmem %s69_s29, 1024  ;;  %p5250_p2 = scmp.lt.s32.totalorder %s69_s29, %s69_s29 }
  0x27   :  { %p5246_p1 = scmp.ne.s32.totalorder %s69_s29, %s5245_s0  ;;  %p5251_p3 = scmp.lt.s32.totalorder %s5245_s0, %s5245_s0 }
  0x29   :  { %p5252_p4 = por %p5251_p3, %p5250_p2 }
  0x2b   :  { %p5253_p5 = pnand %p5252_p4, %p5246_p1 }
  0x2d   :  { %5256 = shalt.err (!%p5253_p5)
}
  0x2e   :  { %74 = dma.hbm_to_vmem [thread:$0]  %s7149_s7, 1024, %s69_s29, [#allocation10], %s5286_s16, %s5286_s16, %s5287_s17  }
  0x2f   :  { %5277 = dma.done.wait [#allocation4], 2048  }
  0x30   :  { %5278 = vsyncadd [#allocation4], 4294965248 }
  0x31   :  { %5279 = dma.done.wait [#allocation7], 10240  }
  0x32   :  { %5280 = vsyncadd [#allocation7], 4294957056 }
  0x33   :  { %5281 = dma.done.wait [#allocation10], 1024  }
  0x34   :  { %5282 = vsyncadd [#allocation10], 4294966272  ;;  %v5057_v0 = vld [vmem:[#allocation6 + $0x38] sm:$0xff]   ;;  %v5058_v1 = vld [vmem:[#allocation6 + $0x30] sm:$0xff]   ;;  %v5293_v57 = vmov 0   ;;  %vm419_vm0 = vcmask 1043459  }
  0x35   :  { %4679 = vmatprep.subr.bf16.mxu0 %v5057_v0  ;;  %v5059_v2 = vld [vmem:[#allocation6 + $0x28] sm:$0xff]   ;;  %v5060_v3 = vld [vmem:[#allocation6 + $0x20] sm:$0xff]   ;;  %v5061_v7 = vld [vmem:[#allocation6 + $0x18] sm:$0xff]   ;;  %425 = vst [vmem:[#allocation2 + $0x8] sm:$0xf] %v5293_v57  ;;  %vm426_vm4 = vcmask 1040384  }
  0x36   :  { %4680 = vmatpush3.bf16.msra.mxu0 %v5057_v0  ;;  %v92_v4 = vld [vmem:[#allocation3] sm:$0xff]  ;;  %v93_v5 = vld [vmem:[#allocation3 + $0x8] sm:$0xff]  ;;  %v5062_v8 = vld [vmem:[#allocation6 + $0x10] sm:$0xff]   ;;  %443 = vst [vmem:[#allocation2 + $0x98] sm:$0xf] %v5293_v57 }
  0x37   :  { %4681 = vmatprep.subr.bf16.mxu0 %v5058_v1  ;;  %v108_v6 = vpack.c.bf16 %v93_v5, %v92_v4  ;;  %v5063_v9 = vld [vmem:[#allocation6 + $0x8] sm:$0xff]   ;;  %v5064_v10 = vld [vmem:[#allocation6] sm:$0xff]   ;;  %v94_v11 = vld [vmem:[#allocation3 + $0x10] sm:$0xff]  ;;  %450 = vst [vmem:[#allocation2 + $0x138] sm:$0xf] %v5293_v57 }
  0x38   :  { %v95_v12 = vld [vmem:[#allocation3 + $0x18] sm:$0xff]  ;;  %v96_v13 = vld [vmem:[#allocation3 + $0x20] sm:$0xff]  ;;  %v97_v14 = vld [vmem:[#allocation3 + $0x28] sm:$0xff]  ;;  %435 = vst [vmem:[#allocation2 + $0xa8] sm:$0xf] %v5293_v57 }
  0x39   :  { %4695 = vmatprep.mubr.bf16.mxu0 %v108_v6  ;;  %v109_v15 = vpack.c.bf16 %v95_v12, %v94_v11  ;;  %v110_v16 = vpack.c.bf16 %v97_v14, %v96_v13  ;;  %v98_v17 = vld [vmem:[#allocation3 + $0x30] sm:$0xff]  ;;  %v99_v18 = vld [vmem:[#allocation3 + $0x38] sm:$0xff]  ;;  %v100_v19 = vld [vmem:[#allocation3 + $0x40] sm:$0xff]  ;;  %vm420_vm1 = vsmask.f32 7950 }
  0x3a   :  { %4682 = vmatpush3.bf16.msra.mxu0 %v5058_v1  ;;  %v101_v20 = vld [vmem:[#allocation3 + $0x48] sm:$0xff]  ;;  %v111_v21 = vpack.c.bf16 %v99_v18, %v98_v17  ;;  %v102_v23 = vld [vmem:[#allocation3 + $0x50] sm:$0xff]  ;;  %v103_v24 = vld [vmem:[#allocation3 + $0x58] sm:$0xff]  ;;  %vm427_vm3 = vsmask.f32 256 }
  0x3b   :  { %4683 = vmatprep.subr.bf16.mxu0 %v5059_v2  ;;  %v112_v22 = vpack.c.bf16 %v101_v20, %v100_v19  ;;  %v104_v25 = vld [vmem:[#allocation3 + $0x60] sm:$0xff]  ;;  %v105_v26 = vld [vmem:[#allocation3 + $0x68] sm:$0xff]  ;;  %v113_v27 = vpack.c.bf16 %v103_v24, %v102_v23  ;;  %v106_v29 = vld [vmem:[#allocation3 + $0x70] sm:$0xff]  ;;  %vm679_vm6 = vsmask.f32 4368 }
  0x3c   :  { %v114_v28 = vpack.c.bf16 %v105_v26, %v104_v25  ;;  %v107_v30 = vld [vmem:[#allocation3 + $0x78] sm:$0xff]  ;;  %v5066_v33 = vld [vmem:[#allocation8 + $0x70] sm:$0xff]   ;;  %v5067_v35 = vld [vmem:[#allocation8 + $0x68] sm:$0xff]   ;;  %vm1292_vm8 = vsmask.f32 3328 }
  0x3d   :  { %v115_v31 = vpack.c.bf16 %v107_v30, %v106_v29  ;;  %v5065_v32 = vld [vmem:[#allocation8 + $0x78] sm:$0xff]   ;;  %v5070_v37 = vld [vmem:[#allocation8 + $0x30] sm:$0xff]   ;;  %v5069_v38 = vld [vmem:[#allocation8 + $0x60] sm:$0xff]   ;;  %vm1293_vm9 = vsmask.f32 7440 }
  0x3e   :  { %4684 = vmatpush3.bf16.msra.mxu0 %v5059_v2  ;;  %4711 = vmatprep.subr.bf16.mxu1 %v5065_v32  ;;  %v5068_v34 = vld [vmem:[#allocation8 + $0x38] sm:$0xff]   ;;  %v5072_v41 = vld [vmem:[#allocation8 + $0x28] sm:$0xff]   ;;  %v5074_v46 = vld [vmem:[#allocation8 + $0x20] sm:$0xff]  }
  0x3f   :  { %4685 = vmatprep.subr.bf16.mxu0 %v5060_v3  ;;  %4712 = vmatpush3.bf16.msra.mxu1 %v5065_v32  ;;  %v5071_v42 = vld [vmem:[#allocation8 + $0x58] sm:$0xff]   ;;  %v5073_v48 = vld [vmem:[#allocation8 + $0x50] sm:$0xff]   ;;  %v5075_v52 = vld [vmem:[#allocation8 + $0x48] sm:$0xff]  }
  0x40   :  { %4713 = vmatprep.subr.bf16.mxu1 %v5066_v33  ;;  %v5076_v53 = vld [vmem:[#allocation8 + $0x18] sm:$0xff]   ;;  %v5077_v55 = vld [vmem:[#allocation8 + $0x40] sm:$0xff]   ;;  %v5078_v56 = vld [vmem:[#allocation8 + $0x10] sm:$0xff]  }
  0x41   :  { %vm5398_vm2 = vmand %vm419_vm0, %vm420_vm1  ;;  %v422_v62 = vld [vmem:[#allocation2 + $0x4] sm:$0x8]  ;;  %v455_v63 = vld [vmem:[#allocation2 + $0x14] sm:$0x8] }
  0x42   :  { %4686 = vmatpush3.bf16.msra.mxu0 %v5060_v3  ;;  %v423_v1 = vsel %vm5398_vm2, 0, %v422_v62  ;;  %v456_v2 = vsel %vm5398_vm2, 0, %v455_v63  ;;  %v458_v3 = vld [vmem:[#allocation2 + $0x24] sm:$0x8]  ;;  %v461_v6 = vld [vmem:[#allocation2 + $0x34] sm:$0x8]  ;;  %vm5455_vm5 = vmand %vm426_vm4, %vm427_vm3 }
  0x43   :  { %4687 = vmatprep.subr.bf16.mxu0 %v5061_v7  ;;  %4714 = vmatpush3.bf16.msra.mxu1 %v5066_v33  ;;  %424 = vst [vmem:[#allocation2 + $0x4] sm:$0x8] %v423_v1  ;;  %457 = vst [vmem:[#allocation2 + $0x14] sm:$0x8] %v456_v2  ;;  %v459_v5 = vsel %vm5398_vm2, 0, %v458_v3  ;;  %v5081_v24 = vld [vmem:[#allocation8 + $0xb8] sm:$0xff]  }
  0x44   :  { %4715 = vmatprep.subr.bf16.mxu1 %v5067_v35  ;;  %460 = vst [vmem:[#allocation2 + $0x24] sm:$0x8] %v459_v5  ;;  %v467_v11 = vld [vmem:[#allocation2 + $0x54] sm:$0x8]  ;;  %v432_v32 = vld [vmem:[#allocation2 + $0xa4] sm:$0x8]  ;;  %vm5741_vm7 = vmor %vm427_vm3, %vm679_vm6 }
  0x45   :  { %v468_v13 = vsel %vm5398_vm2, 0, %v467_v11  ;;  %v473_v17 = vld [vmem:[#allocation2 + $0x74] sm:$0x8]  ;;  %v5087_v33 = vld [vmem:[#allocation8 + $0xf8] sm:$0xff]   ;;  %v506_v5 = vld [vmem:[#allocation2 + $0x2c] sm:$0x1] }
  0x46   :  { %4688 = vmatpush3.bf16.msra.mxu0 %v5061_v7  ;;  %v464_v7 = vld [vmem:[#allocation2 + $0x44] sm:$0x8]  ;;  %469 = vst [vmem:[#allocation2 + $0x54] sm:$0x8] %v468_v13  ;;  %v503_v57 = vld [vmem:[#allocation2 + $0x1c] sm:$0x1]  ;;  %vm5844_vm10 = vmor %vm1292_vm8, %vm1293_vm9 }
  0x47   :  { %4689 = vmatprep.subr.bf16.mxu0 %v5062_v8  ;;  %4716 = vmatpush3.bf16.msra.mxu1 %v5067_v35  ;;  %v479_v35 = vld [vmem:[#allocation2 + $0xb4] sm:$0x8] }
  0x48   :  { %4717 = vmatprep.subr.bf16.mxu1 %v5069_v38  ;;  %v497_v2 = vld [vmem:[#allocation2 + $0x114] sm:$0x8] }
  0x49   :  { %v498_v3 = vsel %vm5398_vm2, 0, %v497_v2 }
  0x4a   :  { %4690 = vmatpush3.bf16.msra.mxu0 %v5062_v8  ;;  %499 = vst [vmem:[#allocation2 + $0x114] sm:$0x8] %v498_v3  ;;  %v634_v2 = vld [vmem:[#allocation2 + $0x14] sm:$0xf] }
  0x4b   :  { %4691 = vmatprep.subr.bf16.mxu0 %v5063_v9  ;;  %4718 = vmatpush3.bf16.msra.mxu1 %v5069_v38  ;;  %v480_v38 = vsel %vm5398_vm2, 0, %v479_v35 }
  0x4c   :  { %4719 = vmatprep.subr.bf16.mxu1 %v5071_v42  ;;  %481 = vst [vmem:[#allocation2 + $0xb4] sm:$0x8] %v480_v38  ;;  %v527_v38 = vld [vmem:[#allocation2 + $0xbc] sm:$0x1] }
  0x4e   :  { %4692 = vmatpush3.bf16.msra.mxu0 %v5063_v9  ;;  %v462_v9 = vsel %vm5398_vm2, 0, %v461_v6  ;;  %v509_v6 = vld [vmem:[#allocation2 + $0x3c] sm:$0x1] }
  0x4f   :  { %4693 = vmatprep.subr.bf16.mxu0 %v5064_v10  ;;  %4720 = vmatpush3.bf16.msra.mxu1 %v5071_v42  ;;  %463 = vst [vmem:[#allocation2 + $0x34] sm:$0x8] %v462_v9  ;;  %v510_v9 = vsel %vm5455_vm5, 0, %v509_v6 }
  0x50   :  { %4721 = vmatprep.subr.bf16.mxu1 %v5073_v48  ;;  %511 = vst [vmem:[#allocation2 + $0x3c] sm:$0x1] %v510_v9 }
  0x52   :  { %4694 = vmatpush3.bf16.msra.mxu0 %v5064_v10  ;;  %v465_v10 = vsel %vm5398_vm2, 0, %v464_v7 }
  0x53   :  { %4743 = vmatprep.subr.bf16.mxu0 %v5068_v34  ;;  %4722 = vmatpush3.bf16.msra.mxu1 %v5073_v48  ;;  %466 = vst [vmem:[#allocation2 + $0x44] sm:$0x8] %v465_v10 }
  0x54   :  { %4723 = vmatprep.subr.bf16.mxu1 %v5075_v52 }
  0x55   :  { %4696 = vmatmul.mubr.bf16.vlgmr.msra.gmra.mxu0 %v109_v15 }
  0x56   :  { %4699 = vmatprep.mubr.bf16.mxu0 %v110_v16  ;;  %4744 = vmatpush3.bf16.msra.mxu0 %v5068_v34  ;;  %v470_v16 = vld [vmem:[#allocation2 + $0x64] sm:$0x8] }
  0x57   :  { %4745 = vmatprep.subr.bf16.mxu0 %v5070_v37  ;;  %4724 = vmatpush3.bf16.msra.mxu1 %v5075_v52  ;;  %v471_v19 = vsel %vm5398_vm2, 0, %v470_v16  ;;  %v491_v52 = vld [vmem:[#allocation2 + $0xf4] sm:$0x8] }
  0x58   :  { %4725 = vmatprep.subr.bf16.mxu1 %v5077_v55  ;;  %472 = vst [vmem:[#allocation2 + $0x64] sm:$0x8] %v471_v19 }
  0x5a   :  { %4746 = vmatpush3.bf16.msra.mxu0 %v5070_v37  ;;  %v433_v37 = vsel %vm5398_vm2, 0, %v432_v32 }
  0x5b   :  { %4747 = vmatprep.subr.bf16.mxu0 %v5072_v41  ;;  %4726 = vmatpush3.bf16.msra.mxu1 %v5077_v55  ;;  %434 = vst [vmem:[#allocation2 + $0xa4] sm:$0x8] %v433_v37  ;;  %v7192_v55 = vmov 0 }
  0x5c   :  { %4775 = vmatprep.subr.bf16.mxu1 %v5081_v24  ;;  %v7193_v55 = vsel %vm5455_vm5, 4294967295, %v7192_v55 }
  0x5d   :  { %4700 = vmatmul.mubr.bf16.gmra.mxu0 %v111_v21  ;;  %v5080_v21 = vld [vmem:[#allocation8 + $0x8] sm:$0xff]   ;;  %7194 = vst [vmem:[#allocation16_spill] sm:$0xff] %v7193_v55  ;;  %v1691_v55 = vld [vmem:[#allocation2 + $0x114] sm:$0xf] }
  0x5e   :  { %4703 = vmatprep.mubr.bf16.mxu0 %v112_v22  ;;  %4748 = vmatpush3.bf16.msra.mxu0 %v5072_v41  ;;  %v474_v22 = vsel %vm5398_vm2, 0, %v473_v17  ;;  %v482_v41 = vld [vmem:[#allocation2 + $0xc4] sm:$0x8] }
  0x5f   :  { %4749 = vmatprep.subr.bf16.mxu0 %v5074_v46  ;;  %475 = vst [vmem:[#allocation2 + $0x74] sm:$0x8] %v474_v22 }
  0x62   :  { %4750 = vmatpush3.bf16.msra.mxu0 %v5074_v46  ;;  %v485_v46 = vld [vmem:[#allocation2 + $0xd4] sm:$0x8] }
  0x63   :  { %4751 = vmatprep.subr.bf16.mxu0 %v5076_v53  ;;  %v486_v48 = vsel %vm5398_vm2, 0, %v485_v46 }
  0x64   :  { %487 = vst [vmem:[#allocation2 + $0xd4] sm:$0x8] %v486_v48 }
  0x65   :  { %4704 = vmatmul.mubr.bf16.gmra.mxu0 %v113_v27 }
  0x66   :  { %4707 = vmatprep.mubr.bf16.mxu0 %v114_v28  ;;  %4752 = vmatpush3.bf16.msra.mxu0 %v5076_v53  ;;  %v5084_v28 = vld [vmem:[#allocation8] sm:$0xff]  }
  0x67   :  { %4753 = vmatprep.subr.bf16.mxu0 %v5078_v56 }
  0x6a   :  { %4754 = vmatpush3.bf16.msra.mxu0 %v5078_v56  ;;  %v429_v56 = vld [vmem:[#allocation2 + $0xc] sm:$0x1] }
  0x6b   :  { %4755 = vmatprep.subr.bf16.mxu0 %v5080_v21  ;;  %v430_v63 = vsel %vm5455_vm5, 0, %v429_v56 }
  0x6c   :  { %431 = vst [vmem:[#allocation2 + $0xc] sm:$0x1] %v430_v63 }
  0x6d   :  { %4708 = vmatmul.mubr.bf16.gmra.mxu0 %v115_v31 }
  0x6e   :  { %4756 = vmatpush3.bf16.msra.mxu0 %v5080_v21 }
  0x6f   :  { %4757 = vmatprep.subr.bf16.mxu0 %v5084_v28 }
  0x72   :  { %4758 = vmatpush3.bf16.msra.mxu0 %v5084_v28 }
  0x73   :  { %4807 = vmatprep.subr.bf16.mxu0 %v5087_v33 }
 0x115   :  { %v5374_v36 = vpop.f32.mrf.mxu0 }
 0x117   :  { %v5376_v39 = vpop.f32.mrf.mxu0 }
 0x119   :  { %v5378_v40 = vpop.f32.mrf.mxu0 }
 0x11b   :  { %v5380_v43 = vpop.f32.mrf.mxu0 }
 0x11c   :  { %v279_v44 = vadd.f32 %v5380_v43, %v5376_v39 }
 0x11d   :  { %v5384_v45 = vpop.f32.mrf.mxu0 }
 0x11e   :  { %v280_v47 = vadd.f32 %v5374_v36, %v279_v44  ;;  %v483_v44 = vsel %vm5398_vm2, 0, %v482_v41 }
 0x11f   :  { %v5387_v49 = vpop.f32.mrf.mxu0  ;;  %484 = vst [vmem:[#allocation2 + $0xc4] sm:$0x8] %v483_v44 }
 0x120   :  { %v281_v50 = vadd.f32 %v5378_v40, %v280_v47  ;;  %v488_v47 = vld [vmem:[#allocation2 + $0xe4] sm:$0x8] }
 0x121   :  { %v5390_v51 = vpop.f32.mrf.mxu0 }
 0x122   :  { %v282_v54 = vadd.f32 %v281_v50, %v5387_v49  ;;  %v489_v50 = vsel %vm5398_vm2, 0, %v488_v47  ;;  %v476_v47 = vld [vmem:[#allocation2 + $0x84] sm:$0x8] }
 0x123   :  { %v5393_v58 = vpop.f32.mrf.mxu0  ;;  %490 = vst [vmem:[#allocation2 + $0xe4] sm:$0x8] %v489_v50  ;;  %v477_v3 = vsel %vm5398_vm2, 0, %v476_v47 }
 0x124   :  { %v283_v59 = vadd.f32 %v282_v54, %v5393_v58  ;;  %v492_v54 = vsel %vm5398_vm2, 0, %v491_v52  ;;  %478 = vst [vmem:[#allocation2 + $0x84] sm:$0x8] %v477_v3 }
 0x125   :  { %v5396_v60 = vpop.f32.mrf.mxu0  ;;  %493 = vst [vmem:[#allocation2 + $0xf4] sm:$0x8] %v492_v54 }
 0x126   :  { %v284_v0 = vadd.f32 %v5384_v45, %v283_v59  ;;  %v494_v59 = vld [vmem:[#allocation2 + $0x104] sm:$0x8] }
 0x127   :  { %v5407_v4 = vpop.f32.mrf.mxu0  ;;  %v495_v1 = vsel %vm5398_vm2, 0, %v494_v59 }
 0x128   :  { %v285_v8 = vadd.f32 %v5390_v51, %v284_v0  ;;  %v504_v0 = vsel %vm5455_vm5, 0, %v503_v57  ;;  %496 = vst [vmem:[#allocation2 + $0x104] sm:$0x8] %v495_v1  ;;  %v631_v57 = vld [vmem:[#allocation2 + $0x4] sm:$0xf] }
 0x129   :  { %v5416_v12 = vpop.f32.mrf.mxu0  ;;  %505 = vst [vmem:[#allocation2 + $0x1c] sm:$0x1] %v504_v0  ;;  %v682_v9 = vshrl.u32 %v631_v57, 16 }
 0x12a   :  { %v286_v14 = vadd.f32 %v285_v8, %v5407_v4  ;;  %v507_v8 = vsel %vm5455_vm5, 0, %v506_v5 }
 0x12b   :  { %v5421_v15 = vpop.f32.mrf.mxu0  ;;  %508 = vst [vmem:[#allocation2 + $0x2c] sm:$0x1] %v507_v8 }
 0x12c   :  { %v287_v18 = vadd.f32 %v286_v14, %v5421_v15 }
 0x12d   :  { %v5426_v20 = vpop.f32.mrf.mxu0 }
 0x12e   :  { %v288_v23 = vadd.f32 %v5396_v60, %v287_v18 }
 0x12f   :  { %v5431_v25 = vpop.f32.mrf.mxu0 }
 0x130   :  { %v289_v26 = vadd.f32 %v5416_v12, %v288_v23  ;;  %v515_v23 = vld [vmem:[#allocation2 + $0x5c] sm:$0x1] }
 0x131   :  { %v5434_v27 = vpop.f32.mrf.mxu0  ;;  %v516_v33 = vsel %vm5455_vm5, 0, %v515_v23  ;;  %v640_v23 = vld [vmem:[#allocation2 + $0x34] sm:$0xf] }
 0x132   :  { %v290_v29 = vadd.f32 %v289_v26, %v5431_v25  ;;  %v5499_v26 = vld [vmem:[#allocation2 + $0x8] sm:$0xf]  ;;  %517 = vst [vmem:[#allocation2 + $0x5c] sm:$0x1] %v516_v33  ;;  %v646_v33 = vld [vmem:[#allocation2 + $0x54] sm:$0xf] }
 0x133   :  { %v5437_v30 = vpop.f32.mrf.mxu0  ;;  %v687_v35 = vshrl.u32 %v5499_v26, 16  ;;  %v7154_v37 = vshll.u32 %v5499_v26, 16 }
 0x134   :  { %v291_v31 = vadd.f32 %v290_v29, %v5437_v30  ;;  %v360_v29 = vlaneseq }
 0x135   :  { %v1295_v0 = vrot.slane %v687_v35, 4  ;;  %v1296_v1 = vrot.slane %v7154_v37, 5 }
 0x136   :  { %v292_v34 = vadd.f32 %v5426_v20, %v291_v31  ;;  %v518_v31 = vld [vmem:[#allocation2 + $0x6c] sm:$0x1]  ;;  %v361_v50 = vshrl.u32 %v360_v29, 7 }
 0x137   :  { %v519_v46 = vsel %vm5455_vm5, 0, %v518_v31  ;;  %v1297_v29 = vor.u32 %v1296_v1, %v1295_v0  ;;  %v655_v1 = vld [vmem:[#allocation2 + $0xa4] sm:$0xf] }
 0x138   :  { %v293_v42 = vadd.f32 %v5434_v27, %v292_v34  ;;  %v521_v34 = vld [vmem:[#allocation2 + $0x7c] sm:$0x1]  ;;  %520 = vst [vmem:[#allocation2 + $0x6c] sm:$0x1] %v519_v46 }
 0x139   :  { %v522_v52 = vsel %vm5455_vm5, 0, %v521_v34  ;;  %v5563_v34 = vld [vmem:[#allocation2 + $0xa8] sm:$0xf]  ;;  %v5590_v0 = vrot.slane %v1297_v29, 4  ;;  %v664_v29 = vld [vmem:[#allocation2 + $0xd4] sm:$0xf] }
 0x13a   :  { %v294_v53 = vrot.slane %v293_v42, 4  ;;  %523 = vst [vmem:[#allocation2 + $0x7c] sm:$0x1] %v522_v52  ;;  %v791_v57 = vshrl.u32 %v5563_v34, 16  ;;  %v7153_v3 = vshll.u32 %v5563_v34, 16 }
 0x13c   :  { %v295_v62 = vadd.f32 %v294_v53, %v293_v42  ;;  %v530_v53 = vld [vmem:[#allocation2 + $0xcc] sm:$0x1] }
 0x13e   :  { %v296_v7 = vrot.slane %v295_v62, 2 }
 0x140   :  { %v297_v10 = vadd.f32 %v296_v7, %v295_v62  ;;  %v536_v62 = vld [vmem:[#allocation2 + $0xec] sm:$0x1]  ;;  %v637_v7 = vld [vmem:[#allocation2 + $0x24] sm:$0xf] }
 0x141   :  { %v708_v31 = vshrl.u32 %v637_v7, 16  ;;  %v5751_v61 = vld [vmem:[#allocation2 + $0x7c] sm:$0xf] }
 0x142   :  { %v298_v11 = vrot.slane %v297_v10, 1 }
 0x144   :  { %v299_v13 = vadd.f32 %v298_v11, %v297_v10  ;;  %v537_v10 = vsel %vm5455_vm5, 0, %v536_v62  ;;  %v539_v11 = vld [vmem:[#allocation2 + $0xfc] sm:$0x1] }
 0x145   :  { %538 = vst [vmem:[#allocation2 + $0xec] sm:$0x1] %v537_v10 }
 0x146   :  { %v5471_v14 = vmul.f32 0.0078125, %v299_v13 }
 0x148   :  { %v5475_v16 = vsub.f32 %v5376_v39, %v5471_v14  ;;  %v5479_v17 = vsub.f32 %v5380_v43, %v5471_v14  ;;  %v5483_v18 = vsub.f32 %v5374_v36, %v5471_v14  ;;  %v5491_v22 = vsub.f32 %v5378_v40, %v5471_v14  ;;  %v512_v39 = vld [vmem:[#allocation2 + $0x4c] sm:$0x1] }
 0x149   :  { %v5495_v43 = vsub.f32 %v5387_v49, %v5471_v14  ;;  %v5503_v28 = vsub.f32 %v5393_v58, %v5471_v14  ;;  %v513_v49 = vsel %vm5455_vm5, 0, %v512_v39  ;;  %v436_v58 = vld [vmem:[#allocation2 + $0xac] sm:$0x1]  ;;  %v5515_v41 = vsub.f32 %v5384_v45, %v5471_v14  ;;  %v533_v45 = vld [vmem:[#allocation2 + $0xdc] sm:$0x1] }
 0x14a   :  { %v318_v19 = vmul.f32 %v5475_v16, %v5475_v16  ;;  %v319_v21 = vmul.f32 %v5479_v17, %v5479_v17  ;;  %v320_v36 = vmul.f32 %v5483_v18, %v5483_v18  ;;  %v321_v40 = vmul.f32 %v5491_v22, %v5491_v22  ;;  %514 = vst [vmem:[#allocation2 + $0x4c] sm:$0x1] %v513_v49 }
 0x14b   :  { %v322_v42 = vmul.f32 %v5495_v43, %v5495_v43  ;;  %v5523_v48 = vsub.f32 %v5390_v51, %v5471_v14  ;;  %v323_v54 = vmul.f32 %v5503_v28, %v5503_v28  ;;  %v437_v59 = vsel %vm5455_vm5, 0, %v436_v58 }
 0x14c   :  { %v334_v24 = vadd.f32 %v319_v21, %v318_v19  ;;  %v528_v51 = vsel %vm5455_vm5, 0, %v527_v38  ;;  %v5535_v63 = vsub.f32 %v5407_v4, %v5471_v14  ;;  %438 = vst [vmem:[#allocation2 + $0xac] sm:$0x1] %v437_v59  ;;  %v324_v5 = vmul.f32 %v5515_v41, %v5515_v41  ;;  %v652_v59 = vld [vmem:[#allocation2 + $0x74] sm:$0xf] }
 0x14d   :  { %529 = vst [vmem:[#allocation2 + $0xbc] sm:$0x1] %v528_v51  ;;  %v531_v4 = vsel %vm5455_vm5, 0, %v530_v53  ;;  %v534_v8 = vsel %vm5455_vm5, 0, %v533_v45  ;;  %v5551_v13 = vsub.f32 %v5421_v15, %v5471_v14  ;;  %v325_v19 = vmul.f32 %v5523_v48, %v5523_v48  ;;  %v649_v53 = vld [vmem:[#allocation2 + $0x64] sm:$0xf] }
 0x14e   :  { %v335_v32 = vadd.f32 %v334_v24, %v320_v36  ;;  %532 = vst [vmem:[#allocation2 + $0xcc] sm:$0x1] %v531_v4  ;;  %535 = vst [vmem:[#allocation2 + $0xdc] sm:$0x1] %v534_v8  ;;  %v695_v39 = vshrl.u32 %v634_v2, 16  ;;  %v5555_v24 = vsub.s32 0, %v361_v50  ;;  %v326_v15 = vmul.f32 %v5535_v63, %v5535_v63 }
 0x14f   :  { %v542_v36 = vld [vmem:[#allocation2 + $0x10c] sm:$0x1]  ;;  %v540_v58 = vsel %vm5455_vm5, 0, %v539_v11  ;;  %v5567_v38 = vrot.slane %v687_v35, 7  ;;  %v5575_v46 = vsub.f32 %v5416_v12, %v5471_v14  ;;  %v327_v47 = vmul.f32 %v5551_v13, %v5551_v13  ;;  %v545_v35 = vld [vmem:[#allocation2 + $0x11c] sm:$0x1] }
 0x150   :  { %v336_v44 = vadd.f32 %v335_v32, %v321_v40  ;;  %7195 = vst [vmem:[#allocation17_spill] sm:$0xff] %v5555_v24  ;;  %v643_v40 = vld [vmem:[#allocation2 + $0x44] sm:$0xf]  ;;  %v5559_v32 = vsub.f32 %v5396_v60, %v5471_v14  ;;  %541 = vst [vmem:[#allocation2 + $0xfc] sm:$0x1] %v540_v58  ;;  %v543_v60 = vsel %vm5455_vm5, 0, %v542_v36  ;;  %v5586_v12 = vsub.f32 %v5431_v25, %v5471_v14 }
 0x151   :  { %v5579_v52 = vrot.slane %v695_v39, 11  ;;  %544 = vst [vmem:[#allocation2 + $0x10c] sm:$0x1] %v543_v60  ;;  %v5581_v45 = vrot.slane %v708_v31, 11  ;;  %v5599_v7 = vsub.f32 %v5437_v30, %v5471_v14  ;;  %v329_v25 = vmul.f32 %v5575_v46, %v5575_v46  ;;  %v661_v36 = vld [vmem:[#allocation2 + $0xc4] sm:$0xf] }
 0x152   :  { %v337_v56 = vadd.f32 %v336_v44, %v322_v42  ;;  %v5569_v42 = vrot.slane %v682_v9, 11  ;;  %v721_v44 = vshrl.u32 %v640_v23, 16  ;;  %v328_v51 = vmul.f32 %v5559_v32, %v5559_v32  ;;  %v658_v9 = vld [vmem:[#allocation2 + $0xb4] sm:$0xf]  ;;  %v667_v31 = vld [vmem:[#allocation2 + $0xe4] sm:$0xf] }
 0x153   :  { %v773_v8 = vshrl.u32 %v652_v59, 16  ;;  %v5611_v39 = vsub.f32 %v5426_v20, %v5471_v14  ;;  %v330_v30 = vmul.f32 %v5586_v12, %v5586_v12  ;;  %v670_v58 = vld [vmem:[#allocation2 + $0xf4] sm:$0xf]  ;;  %v5625_v20 = vsub.f32 %v5434_v27, %v5471_v14 }
 0x154   :  { %v338_v6 = vadd.f32 %v337_v56, %v323_v54  ;;  %v734_v54 = vshrl.u32 %v643_v40, 16  ;;  %v747_v56 = vshrl.u32 %v646_v33, 16  ;;  %v5592_v2 = vrot.slane %v721_v44, 11 }
 0x155   :  { %v5615_v40 = vrot.slane %v791_v57, 4  ;;  %v799_v33 = vshrl.u32 %v658_v9, 16  ;;  %v331_v44 = vmul.f32 %v5599_v7, %v5599_v7  ;;  %v332_v59 = vmul.f32 %v5611_v39, %v5611_v39 }
 0x156   :  { %v339_v21 = vadd.f32 %v338_v6, %v324_v5  ;;  %v760_v5 = vshrl.u32 %v649_v53, 16  ;;  %v546_v6 = vsel %vm5455_vm5, 0, %v545_v35  ;;  %v5603_v10 = vrot.slane %v734_v54, 11  ;;  %v500_v53 = vld [vmem:[#allocation2 + $0x124] sm:$0x8] }
 0x157   :  { %547 = vst [vmem:[#allocation2 + $0x11c] sm:$0x1] %v546_v6  ;;  %v5605_v11 = vrot.slane %v747_v56, 11  ;;  %v812_v35 = vshrl.u32 %v661_v36, 16  ;;  %v825_v54 = vshrl.u32 %v664_v29, 16  ;;  %v838_v56 = vshrl.u32 %v667_v31, 16 }
 0x158   :  { %v340_v49 = vadd.f32 %v339_v21, %v325_v19  ;;  %v5607_v19 = vrot.slane %v791_v57, 7  ;;  %v786_v21 = vshrl.u32 %v655_v1, 16  ;;  %v501_v57 = vsel %vm5398_vm2, 0, %v500_v53  ;;  %v1649_v1 = vld [vmem:[#allocation2 + $0x14] sm:$0xf] }
 0x159   :  { %v851_v14 = vshrl.u32 %v670_v58, 16  ;;  %502 = vst [vmem:[#allocation2 + $0x124] sm:$0x8] %v501_v57  ;;  %v1652_v36 = vld [vmem:[#allocation2 + $0x24] sm:$0xf]  ;;  %v5641_v29 = vrot.slane %v812_v35, 11 }
 0x15a   :  { %v341_v50 = vadd.f32 %v340_v49, %v326_v15  ;;  %v5619_v15 = vrot.slane %v7153_v3, 5  ;;  %v5621_v49 = vrot.slane %v760_v5, 11  ;;  %v5635_v27 = vrot.slane %v786_v21, 11 }
 0x15b   :  { %v5637_v5 = vrot.slane %v799_v33, 11  ;;  %7199 = vst [vmem:[#allocation21_spill] sm:$0xff] %v5641_v29  ;;  %v5643_v21 = vrot.slane %v825_v54, 11  ;;  %v5645_v31 = vrot.slane %v838_v56, 11  ;;  %v1698_v37 = vshrl.u32 %v1649_v1, 16 }
 0x15c   :  { %v342_v62 = vadd.f32 %v341_v50, %v327_v47  ;;  %7196 = vst [vmem:[#allocation18_spill] sm:$0xff] %v5621_v49  ;;  %v5629_v47 = vrot.slane %v773_v8, 11  ;;  %v633_v50 = vld [vmem:[#allocation2 + $0xc] sm:$0xf]  ;;  %v333_v8 = vmul.f32 %v5625_v20, %v5625_v20  ;;  %v1658_v56 = vld [vmem:[#allocation2 + $0x44] sm:$0xf] }
 0x15d   :  { %7198 = vst [vmem:[#allocation20_spill] sm:$0xff] %v5637_v5  ;;  %v1300_v6 = vshll.u32 %v633_v50, 16  ;;  %7200 = vst [vmem:[#allocation22_spill] sm:$0xff] %v5643_v21  ;;  %v1667_v1 = vld [vmem:[#allocation2 + $0x74] sm:$0xf] }
 0x15e   :  { %v343_v4 = vadd.f32 %v342_v62, %v328_v51  ;;  %7197 = vst [vmem:[#allocation19_spill] sm:$0xff] %v5629_v47  ;;  %v636_v62 = vld [vmem:[#allocation2 + $0x1c] sm:$0xf]  ;;  %7201 = vst [vmem:[#allocation23_spill] sm:$0xff] %v5645_v31  ;;  %v1664_v31 = vld [vmem:[#allocation2 + $0x64] sm:$0xf] }
 0x15f   :  { %v1309_v58 = vshll.u32 %v636_v62, 16  ;;  %v5649_v47 = vrot.slane %v1300_v6, 5  ;;  %v1661_v62 = vld [vmem:[#allocation2 + $0x54] sm:$0xf]  ;;  %v660_v49 = vld [vmem:[#allocation2 + $0xbc] sm:$0xf] }
 0x160   :  { %v344_v23 = vadd.f32 %v343_v4, %v329_v25  ;;  %v673_v25 = vld [vmem:[#allocation2 + $0x104] sm:$0xf]  ;;  %v676_v4 = vld [vmem:[#allocation2 + $0x114] sm:$0xf] }
 0x161   :  { %v864_v50 = vshrl.u32 %v673_v25, 16  ;;  %v877_v53 = vshrl.u32 %v676_v4, 16 }
 0x162   :  { %v345_v60 = vadd.f32 %v344_v23, %v330_v30  ;;  %v639_v30 = vld [vmem:[#allocation2 + $0x2c] sm:$0xf]  ;;  %v642_v23 = vld [vmem:[#allocation2 + $0x3c] sm:$0xf] }
 0x163   :  { %v1318_v57 = vshll.u32 %v639_v30, 16  ;;  %v1327_v3 = vshll.u32 %v642_v23, 16  ;;  %v5655_v25 = vrot.slane %v864_v50, 11  ;;  %v5657_v4 = vrot.slane %v877_v53, 11  ;;  %v645_v50 = vld [vmem:[#allocation2 + $0x4c] sm:$0xf] }
 0x164   :  { %v346_v51 = vadd.f32 %v345_v60, %v331_v44  ;;  %v1655_v44 = vld [vmem:[#allocation2 + $0x34] sm:$0xf]  ;;  %v5647_v60 = vrot.slane %v851_v14, 11  ;;  %v5663_v30 = vrot.slane %v1698_v37, 11  ;;  %v1369_v37 = vor.u32 %v5619_v15, %v5615_v40 }
 0x165   :  { %v1724_v35 = vshrl.u32 %v1655_v44, 16  ;;  %7204 = vst [vmem:[#allocation26_spill] sm:$0xff] %v5655_v25  ;;  %7205 = vst [vmem:[#allocation27_spill] sm:$0xff] %v5657_v4  ;;  %v5661_v6 = vrot.slane %v1327_v3, 5  ;;  %v1679_v53 = vld [vmem:[#allocation2 + $0xd4] sm:$0xf] }
 0x166   :  { %v347_v9 = vadd.f32 %v346_v51, %v332_v59  ;;  %7202 = vst [vmem:[#allocation24_spill] sm:$0xff] %v5647_v60  ;;  %v1711_v59 = vshrl.u32 %v1652_v36, 16  ;;  %v524_v51 = vld [vmem:[#allocation2 + $0x8c] sm:$0x1]  ;;  %7208 = vst [vmem:[#allocation30_spill] sm:$0xff] %v5663_v30  ;;  %v5679_v15 = vrot.slane %v1369_v37, 4 }
 0x167   :  { %v525_v54 = vsel %vm5455_vm5, 0, %v524_v51  ;;  %7207 = vst [vmem:[#allocation29_spill] sm:$0xff] %v5661_v6  ;;  %v1673_v36 = vld [vmem:[#allocation2 + $0xb4] sm:$0xf]  ;;  %v5667_v51 = vrot.slane %v1724_v35, 11 }
 0x168   :  { %v348_v33 = vadd.f32 %v347_v9, %v333_v8  ;;  %526 = vst [vmem:[#allocation2 + $0x8c] sm:$0x1] %v525_v54  ;;  %v5653_v8 = vrot.slane %v1309_v58, 5  ;;  %v5659_v9 = vrot.slane %v1318_v57, 5  ;;  %v5665_v23 = vrot.slane %v1711_v59, 11 }
 0x169   :  { %7210 = vst [vmem:[#allocation32_spill] sm:$0xff] %v5667_v51  ;;  %v1750_v58 = vshrl.u32 %v1661_v62, 16  ;;  %v648_v54 = vld [vmem:[#allocation2 + $0x5c] sm:$0xf]  ;;  %v651_v25 = vld [vmem:[#allocation2 + $0x6c] sm:$0xf] }
 0x16a   :  { %v349_v5 = vrot.slane %v348_v33, 4  ;;  %7203 = vst [vmem:[#allocation25_spill] sm:$0xff] %v5653_v8  ;;  %7206 = vst [vmem:[#allocation28_spill] sm:$0xff] %v5659_v9  ;;  %v1763_v57 = vshrl.u32 %v1664_v31, 16  ;;  %v1776_v9 = vshrl.u32 %v1667_v1, 16  ;;  %v1802_v59 = vshrl.u32 %v1673_v36, 16 }
 0x16b   :  { %7209 = vst [vmem:[#allocation31_spill] sm:$0xff] %v5665_v23  ;;  %v1682_v3 = vld [vmem:[#allocation2 + $0xe4] sm:$0xf]  ;;  %v654_v6 = vld [vmem:[#allocation2 + $0x7c] sm:$0xf]  ;;  %v1336_v51 = vshll.u32 %v645_v50, 16 }
 0x16c   :  { %v350_v14 = vadd.f32 %v349_v5, %v348_v33  ;;  %v1737_v5 = vshrl.u32 %v1658_v56, 16  ;;  %v1676_v33 = vld [vmem:[#allocation2 + $0xc4] sm:$0xf]  ;;  %v548_v30 = vld [vmem:[#allocation2 + $0x12c] sm:$0x1]  ;;  %v1345_v56 = vshll.u32 %v648_v54, 16 }
 0x16d   :  { %v1815_v23 = vshrl.u32 %v1676_v33, 16  ;;  %v1354_v60 = vshll.u32 %v651_v25, 16  ;;  %v5673_v8 = vrot.slane %v1750_v58, 11  ;;  %v1841_v31 = vshrl.u32 %v1682_v3, 16  ;;  %v1670_v36 = vld [vmem:[#allocation2 + $0x84] sm:$0xf] }
 0x16e   :  { %v351_v44 = vrot.slane %v350_v14, 2  ;;  %v5671_v62 = vrot.slane %v1737_v5, 11  ;;  %v1363_v21 = vshll.u32 %v654_v6, 16  ;;  %v5675_v29 = vrot.slane %v1763_v57, 11 }
 0x16f   :  { %7212 = vst [vmem:[#allocation34_spill] sm:$0xff] %v5673_v8  ;;  %v549_v40 = vsel %vm5455_vm5, 0, %v548_v30  ;;  %v5681_v33 = vrot.slane %v1776_v9, 11  ;;  %v5683_v5 = vrot.slane %v1802_v59, 11  ;;  %v5685_v25 = vrot.slane %v1815_v23, 11 }
 0x170   :  { %v352_v4 = vadd.f32 %v351_v44, %v350_v14  ;;  %7211 = vst [vmem:[#allocation33_spill] sm:$0xff] %v5671_v62  ;;  %v657_v14 = vld [vmem:[#allocation2 + $0xac] sm:$0xf]  ;;  %v1828_v44 = vshrl.u32 %v1679_v53, 16  ;;  %7213 = vst [vmem:[#allocation35_spill] sm:$0xff] %v5675_v29  ;;  %v5687_v50 = vrot.slane %v1336_v51, 5 }
 0x171   :  { %7214 = vst [vmem:[#allocation36_spill] sm:$0xff] %v5681_v33  ;;  %7215 = vst [vmem:[#allocation37_spill] sm:$0xff] %v5683_v5  ;;  %v1372_v6 = vshll.u32 %v657_v14, 16  ;;  %v5691_v54 = vrot.slane %v1354_v60, 5  ;;  %v1381_v53 = vshll.u32 %v660_v49, 16  ;;  %v5695_v3 = vrot.slane %v1841_v31, 11 }
 0x172   :  { %v353_v35 = vrot.slane %v352_v4, 1  ;;  %7216 = vst [vmem:[#allocation38_spill] sm:$0xff] %v5685_v25  ;;  %550 = vst [vmem:[#allocation2 + $0x12c] sm:$0x1] %v549_v40  ;;  %v663_v30 = vld [vmem:[#allocation2 + $0xcc] sm:$0xf] }
 0x173   :  { %7217 = vst [vmem:[#allocation39_spill] sm:$0xff] %v5691_v54  ;;  %v5693_v57 = vrot.slane %v1828_v44, 11  ;;  %7219 = vst [vmem:[#allocation41_spill] sm:$0xff] %v5695_v3  ;;  %v5697_v37 = vrot.slane %v1363_v21, 5  ;;  %v1789_v23 = vshrl.u32 %v1670_v36, 16  ;;  %v1390_v60 = vshll.u32 %v663_v30, 16 }
 0x174   :  { %v354_v1 = vadd.f32 %v353_v35, %v352_v4  ;;  %v5689_v4 = vrot.slane %v1345_v56, 5  ;;  %v666_v59 = vld [vmem:[#allocation2 + $0xdc] sm:$0xf]  ;;  %v669_v35 = vld [vmem:[#allocation2 + $0xec] sm:$0xf]  ;;  %v5699_v56 = vrot.slane %v1372_v6, 5 }
 0x175   :  { %7218 = vst [vmem:[#allocation40_spill] sm:$0xff] %v5693_v57  ;;  %7220 = vst [vmem:[#allocation42_spill] sm:$0xff] %v5697_v37  ;;  %v440_v51 = vld [vmem:[#allocation2 + $0x94] sm:$0x8]  ;;  %v5703_v14 = vrot.slane %v1381_v53, 5  ;;  %v1399_v44 = vshll.u32 %v666_v59, 16 }
 0x176   :  { %v355_v58 = vmul.f32 0.0078125, %v354_v1  ;;  %v1685_v1 = vld [vmem:[#allocation2 + $0xf4] sm:$0xf]  ;;  %v441_v49 = vsel %vm5398_vm2, 0, %v440_v51  ;;  %v672_v31 = vld [vmem:[#allocation2 + $0xfc] sm:$0xf] }
 0x177   :  { %7221 = vst [vmem:[#allocation43_spill] sm:$0xff] %v5703_v14  ;;  %v1688_v40 = vld [vmem:[#allocation2 + $0x104] sm:$0xf]  ;;  %442 = vst [vmem:[#allocation2 + $0x94] sm:$0x8] %v441_v49  ;;  %v1408_v21 = vshll.u32 %v669_v35, 16 }
 0x178   :  { %v356_v9 = vadd.f32 1e-05, %v355_v58  ;;  %v675_v36 = vld [vmem:[#allocation2 + $0x10c] sm:$0xf]  ;;  %v1854_v58 = vshrl.u32 %v1685_v1, 16  ;;  %v5705_v25 = vrot.slane %v1789_v23, 11 }
 0x179   :  { %v678_v3 = vld [vmem:[#allocation2 + $0x11c] sm:$0xf]  ;;  %v5707_v6 = vrot.slane %v1390_v60, 5  ;;  %v1660_v5 = vld [vmem:[#allocation2 + $0x4c] sm:$0xf]  ;;  %v1417_v51 = vshll.u32 %v672_v31, 16 }
 0x17a   :  { %5169 = vrsqrt.f32 %v356_v9  ;;  %v1651_v57 = vld [vmem:[#allocation2 + $0x1c] sm:$0xf]  ;;  %v1654_v9 = vld [vmem:[#allocation2 + $0x2c] sm:$0xf]  ;;  %7222 = vst [vmem:[#allocation44_spill] sm:$0xff] %v5705_v25  ;;  %v1426_v53 = vshll.u32 %v675_v36, 16 }
 0x17b   :  { %7223 = vst [vmem:[#allocation45_spill] sm:$0xff] %v5707_v6  ;;  %v1657_v30 = vld [vmem:[#allocation2 + $0x3c] sm:$0xf]  ;;  %v1867_v33 = vshrl.u32 %v1688_v40, 16  ;;  %v1880_v59 = vshrl.u32 %v1691_v55, 16  ;;  %v5709_v29 = vrot.slane %v1399_v44, 5 }
 0x17c   :  { %v1435_v49 = vshll.u32 %v678_v3, 16  ;;  %v2346_v35 = vshll.u32 %v1651_v57, 16  ;;  %v2355_v14 = vshll.u32 %v1654_v9, 16  ;;  %v5711_v1 = vrot.slane %v1408_v21, 5  ;;  %v1663_v31 = vld [vmem:[#allocation2 + $0x5c] sm:$0xf] }
 0x17d   :  { %7224 = vst [vmem:[#allocation46_spill] sm:$0xff] %v5709_v29  ;;  %v5713_v8 = vrot.slane %v1854_v58, 11  ;;  %v2364_v37 = vshll.u32 %v1657_v30, 16  ;;  %v2373_v23 = vshll.u32 %v1660_v5, 16  ;;  %v7227_v60 = vshll.u32 %v5499_v26, 16 }
 0x17e   :  { %7225 = vst [vmem:[#allocation47_spill] sm:$0xff] %v5711_v1  ;;  %v1666_v36 = vld [vmem:[#allocation2 + $0x6c] sm:$0xf]  ;;  %v447_v40 = vld [vmem:[#allocation2 + $0x134] sm:$0x8]  ;;  %v5720_v55 = vrot.slane %v1417_v51, 5 }
 0x17f   :  { %7226 = vst [vmem:[#allocation48_spill] sm:$0xff] %v5713_v8  ;;  %v5718_v25 = vor.u32 %v7227_v60, %v5567_v38  ;;  %v5722_v44 = vrot.slane %v1426_v53, 5  ;;  %v5724_v57 = vrot.slane %v1867_v33, 11  ;;  %v5726_v3 = vrot.slane %v1880_v59, 11  ;;  %v277_v9 = vld [vmem:[%s7144_s2] sm:$0x1] }
 0x180   :  { %7228 = vst [vmem:[#allocation49_spill] sm:$0xff] %v5720_v55  ;;  %v5728_v21 = vrot.slane %v1435_v49, 5  ;;  %v5730_v58 = vrot.slane %v2346_v35, 5  ;;  %v5732_v5 = vrot.slane %v2355_v14, 5  ;;  %v448_v38 = vsel %vm5398_vm2, 0, %v447_v40 }
 0x181   :  { %7229 = vst [vmem:[#allocation50_spill] sm:$0xff] %v5722_v44  ;;  %7230 = vst [vmem:[#allocation51_spill] sm:$0xff] %v5724_v57  ;;  %v5745_v30 = vrot.slane %v2364_v37, 5  ;;  %v5747_v51 = vrot.slane %v2373_v23, 5  ;;  %v2382_v53 = vshll.u32 %v1663_v31, 16  ;;  %v2391_v14 = vshll.u32 %v1666_v36, 16 }
 0x182   :  { %7231 = vst [vmem:[#allocation52_spill] sm:$0xff] %v5726_v3  ;;  %7232 = vst [vmem:[#allocation53_spill] sm:$0xff] %v5728_v21  ;;  %v5749_v59 = vld [vmem:[#allocation2 + $0x124] sm:$0xf]  ;;  %v5753_v49 = vld [vmem:[#allocation2 + $0xbc] sm:$0xf] }
 0x183   :  { %7233 = vst [vmem:[#allocation54_spill] sm:$0xff] %v5730_v58  ;;  %7234 = vst [vmem:[#allocation55_spill] sm:$0xff] %v5732_v5  ;;  %v5755_v60 = vld [vmem:[#allocation2 + $0xcc] sm:$0xf]  ;;  %v5757_v40 = vld [vmem:[#allocation2 + $0xdc] sm:$0xf] }
 0x184   :  { %7237 = vst [vmem:[#allocation56_spill] sm:$0xff] %v5745_v30  ;;  %7238 = vst [vmem:[#allocation57_spill] sm:$0xff] %v5747_v51  ;;  %v5759_v5 = vld [vmem:[#allocation2 + $0xec] sm:$0xf]  ;;  %v7239_v31 = vshll.u32 %v5563_v34, 16  ;;  %v5777_v3 = vrot.slane %v2382_v53, 5 }
 0x185   :  { %449 = vst [vmem:[#allocation2 + $0x134] sm:$0x8] %v448_v38  ;;  %v5770_v38 = vld [vmem:[#allocation2 + $0x8c] sm:$0xf]  ;;  %v5772_v51 = vld [vmem:[#allocation2 + $0xfc] sm:$0xf] }
 0x186   :  { %v5768_v36 = vor.u32 %v7239_v31, %v5607_v19  ;;  %v5774_v30 = vld [vmem:[#allocation2 + $0x24] sm:$0xf]  ;;  %7240 = vst [vmem:[#allocation58_spill] sm:$0xff] %v5777_v3  ;;  %v5799_v31 = vld [vmem:[%s7145_s3] ss:$0 sm:$0xff] }
 0x187   :  { %v5170_v35 = vpop.eup %5169 }
 0x188   :  { %v358_v37 = vmul.f32 %v5170_v35, %v277_v9  ;;  %v5779_v9 = vrot.slane %v2391_v14, 5 }
 0x18a   :  { %7241 = vst [vmem:[#allocation59_spill] sm:$0xff] %v5779_v9  ;;  %v363_v23 = vrot.slane %v358_v37, %v5555_v24 }
 0x18c   :  { %v5791_v14 = vmul.f32 %v363_v23, %v5475_v16  ;;  %v366_v35 = vmul.f32 %v363_v23, %v5479_v17  ;;  %v367_v37 = vmul.f32 %v363_v23, %v5483_v18  ;;  %v368_v57 = vmul.f32 %v363_v23, %v5491_v22 }
 0x18d   :  { %v369_v8 = vmul.f32 %v363_v23, %v5495_v43  ;;  %v370_v58 = vmul.f32 %v363_v23, %v5503_v28  ;;  %v371_v53 = vmul.f32 %v363_v23, %v5515_v41  ;;  %v372_v16 = vmul.f32 %v363_v23, %v5523_v48 }
 0x18e   :  { %v373_v21 = vmul.f32 %v363_v23, %v5535_v63  ;;  %v374_v17 = vmul.f32 %v363_v23, %v5551_v13  ;;  %v375_v18 = vmul.f32 %v363_v23, %v5559_v32  ;;  %v376_v22 = vmul.f32 %v363_v23, %v5575_v46 }
 0x18f   :  { %v377_v19 = vmul.f32 %v363_v23, %v5586_v12  ;;  %v378_v24 = vmul.f32 %v363_v23, %v5599_v7  ;;  %v379_v43 = vmul.f32 %v363_v23, %v5611_v39  ;;  %v380_v28 = vmul.f32 %v363_v23, %v5625_v20 }
 0x190   :  { %v388_v41 = vadd.f32 %v5799_v31, %v366_v35  ;;  %v389_v48 = vadd.f32 %v5799_v31, %v367_v37  ;;  %v390_v63 = vadd.f32 %v5799_v31, %v368_v57  ;;  %v391_v13 = vadd.f32 %v5799_v31, %v369_v8 }
 0x191   :  { %v392_v32 = vadd.f32 %v5799_v31, %v370_v58  ;;  %v393_v46 = vadd.f32 %v5799_v31, %v371_v53  ;;  %v394_v12 = vadd.f32 %v5799_v31, %v372_v16  ;;  %v395_v7 = vadd.f32 %v5799_v31, %v373_v21 }
 0x192   :  { %v396_v39 = vadd.f32 %v5799_v31, %v374_v17  ;;  %v397_v20 = vadd.f32 %v5799_v31, %v375_v18  ;;  %v398_v23 = vadd.f32 %v5799_v31, %v376_v22  ;;  %v399_v35 = vadd.f32 %v5799_v31, %v377_v19 }
 0x193   :  { %v400_v8 = vadd.f32 %v5799_v31, %v378_v24  ;;  %v401_v57 = vadd.f32 %v5799_v31, %v379_v43  ;;  %v402_v58 = vadd.f32 %v5799_v31, %v380_v28  ;;  %v404_v53 = vmax.f32 %v388_v41, 0.0 }
 0x194   :  { %v405_v37 = vmax.f32 %v389_v48, 0.0  ;;  %v406_v16 = vmax.f32 %v390_v63, 0.0  ;;  %v407_v21 = vmax.f32 %v391_v13, 0.0  ;;  %v408_v9 = vmax.f32 %v392_v32, 0.0  ;;  %v1690_v48 = vld [vmem:[#allocation2 + $0x10c] sm:$0xf] }
 0x195   :  { %v409_v17 = vmax.f32 %v393_v46, 0.0  ;;  %v410_v3 = vmax.f32 %v394_v12, 0.0  ;;  %v411_v18 = vmax.f32 %v395_v7, 0.0  ;;  %v412_v44 = vmax.f32 %v396_v39, 0.0  ;;  %v2699_v63 = vld [vmem:[#allocation2 + $0x34] sm:$0xf] }
 0x196   :  { %v413_v22 = vmax.f32 %v397_v20, 0.0  ;;  %v414_v55 = vmax.f32 %v398_v23, 0.0  ;;  %v415_v19 = vmax.f32 %v399_v35, 0.0  ;;  %v416_v1 = vmax.f32 %v400_v8, 0.0  ;;  %v2702_v7 = vld [vmem:[#allocation2 + $0x44] sm:$0xf] }
 0x197   :  { %v417_v29 = vmax.f32 %v401_v57, 0.0  ;;  %v418_v6 = vmax.f32 %v402_v58, 0.0  ;;  %v4488_v24 = vpack.c.bf16 %v404_v53, %v404_v53  ;;  %v4489_v62 = vpack.c.bf16 %v405_v37, %v405_v37 }
 0x198   :  { %v4490_v43 = vpack.c.bf16 %v406_v16, %v406_v16  ;;  %v4491_v54 = vpack.c.bf16 %v407_v21, %v407_v21  ;;  %v4492_v28 = vpack.c.bf16 %v408_v9, %v408_v9  ;;  %v4493_v41 = vpack.c.bf16 %v409_v17, %v409_v17  ;;  %v2705_v21 = vld [vmem:[#allocation2 + $0x54] sm:$0xf] }
 0x199   :  { %v4494_v13 = vpack.c.bf16 %v410_v3, %v410_v3  ;;  %v4495_v32 = vpack.c.bf16 %v411_v18, %v411_v18  ;;  %v4496_v46 = vpack.c.bf16 %v412_v44, %v412_v44  ;;  %v4497_v12 = vpack.c.bf16 %v413_v22, %v413_v22  ;;  %616 = vst [vmem:[#allocation2 + $0x28] sm:$0xf] %v4488_v24 }
 0x19a   :  { %617 = vst [vmem:[#allocation2 + $0x38] sm:$0xf] %v4489_v62  ;;  %v4498_v39 = vpack.c.bf16 %v414_v55, %v414_v55  ;;  %v4499_v20 = vpack.c.bf16 %v415_v19, %v415_v19  ;;  %v4500_v23 = vpack.c.bf16 %v416_v1, %v416_v1  ;;  %v4501_v35 = vpack.c.bf16 %v417_v29, %v417_v29  ;;  %v1693_v62 = vld [vmem:[#allocation2 + $0x11c] sm:$0xf] }
 0x19b   :  { %618 = vst [vmem:[#allocation2 + $0x48] sm:$0xf] %v4490_v43  ;;  %619 = vst [vmem:[#allocation2 + $0x58] sm:$0xf] %v4491_v54  ;;  %v4502_v8 = vpack.c.bf16 %v418_v6, %v418_v6  ;;  %v387_v44 = vadd.f32 %v5799_v31, %v5791_v14  ;;  %v2463_v3 = vshll.u32 %v1690_v48, 16  ;;  %v2758_v9 = vshrl.u32 %v2699_v63, 16 }
 0x19c   :  { %620 = vst [vmem:[#allocation2 + $0x68] sm:$0xf] %v4492_v28  ;;  %621 = vst [vmem:[#allocation2 + $0x78] sm:$0xf] %v4493_v41  ;;  %v7242_v29 = vshrl.u32 %v5749_v59, 16  ;;  %v7243_v6 = vshll.u32 %v5751_v61, 16 }
 0x19d   :  { %622 = vst [vmem:[#allocation2 + $0x88] sm:$0xf] %v4494_v13  ;;  %623 = vst [vmem:[#allocation2 + $0xb8] sm:$0xf] %v4495_v32  ;;  %v7244_v55 = vshll.u32 %v5753_v49, 16  ;;  %v2771_v31 = vshrl.u32 %v2702_v7, 16 }
 0x19e   :  { %624 = vst [vmem:[#allocation2 + $0xc8] sm:$0xf] %v4496_v46  ;;  %625 = vst [vmem:[#allocation2 + $0xd8] sm:$0xf] %v4497_v12  ;;  %v5832_v54 = vrot.slane %v7242_v29, 11  ;;  %v5836_v1 = vrot.slane %v7243_v6, 5 }
 0x19f   :  { %626 = vst [vmem:[#allocation2 + $0xe8] sm:$0xf] %v4498_v39  ;;  %627 = vst [vmem:[#allocation2 + $0xf8] sm:$0xf] %v4499_v20  ;;  %v5840_v57 = vrot.slane %v7244_v55, 5  ;;  %v403_v14 = vmax.f32 %v387_v44, 0.0 }
 0x1a0   :  { %628 = vst [vmem:[#allocation2 + $0x108] sm:$0xf] %v4500_v23  ;;  %629 = vst [vmem:[#allocation2 + $0x118] sm:$0xf] %v4501_v35  ;;  %v7248_v59 = vshll.u32 %v5755_v60, 16  ;;  %v7250_v61 = vshll.u32 %v5757_v40, 16 }
 0x1a1   :  { %7245 = vst [vmem:[#allocation60_spill] sm:$0xff] %v5840_v57  ;;  %630 = vst [vmem:[#allocation2 + $0x128] sm:$0xf] %v4502_v8  ;;  %v7252_v49 = vshll.u32 %v5759_v5, 16  ;;  %v7254_v17 = vshll.u32 %v5770_v38, 16  ;;  %v7255_v22 = vshll.u32 %v5772_v51, 16  ;;  %v4487_v43 = vpack.c.bf16 %v403_v14, %v403_v14 }
 0x1a2   :  { %v5850_v53 = vrot.slane %v7248_v59, 5  ;;  %v5854_v37 = vrot.slane %v7250_v61, 5  ;;  %v7257_v60 = vshrl.u32 %v5774_v30, 16  ;;  %v2472_v40 = vshll.u32 %v1693_v62, 16  ;;  %v5880_v41 = vld [vmem:[#allocation2 + $0x12c] sm:$0xf] }
 0x1a3   :  { %v5858_v16 = vrot.slane %v7252_v49, 5  ;;  %v5862_v18 = vrot.slane %v7254_v17, 5  ;;  %v5866_v19 = vrot.slane %v7255_v22, 5  ;;  %v5876_v28 = vrot.slane %v2463_v3, 5  ;;  %v5882_v51 = vld [vmem:[#allocation2 + $0x64] sm:$0xf] }
 0x1a4   :  { %7249 = vst [vmem:[#allocation61_spill] sm:$0xff] %v5850_v53  ;;  %7251 = vst [vmem:[#allocation62_spill] sm:$0xff] %v5854_v37  ;;  %v5870_v24 = vrot.slane %v7257_v60, 11  ;;  %v5878_v38 = vrot.slane %v2758_v9, 11  ;;  %v638_v48 = vld [vmem:[#allocation2 + $0x28] sm:$0xf] }
 0x1a5   :  { %7253 = vst [vmem:[#allocation63_spill] sm:$0xff] %v5858_v16  ;;  %7256 = vst [vmem:[#allocation64_spill] sm:$0xff] %v5866_v19  ;;  %v641_v63 = vld [vmem:[#allocation2 + $0x38] sm:$0xf]  ;;  %v5892_v32 = vrot.slane %v2771_v31, 11  ;;  %v2784_v46 = vshrl.u32 %v2705_v21, 16 }
 0x1a6   :  { %7258 = vst [vmem:[#allocation65_spill] sm:$0xff] %v5870_v24  ;;  %7259 = vst [vmem:[#allocation66_spill] sm:$0xff] %v5876_v28  ;;  %v713_v12 = vshrl.u32 %v638_v48, 16  ;;  %v716_v7 = vshll.u32 %v638_v48, 16  ;;  %v726_v39 = vshrl.u32 %v641_v63, 16  ;;  %v729_v20 = vshll.u32 %v641_v63, 16 }
 0x1a7   :  { %7260 = vst [vmem:[#allocation67_spill] sm:$0xff] %v5878_v38  ;;  %7261 = vst [vmem:[#allocation68_spill] sm:$0xff] %v5892_v32  ;;  %v644_v23 = vld [vmem:[#allocation2 + $0x48] sm:$0xf]  ;;  %v5894_v35 = vld [vmem:[#allocation2 + $0x58] sm:$0xf] }
 0x1a8   :  { %615 = vst [vmem:[#allocation2 + $0x18] sm:$0xf] %v4487_v43  ;;  %v739_v8 = vshrl.u32 %v644_v23, 16  ;;  %v5896_v44 = vrot.slane %v2472_v40, 5  ;;  %v715_v62 = vrot.slane %v713_v12, 7  ;;  %v728_v29 = vrot.slane %v726_v39, 7 }
 0x1a9   :  { %v1313_v6 = vrot.slane %v713_v12, 4  ;;  %v1314_v55 = vrot.slane %v716_v7, 5  ;;  %v1322_v31 = vrot.slane %v726_v39, 4  ;;  %v1323_v14 = vrot.slane %v729_v20, 5  ;;  %v5901_v22 = vld [vmem:[#allocation2 + $0x68] sm:$0xf] }
 0x1aa   :  { %7262 = vst [vmem:[#allocation69_spill] sm:$0xff] %v5896_v44  ;;  %v742_v59 = vshll.u32 %v644_v23, 16  ;;  %v752_v61 = vshrl.u32 %v5894_v35, 16  ;;  %v718_v49 = vor.u32 %v716_v7, %v715_v62  ;;  %v731_v21 = vor.u32 %v729_v20, %v728_v29  ;;  %v5911_v5 = vld [vmem:[#allocation2 + $0x78] sm:$0xf]  ;;  %v5086_v24 = vld [vmem:[#allocation8 + $0xa8] sm:$0xff]  }
 0x1ab   :  { %v1315_v17 = vor.u32 %v1314_v55, %v1313_v6  ;;  %v5903_v60 = vrot.slane %v2784_v46, 11  ;;  %v4302_v40 = vcombine.low %v638_v48, %v641_v63  ;;  %v1324_v43 = vor.u32 %v1323_v14, %v1322_v31  ;;  %v5930_v44 = vld [vmem:[#allocation2 + $0xb8] sm:$0xf]  ;;  %v7269_v16 = vld [vmem:[#allocation21_spill] sm:$0xff] }
 0x1ac   :  { %v741_v3 = vrot.slane %v739_v8, 7  ;;  %v755_v9 = vshll.u32 %v5894_v35, 16  ;;  %v754_v12 = vrot.slane %v752_v61, 7  ;;  %v4303_v39 = vcombine.low %v644_v23, %v5894_v35  ;;  %v5175_v38 = vld [vmem:[#allocation8 + $0xb8] sm:$0xff]  }
 0x1ad   :  { %7263 = vst [vmem:[#allocation70_spill] sm:$0xff] %v5903_v60  ;;  %v5906_v13 = vrot.slane %v1315_v17, 4  ;;  %v5909_v30 = vrot.slane %v739_v8, 4  ;;  %v5913_v20 = vrot.slane %v742_v59, 5  ;;  %v5915_v62 = vrot.slane %v752_v61, 4  ;;  %v5085_v8 = vld [vmem:[#allocation8 + $0xb0] sm:$0xff]  }
 0x1ae   :  { %v719_v48 = vsel %vm5741_vm7, %v5581_v45, %v718_v49  ;;  %v765_v63 = vshrl.u32 %v5901_v22, 16  ;;  %v732_v23 = vsel %vm5741_vm7, %v5592_v2, %v731_v21  ;;  %v5925_v35 = vrot.slane %v755_v9, 5 }
 0x1af   :  { %v635_v7 = vld [vmem:[#allocation2 + $0x18] sm:$0xf]  ;;  %v768_v31 = vshll.u32 %v5901_v22, 16  ;;  %v778_v14 = vshrl.u32 %v5911_v5, 16  ;;  %v781_v17 = vshll.u32 %v5911_v5, 16  ;;  %v4318_v2 = vcombine.low %v719_v48, %v732_v23 }
 0x1b0   :  { %v700_v46 = vshrl.u32 %v635_v7, 16  ;;  %v703_v29 = vshll.u32 %v635_v7, 16  ;;  %v4301_v6 = vcombine.low %v5499_v26, %v635_v7  ;;  %v767_v55 = vrot.slane %v765_v63, 7 }
 0x1b1   :  { %v5932_v26 = vrot.slane %v1324_v43, 4  ;;  %v780_v21 = vrot.slane %v778_v14, 7  ;;  %v4304_v7 = vcombine.low %v5901_v22, %v5911_v5  ;;  %v5938_v28 = vrot.slane %v768_v31, 5 }
 0x1b2   :  { %v702_v61 = vrot.slane %v700_v46, 7  ;;  %4727 = vmatprep.mubr.bf16.mxu1 %v4301_v6  ;;  %v1304_v45 = vrot.slane %v700_v46, 4  ;;  %v1305_v49 = vrot.slane %v703_v29, 5  ;;  %v5936_v6 = vrot.slane %v765_v63, 4 }
 0x1b3   :  { %4728 = vmatmul.mubr.bf16.vlgmr.msra.gmra.mxu1 %v4302_v40  ;;  %v744_v46 = vor.u32 %v742_v59, %v741_v3  ;;  %v5940_v40 = vrot.slane %v778_v14, 4  ;;  %v757_v43 = vor.u32 %v755_v9, %v754_v12  ;;  %v804_v48 = vshrl.u32 %v5930_v44, 16  ;;  %v5951_v59 = vld [vmem:[#allocation2 + $0xc8] sm:$0xf] }
 0x1b4   :  { %v705_v60 = vor.u32 %v703_v29, %v702_v61  ;;  %v1306_v32 = vor.u32 %v1305_v49, %v1304_v45  ;;  %4776 = vmatpush3.bf16.msra.mxu1 %v5175_v38  ;;  %4731 = vmatprep.mubr.bf16.mxu1 %v4303_v39  ;;  %v5946_v22 = vrot.slane %v781_v17, 5  ;;  %v770_v3 = vor.u32 %v768_v31, %v767_v55  ;;  %v5953_v39 = vld [vmem:[#allocation2 + $0xd8] sm:$0xf]  ;;  %v5968_v31 = vld [vmem:[#allocation2 + $0xe8] sm:$0xf] }
 0x1b5   :  { %4777 = vmatprep.subr.bf16.mxu1 %v5085_v8  ;;  %v745_v38 = vsel %vm5741_vm7, %v5603_v10, %v744_v46  ;;  %v7264_v9 = vsel %vm5741_vm7, %v5569_v42, %v5718_v25  ;;  %v807_v63 = vshll.u32 %v5930_v44, 16  ;;  %v4305_v23 = vcombine.low %v5563_v34, %v5930_v44  ;;  %v5090_v42 = vld [vmem:[#allocation8 + $0xa0] sm:$0xff]   ;;  %v7265_v25 = vld [vmem:[#allocation18_spill] sm:$0xff]  ;;  %v7266_v44 = vld [vmem:[#allocation19_spill] sm:$0xff] }
 0x1b6   :  { %v706_v5 = vsel %vm5741_vm7, %v5579_v52, %v705_v60  ;;  %v758_v52 = vsel %vm5741_vm7, %v5605_v11, %v757_v43  ;;  %v806_v60 = vrot.slane %v804_v48, 7  ;;  %v5964_v29 = vrot.slane %v1306_v32, 4  ;;  %v5091_v34 = vld [vmem:[#allocation8 + $0xf0] sm:$0xff]  }
 0x1b7   :  { %v4317_v12 = vcombine.low %v7264_v9, %v706_v5  ;;  %v4319_v10 = vcombine.low %v745_v38, %v758_v52  ;;  %v783_v55 = vor.u32 %v781_v17, %v780_v21  ;;  %v771_v11 = vsel %vm5741_vm7, %v7265_v25, %v770_v3  ;;  %v5982_v21 = vld [vmem:[#allocation2 + $0xf8] sm:$0xf]  ;;  %v5093_v9 = vld [vmem:[#allocation8 + $0xe8] sm:$0xff]  }
 0x1b8   :  { %4778 = vmatpush3.bf16.msra.mxu1 %v5085_v8  ;;  %v817_v14 = vshrl.u32 %v5951_v59, 16  ;;  %v820_v32 = vshll.u32 %v5951_v59, 16  ;;  %v830_v8 = vshrl.u32 %v5953_v39, 16  ;;  %v5976_v61 = vrot.slane %v804_v48, 4  ;;  %v5176_v48 = vld [vmem:[#allocation8 + $0xf8] sm:$0xff]  }
 0x1b9   :  { %4759 = vmatprep.mubr.bf16.mxu0 %v4317_v12  ;;  %4779 = vmatprep.subr.bf16.mxu1 %v5086_v24  ;;  %v784_v45 = vsel %vm5741_vm7, %v7266_v44, %v783_v55  ;;  %v833_v49 = vshll.u32 %v5953_v39, 16  ;;  %v809_v17 = vor.u32 %v807_v63, %v806_v60  ;;  %v5984_v46 = vrot.slane %v807_v63, 5  ;;  %v5092_v3 = vld [vmem:[#allocation8 + $0x98] sm:$0xff]   ;;  %v7267_v60 = vld [vmem:[#allocation20_spill] sm:$0xff]  ;;  %v6000_v25 = vld [vmem:[#allocation2 + $0x108] sm:$0xf] }
 0x1ba   :  { %4760 = vmatmul.mubr.bf16.vlgmr.msra.gmra.mxu0 %v4318_v2  ;;  %v819_v43 = vrot.slane %v817_v14, 7  ;;  %v832_v5 = vrot.slane %v830_v8, 7  ;;  %v843_v2 = vshrl.u32 %v5968_v31, 16  ;;  %v4320_v38 = vcombine.low %v771_v11, %v784_v45 }
 0x1bb   :  { %4732 = vmatmul.mubr.bf16.gmra.mxu1 %v4304_v7  ;;  %4763 = vmatprep.mubr.bf16.mxu0 %v4319_v10  ;;  %v4306_v12 = vcombine.low %v5951_v59, %v5953_v39  ;;  %v5989_v52 = vrot.slane %v817_v14, 4  ;;  %v810_v7 = vsel %vm5741_vm7, %v7267_v60, %v809_v17  ;;  %v5994_v63 = vrot.slane %v820_v32, 5 }
 0x1bc   :  { %4780 = vmatpush3.bf16.msra.mxu1 %v5086_v24  ;;  %4808 = vmatpush3.bf16.msra.mxu0 %v5176_v48  ;;  %v5996_v10 = vrot.slane %v830_v8, 4  ;;  %v846_v24 = vshll.u32 %v5968_v31, 16  ;;  %v856_v55 = vshrl.u32 %v5982_v21, 16  ;;  %v6002_v59 = vrot.slane %v833_v49, 5  ;;  %v6010_v8 = vld [vmem:[#allocation2 + $0x118] sm:$0xf] }
 0x1bd   :  { %4735 = vmatprep.mubr.bf16.mxu1 %v4305_v23  ;;  %4781 = vmatprep.subr.bf16.mxu1 %v5090_v42  ;;  %v7268_v39 = vsel %vm5741_vm7, %v5635_v27, %v5768_v36  ;;  %v859_v11 = vshll.u32 %v5982_v21, 16  ;;  %v822_v14 = vor.u32 %v820_v32, %v819_v43  ;;  %v845_v44 = vrot.slane %v843_v2, 7  ;;  %v5096_v43 = vld [vmem:[#allocation8 + $0x90] sm:$0xff]  }
 0x1be   :  { %4809 = vmatprep.subr.bf16.mxu0 %v5091_v34  ;;  %v4321_v23 = vcombine.low %v7268_v39, %v810_v7  ;;  %v4307_v45 = vcombine.low %v5968_v31, %v5982_v21  ;;  %v6014_v17 = vrot.slane %v843_v2, 4  ;;  %v835_v48 = vor.u32 %v833_v49, %v832_v5  ;;  %v7270_v31 = vld [vmem:[#allocation22_spill] sm:$0xff]  ;;  %v6029_v21 = vld [vmem:[#allocation2 + $0x18] sm:$0xf] }
 0x1bf   :  { %v858_v60 = vrot.slane %v856_v55, 7  ;;  %v6016_v19 = vrot.slane %v846_v24, 5  ;;  %v823_v27 = vsel %vm5741_vm7, %v7269_v16, %v822_v14  ;;  %v869_v36 = vshrl.u32 %v6000_v25, 16  ;;  %v5097_v16 = vld [vmem:[#allocation8 + $0xe0] sm:$0xff]  }
 0x1c0   :  { %4782 = vmatpush3.bf16.msra.mxu1 %v5090_v42  ;;  %4810 = vmatpush3.bf16.msra.mxu0 %v5091_v34  ;;  %v6022_v32 = vrot.slane %v856_v55, 4  ;;  %v836_v49 = vsel %vm5741_vm7, %v7270_v31, %v835_v48  ;;  %v872_v42 = vshll.u32 %v6000_v25, 16  ;;  %v882_v34 = vshrl.u32 %v6010_v8, 16 }
 0x1c1   :  { %4783 = vmatprep.subr.bf16.mxu1 %v5092_v3  ;;  %4811 = vmatprep.subr.bf16.mxu0 %v5093_v9  ;;  %v6031_v5 = vrot.slane %v859_v11, 5  ;;  %v871_v2 = vrot.slane %v869_v36, 7  ;;  %v4308_v55 = vcombine.low %v6000_v25, %v6010_v8  ;;  %v4322_v39 = vcombine.low %v823_v27, %v836_v49  ;;  %v5099_v25 = vld [vmem:[#allocation8 + $0xd8] sm:$0xff]   ;;  %v7276_v49 = vld [vmem:[#allocation26_spill] sm:$0xff] }
 0x1c2   :  { %4764 = vmatmul.mubr.bf16.gmra.mxu0 %v4320_v38  ;;  %v884_v14 = vrot.slane %v882_v34, 7  ;;  %v6036_v48 = vrot.slane %v869_v36, 4  ;;  %v848_v31 = vor.u32 %v846_v24, %v845_v44  ;;  %v861_v37 = vor.u32 %v859_v11, %v858_v60  ;;  %v7271_v38 = vld [vmem:[#allocation25_spill] sm:$0xff]  ;;  %v7274_v44 = vld [vmem:[#allocation24_spill] sm:$0xff] }
 0x1c3   :  { %4736 = vmatmul.mubr.bf16.gmra.mxu1 %v4306_v12  ;;  %4767 = vmatprep.mubr.bf16.mxu0 %v4321_v23  ;;  %v1312_v53 = vsel %vm5844_vm10, %v5964_v29, %v7271_v38  ;;  %v6042_v57 = vor.u32 %v872_v42, %v871_v2  ;;  %v1703_v7 = vshrl.u32 %v6029_v21, 16  ;;  %v5098_v12 = vld [vmem:[#allocation8 + $0x88] sm:$0xff]   ;;  %v6045_v23 = vrot.slane %v872_v42, 5  ;;  %v6069_v2 = vld [vmem:[#allocation2 + $0x38] sm:$0xf] }
 0x1c4   :  { %4784 = vmatpush3.bf16.msra.mxu1 %v5092_v3  ;;  %4812 = vmatpush3.bf16.msra.mxu0 %v5093_v9  ;;  %v6047_v27 = vrot.slane %v882_v34, 4  ;;  %v7272_v3 = vld [vmem:[#allocation23_spill] sm:$0xff]  ;;  %v7273_v24 = vshll.u32 %v6010_v8, 16  ;;  %v6054_v29 = vld [vmem:[#allocation2 + $0x28] sm:$0xf]  ;;  %v7275_v60 = vsel %vm5844_vm10, %v5590_v0, %v5649_v47  ;;  %v1706_v34 = vshll.u32 %v6029_v21, 16 }
 0x1c5   :  { %4739 = vmatprep.mubr.bf16.mxu1 %v4307_v45  ;;  %4785 = vmatprep.subr.bf16.mxu1 %v5096_v43  ;;  %v849_v9 = vsel %vm5741_vm7, %v7272_v3, %v848_v31  ;;  %v862_v45 = vsel %vm5741_vm7, %v7274_v44, %v861_v37  ;;  %v4333_v36 = vcombine.low %v7275_v60, %v1312_v53  ;;  %v7277_v31 = vld [vmem:[#allocation28_spill] sm:$0xff]  ;;  %v7278_v38 = vld [vmem:[#allocation29_spill] sm:$0xff]  ;;  %v1705_v47 = vrot.slane %v1703_v7, 7  ;;  %v5102_v44 = vld [vmem:[#allocation8 + $0xd0] sm:$0xff]  }
 0x1c6   :  { %v887_v11 = vor.u32 %v7273_v24, %v884_v14  ;;  %4813 = vmatprep.subr.bf16.mxu0 %v5097_v16  ;;  %v875_v42 = vsel %vm5741_vm7, %v7276_v49, %v6042_v57  ;;  %v4323_v14 = vcombine.low %v849_v9, %v862_v45  ;;  %v1321_v37 = vsel %vm5844_vm10, %v5906_v13, %v7277_v31  ;;  %v6081_v53 = vld [vmem:[#allocation2 + $0x48] sm:$0xf]  ;;  %v7279_v57 = vld [vmem:[#allocation27_spill] sm:$0xff] }
 0x1c7   :  { %v1330_v0 = vsel %vm5844_vm10, %v5932_v26, %v7278_v38  ;;  %v1716_v9 = vshrl.u32 %v6054_v29, 16  ;;  %v1719_v13 = vshll.u32 %v6054_v29, 16  ;;  %v1333_v24 = vor.u32 %v5913_v20, %v5909_v30  ;;  %v5101_v26 = vld [vmem:[#allocation8 + $0x80] sm:$0xff]   ;;  %v6100_v31 = vld [vmem:[#allocation2 + $0x58] sm:$0xf]  ;;  %v7280_v38 = vld [vmem:[#allocation30_spill] sm:$0xff] }
 0x1c8   :  { %4786 = vmatpush3.bf16.msra.mxu1 %v5096_v43  ;;  %4814 = vmatpush3.bf16.msra.mxu0 %v5097_v16  ;;  %v888_v3 = vsel %vm5741_vm7, %v7279_v57, %v887_v11  ;;  %v1708_v45 = vor.u32 %v1706_v34, %v1705_v47  ;;  %v1342_v43 = vor.u32 %v5925_v35, %v5915_v62  ;;  %v1729_v16 = vshrl.u32 %v6069_v2, 16 }
 0x1c9   :  { %4787 = vmatprep.subr.bf16.mxu1 %v5098_v12  ;;  %4815 = vmatprep.subr.bf16.mxu0 %v5099_v25  ;;  %v1732_v11 = vshll.u32 %v6069_v2, 16  ;;  %v1718_v60 = vrot.slane %v1716_v9, 7  ;;  %v1334_v49 = vrot.slane %v1333_v24, 4  ;;  %v7159_v30 = vshrl.u32 %v6081_v53, 16 }
 0x1ca   :  { %4768 = vmatmul.mubr.bf16.gmra.mxu0 %v4322_v39  ;;  %v1745_v20 = vshll.u32 %v6081_v53, 16  ;;  %v1709_v62 = vsel %vm5741_vm7, %v7280_v38, %v1708_v45  ;;  %v1343_v35 = vrot.slane %v1342_v43, 4  ;;  %v1731_v39 = vrot.slane %v1729_v16, 7  ;;  %v5103_v45 = vld [vmem:[#allocation8 + $0xc8] sm:$0xff]   ;;  %v5104_v43 = vld [vmem:[#allocation8 + $0x138] sm:$0xff]  }
 0x1cb   :  { %4740 = vmatmul.mubr.bf16.gmra.mxu1 %v4308_v55  ;;  %4771 = vmatprep.mubr.bf16.mxu0 %v4323_v14  ;;  %v1351_v47 = vor.u32 %v5938_v28, %v5936_v6  ;;  %v1721_v57 = vor.u32 %v1719_v13, %v1718_v60  ;;  %v1339_v55 = vsel %vm5844_vm10, %v1334_v49, %v5687_v50  ;;  %v1744_v14 = vrot.slane %v7159_v30, 7  ;;  %v7281_v49 = vld [vmem:[#allocation31_spill] sm:$0xff]  ;;  %v7282_v30 = vld [vmem:[#allocation32_spill] sm:$0xff] }
 0x1cc   :  { %4788 = vmatpush3.bf16.msra.mxu1 %v5098_v12  ;;  %4816 = vmatpush3.bf16.msra.mxu0 %v5099_v25  ;;  %v1360_v24 = vor.u32 %v5946_v22, %v5940_v40  ;;  %v1348_v28 = vsel %vm5844_vm10, %v1343_v35, %v5689_v4  ;;  %v1734_v6 = vor.u32 %v1732_v11, %v1731_v39  ;;  %v6123_v25 = vld [vmem:[#allocation2 + $0x68] sm:$0xf]  ;;  %v1755_v50 = vshrl.u32 %v6100_v31, 16 }
 0x1cd   :  { %4791 = vmatprep.mubr.bf16.mxu1 %v4333_v36  ;;  %4789 = vmatprep.subr.bf16.mxu1 %v5101_v26  ;;  %v1352_v12 = vrot.slane %v1351_v47, 4  ;;  %v4334_v60 = vcombine.low %v1321_v37, %v1330_v0  ;;  %v1722_v40 = vsel %vm5741_vm7, %v7281_v49, %v1721_v57  ;;  %v1747_v22 = vor.u32 %v1745_v20, %v1744_v14  ;;  %v6133_v47 = vld [vmem:[#allocation2 + $0x78] sm:$0xf] }
 0x1ce   :  { %4817 = vmatprep.subr.bf16.mxu0 %v5102_v44  ;;  %v1361_v36 = vrot.slane %v1360_v24, 4  ;;  %v4324_v38 = vcombine.low %v875_v42, %v888_v3  ;;  %v4365_v4 = vcombine.low %v1709_v62, %v1722_v40  ;;  %v4335_v35 = vcombine.low %v1339_v55, %v1348_v28  ;;  %v7283_v0 = vld [vmem:[#allocation39_spill] sm:$0xff]  ;;  %v6143_v3 = vld [vmem:[#allocation2 + $0x88] sm:$0xf]  ;;  %v5105_v62 = vld [vmem:[#allocation8 + $0xc0] sm:$0xff]  }
 0x1cf   :  { %v1757_v39 = vrot.slane %v1755_v50, 7  ;;  %v1735_v37 = vsel %vm5741_vm7, %v7282_v30, %v1734_v6  ;;  %v1357_v57 = vsel %vm5844_vm10, %v1352_v12, %v7283_v0  ;;  %v1758_v14 = vshll.u32 %v6100_v31, 16  ;;  %v7284_v55 = vld [vmem:[#allocation33_spill] sm:$0xff]  ;;  %v5106_v6 = vld [vmem:[#allocation8 + $0x130] sm:$0xff]   ;;  %v6160_v0 = vld [vmem:[#allocation2 + $0xb8] sm:$0xf] }
 0x1d0   :  { %4790 = vmatpush3.bf16.msra.mxu1 %v5101_v26  ;;  %4818 = vmatpush3.bf16.msra.mxu0 %v5102_v44  ;;  %v7160_v42 = vshrl.u32 %v6123_v25, 16  ;;  %v1748_v26 = vsel %vm5741_vm7, %v7284_v55, %v1747_v22  ;;  %v7285_v44 = vld [vmem:[#allocation42_spill] sm:$0xff]  ;;  %v7162_v24 = vshll.u32 %v6123_v25, 16  ;;  %v1378_v28 = vor.u32 %v5984_v46, %v5976_v61 }
 0x1d1   :  { %4819 = vmatprep.subr.bf16.mxu0 %v5103_v45  ;;  %4839 = vmatprep.subr.bf16.mxu1 %v5104_v43  ;;  %v1366_v30 = vsel %vm5844_vm10, %v1361_v36, %v7285_v44  ;;  %v1760_v12 = vor.u32 %v1758_v14, %v1757_v39  ;;  %v7161_v40 = vshrl.u32 %v6133_v47, 16  ;;  %v1784_v22 = vshll.u32 %v6133_v47, 16  ;;  %v7286_v39 = vld [vmem:[#allocation34_spill] sm:$0xff] }
 0x1d2   :  { %4772 = vmatmul.mubr.bf16.gmra.mxu0 %v4324_v38  ;;  %v1770_v49 = vrot.slane %v7160_v42, 7  ;;  %v1379_v36 = vrot.slane %v1378_v28, 4  ;;  %v1794_v55 = vshrl.u32 %v6143_v3, 16  ;;  %v1797_v61 = vshll.u32 %v6143_v3, 16  ;;  %v5107_v38 = vld [vmem:[#allocation8 + $0x128] sm:$0xff]   ;;  %v5108_v28 = vld [vmem:[#allocation8 + $0x178] sm:$0xff]  }
 0x1d3   :  { %4792 = vmatmul.mubr.bf16.vlgmr.msra.gmra.mxu1 %v4334_v60  ;;  %4823 = vmatprep.mubr.bf16.mxu0 %v4365_v4  ;;  %v1387_v46 = vor.u32 %v5994_v63, %v5989_v52  ;;  %v1761_v44 = vsel %vm5741_vm7, %v7286_v39, %v1760_v12  ;;  %v1783_v60 = vrot.slane %v7161_v40, 7  ;;  %v1396_v4 = vor.u32 %v6002_v59, %v5996_v10  ;;  %v7287_v52 = vld [vmem:[#allocation43_spill] sm:$0xff]  ;;  %v6180_v12 = vld [vmem:[#allocation2 + $0xc8] sm:$0xf] }
 0x1d4   :  { %4820 = vmatpush3.bf16.msra.mxu0 %v5103_v45  ;;  %4840 = vmatpush3.bf16.msra.mxu1 %v5104_v43  ;;  %v1773_v42 = vor.u32 %v7162_v24, %v1770_v49  ;;  %v1384_v63 = vsel %vm5844_vm10, %v1379_v36, %v7287_v52  ;;  %v1796_v45 = vrot.slane %v1794_v55, 7  ;;  %v1807_v49 = vshrl.u32 %v6160_v0, 16  ;;  %v7288_v40 = vld [vmem:[#allocation35_spill] sm:$0xff] }
 0x1d5   :  { %4795 = vmatprep.mubr.bf16.mxu1 %v4335_v35  ;;  %4821 = vmatprep.subr.bf16.mxu0 %v5105_v62  ;;  %v1388_v43 = vrot.slane %v1387_v46, 4  ;;  %v4366_v39 = vcombine.low %v1735_v37, %v1748_v26  ;;  %v1786_v59 = vor.u32 %v1784_v22, %v1783_v60  ;;  %v1397_v35 = vrot.slane %v1396_v4, 4  ;;  %v7290_v26 = vld [vmem:[#allocation45_spill] sm:$0xff]  ;;  %v6202_v60 = vld [vmem:[#allocation2 + $0xd8] sm:$0xf] }
 0x1d6   :  { %4841 = vmatprep.subr.bf16.mxu1 %v5106_v6  ;;  %v1774_v10 = vsel %vm5741_vm7, %v7288_v40, %v1773_v42  ;;  %v4336_v24 = vcombine.low %v1357_v57, %v1366_v30  ;;  %v7289_v36 = vsel %vm5844_vm10, %v5679_v15, %v5699_v56  ;;  %v1799_v52 = vor.u32 %v1797_v61, %v1796_v45  ;;  %v6204_v15 = vld [vmem:[#allocation2 + $0xe8] sm:$0xf] }
 0x1d7   :  { %v4337_v46 = vcombine.low %v7289_v36, %v1384_v63  ;;  %v1809_v37 = vrot.slane %v1807_v49, 7  ;;  %v4367_v42 = vcombine.low %v1761_v44, %v1774_v10  ;;  %v1393_v40 = vsel %vm5844_vm10, %v1388_v43, %v7290_v26  ;;  %v7293_v44 = vld [vmem:[#allocation46_spill] sm:$0xff]  ;;  %v5109_v43 = vld [vmem:[#allocation8 + $0x120] sm:$0xff]  }
 0x1d8   :  { %4822 = vmatpush3.bf16.msra.mxu0 %v5105_v62  ;;  %4842 = vmatpush3.bf16.msra.mxu1 %v5106_v6  ;;  %v1810_v57 = vshll.u32 %v6160_v0, 16  ;;  %v7163_v30 = vshrl.u32 %v6180_v12, 16  ;;  %v7291_v56 = vshll.u32 %v6010_v8, 16  ;;  %v7292_v62 = vld [vmem:[#allocation36_spill] sm:$0xff]  ;;  %v1402_v63 = vsel %vm5844_vm10, %v1397_v35, %v7293_v44  ;;  %v5110_v10 = vld [vmem:[#allocation8 + $0x170] sm:$0xff]  }
 0x1d9   :  { %4843 = vmatprep.subr.bf16.mxu1 %v5107_v38  ;;  %4871 = vmatprep.subr.bf16.mxu0 %v5108_v28  ;;  %v1787_v6 = vsel %vm5741_vm7, %v7292_v62, %v1786_v59  ;;  %v1405_v45 = vor.u32 %v6016_v19, %v6014_v17  ;;  %v7166_v26 = vshll.u32 %v6180_v12, 16  ;;  %v1414_v59 = vor.u32 %v6031_v5, %v6022_v32 }
 0x1da   :  { %v1431_v4 = vrot.slane %v7291_v56, 5  ;;  %v1812_v36 = vor.u32 %v1810_v57, %v1809_v37  ;;  %v1822_v8 = vrot.slane %v7163_v30, 7  ;;  %v7294_v56 = vld [vmem:[#allocation44_spill] sm:$0xff]  ;;  %v7165_v17 = vshrl.u32 %v6202_v60, 16  ;;  %v6228_v37 = vld [vmem:[#allocation2 + $0xf8] sm:$0xf] }
 0x1db   :  { %4824 = vmatmul.mubr.bf16.vlgmr.msra.gmra.mxu0 %v4366_v39  ;;  %4796 = vmatmul.mubr.bf16.gmra.mxu1 %v4336_v24  ;;  %v1800_v35 = vsel %vm5741_vm7, %v7294_v56, %v1799_v52  ;;  %v1406_v19 = vrot.slane %v1405_v45, 4  ;;  %v7164_v62 = vshrl.u32 %v6204_v15, 16  ;;  %v4338_v44 = vcombine.low %v1393_v40, %v1402_v63  ;;  %v5111_v24 = vld [vmem:[#allocation8 + $0x118] sm:$0xff]   ;;  %v7295_v40 = vld [vmem:[#allocation37_spill] sm:$0xff] }
 0x1dc   :  { %4827 = vmatprep.mubr.bf16.mxu0 %v4367_v42  ;;  %4844 = vmatpush3.bf16.msra.mxu1 %v5107_v38  ;;  %v1825_v30 = vor.u32 %v7166_v26, %v1822_v8  ;;  %v1415_v32 = vrot.slane %v1414_v59, 4  ;;  %v7169_v5 = vshll.u32 %v6202_v60, 16  ;;  %v1835_v39 = vrot.slane %v7165_v17, 7  ;;  %v5112_v42 = vld [vmem:[#allocation8 + $0x168] sm:$0xff]  }
 0x1dd   :  { %4872 = vmatpush3.bf16.msra.mxu0 %v5108_v28  ;;  %4799 = vmatprep.mubr.bf16.mxu1 %v4337_v46  ;;  %v1848_v52 = vrot.slane %v7164_v62, 7  ;;  %v7168_v45 = vshll.u32 %v6204_v15, 16  ;;  %v1423_v38 = vor.u32 %v6045_v23, %v6036_v48  ;;  %v1813_v28 = vsel %vm5741_vm7, %v7295_v40, %v1812_v36  ;;  %v7296_v46 = vld [vmem:[#allocation47_spill] sm:$0xff]  ;;  %v6247_v59 = vld [vmem:[#allocation2 + $0x108] sm:$0xf]  ;;  %v7297_v62 = vld [vmem:[#allocation38_spill] sm:$0xff] }
 0x1de   :  { %4845 = vmatprep.subr.bf16.mxu1 %v5109_v43  ;;  %4873 = vmatprep.subr.bf16.mxu0 %v5110_v10  ;;  %v1411_v63 = vsel %vm5844_vm10, %v1406_v19, %v7296_v46  ;;  %v1432_v8 = vor.u32 %v1431_v4, %v6047_v27  ;;  %v7167_v56 = vshrl.u32 %v6228_v37, 16  ;;  %v1826_v48 = vsel %vm5741_vm7, %v7297_v62, %v1825_v30  ;;  %v7298_v23 = vld [vmem:[#allocation49_spill] sm:$0xff]  ;;  %v6260_v40 = vld [vmem:[#allocation2 + $0x74] sm:$0xf]  ;;  %v6264_v30 = vld [vmem:[#allocation2 + $0x118] sm:$0xf] }
 0x1df   :  { %v1420_v17 = vsel %vm5844_vm10, %v1415_v32, %v7298_v23  ;;  %v1838_v36 = vor.u32 %v7169_v5, %v1835_v39  ;;  %v1851_v19 = vor.u32 %v7168_v45, %v1848_v52  ;;  %v4368_v27 = vcombine.low %v1787_v6, %v1800_v35  ;;  %v7299_v62 = vld [vmem:[#allocation40_spill] sm:$0xff]  ;;  %v7300_v39 = vld [vmem:[#allocation41_spill] sm:$0xff]  ;;  %v5113_v23 = vld [vmem:[#allocation8 + $0x110] sm:$0xff]  }
 0x1e0   :  { %4846 = vmatpush3.bf16.msra.mxu1 %v5109_v43  ;;  %v1424_v4 = vrot.slane %v1423_v38, 4  ;;  %v1433_v46 = vrot.slane %v1432_v8, 4  ;;  %v1861_v26 = vrot.slane %v7167_v56, 7  ;;  %v1862_v43 = vshll.u32 %v6228_v37, 16  ;;  %v6274_v35 = vld [vmem:[#allocation2 + $0x128] sm:$0xf] }
 0x1e1   :  { %4874 = vmatpush3.bf16.msra.mxu0 %v5110_v10  ;;  %4847 = vmatprep.subr.bf16.mxu1 %v5111_v24  ;;  %v1839_v32 = vsel %vm5741_vm7, %v7299_v62, %v1838_v36  ;;  %v1852_v52 = vsel %vm5741_vm7, %v7300_v39, %v1851_v19  ;;  %v1872_v6 = vshrl.u32 %v6247_v59, 16  ;;  %v6276_v38 = vld [vmem:[#allocation2 + $0x98] sm:$0xf]  ;;  %v4369_v8 = vcombine.low %v1813_v28, %v1826_v48  ;;  %v5114_v56 = vld [vmem:[#allocation8 + $0x160] sm:$0xff]   ;;  %v7303_v48 = vld [vmem:[#allocation53_spill] sm:$0xff] }
 0x1e2   :  { %4875 = vmatprep.subr.bf16.mxu0 %v5112_v42  ;;  %v4339_v10 = vcombine.low %v1411_v63, %v1420_v17  ;;  %v7301_v45 = vshrl.u32 %v5882_v51, 16  ;;  %v2810_v62 = vshrl.u32 %v6260_v40, 16  ;;  %v1864_v19 = vor.u32 %v1862_v43, %v1861_v26  ;;  %v7302_v51 = vld [vmem:[#allocation50_spill] sm:$0xff]  ;;  %v5115_v26 = vld [vmem:[#allocation8 + $0x108] sm:$0xff]  }
 0x1e3   :  { %4828 = vmatmul.mubr.bf16.gmra.mxu0 %v4368_v27  ;;  %4800 = vmatmul.mubr.bf16.gmra.mxu1 %v4338_v44  ;;  %v1874_v39 = vrot.slane %v1872_v6, 7  ;;  %v7172_v5 = vshll.u32 %v6247_v59, 16  ;;  %v7171_v17 = vshrl.u32 %v6264_v30, 16  ;;  %v4370_v28 = vcombine.low %v1839_v32, %v1852_v52  ;;  %v5116_v32 = vld [vmem:[#allocation8 + $0x158] sm:$0xff]  }
 0x1e4   :  { %v6280_v36 = vrot.slane %v7301_v45, 11  ;;  %4831 = vmatprep.mubr.bf16.mxu0 %v4369_v8  ;;  %4848 = vmatpush3.bf16.msra.mxu1 %v5111_v24  ;;  %v1429_v45 = vsel %vm5844_vm10, %v1424_v4, %v7302_v51  ;;  %v7170_v63 = vshrl.u32 %v6274_v35, 16  ;;  %v7174_v44 = vshrl.u32 %v6276_v38, 16 }
 0x1e5   :  { %4876 = vmatpush3.bf16.msra.mxu0 %v5112_v42  ;;  %4803 = vmatprep.mubr.bf16.mxu1 %v4339_v10  ;;  %v1438_v40 = vsel %vm5844_vm10, %v1433_v46, %v7303_v48  ;;  %v1877_v27 = vor.u32 %v7172_v5, %v1874_v39  ;;  %v1887_v24 = vrot.slane %v7171_v17, 7  ;;  %v2341_v4 = vrot.slane %v1703_v7, 4  ;;  %v7304_v10 = vld [vmem:[#allocation48_spill] sm:$0xff]  ;;  %v7305_v7 = vld [vmem:[#allocation51_spill] sm:$0xff] }
 0x1e6   :  { %4849 = vmatprep.subr.bf16.mxu1 %v5113_v23  ;;  %4877 = vmatprep.subr.bf16.mxu0 %v5114_v56  ;;  %v1900_v42 = vrot.slane %v7170_v63, 7  ;;  %v2342_v52 = vrot.slane %v1706_v34, 5  ;;  %v2350_v46 = vrot.slane %v1716_v9, 4  ;;  %v2351_v8 = vrot.slane %v1719_v13, 5 }
 0x1e7   :  { %v1865_v39 = vsel %vm5741_vm7, %v7304_v10, %v1864_v19  ;;  %v1878_v51 = vsel %vm5741_vm7, %v7305_v7, %v1877_v27  ;;  %v1888_v48 = vshll.u32 %v6264_v30, 16  ;;  %v2359_v63 = vrot.slane %v1729_v16, 4 }
 0x1e8   :  { %4850 = vmatpush3.bf16.msra.mxu1 %v5113_v23  ;;  %v4340_v34 = vcombine.low %v1429_v45, %v1438_v40  ;;  %v1901_v9 = vshll.u32 %v6274_v35, 16  ;;  %v2343_v17 = vor.u32 %v2342_v52, %v2341_v4  ;;  %v2352_v5 = vor.u32 %v2351_v8, %v2350_v46  ;;  %v5118_v45 = vld [vmem:[#allocation8 + $0x100] sm:$0xff]   ;;  %v5119_v40 = vld [vmem:[#allocation8 + $0x150] sm:$0xff]  }
 0x1e9   :  { %4878 = vmatpush3.bf16.msra.mxu0 %v5114_v56  ;;  %4851 = vmatprep.subr.bf16.mxu1 %v5115_v26  ;;  %v1890_v13 = vor.u32 %v1888_v48, %v1887_v24  ;;  %v2360_v19 = vrot.slane %v1732_v11, 5  ;;  %v7306_v27 = vshrl.u32 %v6081_v53, 16  ;;  %v2369_v16 = vrot.slane %v1745_v20, 5  ;;  %v2714_v46 = vld [vmem:[#allocation2 + $0x84] sm:$0xf] }
 0x1ea   :  { %4879 = vmatprep.subr.bf16.mxu0 %v5116_v32  ;;  %v4371_v23 = vcombine.low %v1865_v39, %v1878_v51  ;;  %v1903_v56 = vor.u32 %v1901_v9, %v1900_v42  ;;  %v2344_v4 = vrot.slane %v2343_v17, 4  ;;  %v2353_v52 = vrot.slane %v2352_v5, 4 }
 0x1eb   :  { %v2368_v10 = vrot.slane %v7306_v27, 4  ;;  %4832 = vmatmul.mubr.bf16.gmra.mxu0 %v4370_v28  ;;  %4804 = vmatmul.mubr.bf16.gmra.mxu1 %v4340_v34  ;;  %v4381_v11 = vcombine.low %v6029_v21, %v6054_v29  ;;  %v2361_v24 = vor.u32 %v2360_v19, %v2359_v63  ;;  %v2377_v8 = vrot.slane %v1755_v50, 4  ;;  %v7309_v21 = vld [vmem:[#allocation52_spill] sm:$0xff]  ;;  %v7312_v19 = vld [vmem:[#allocation55_spill] sm:$0xff] }
 0x1ec   :  { %v7307_v20 = vshll.u32 %v5880_v41, 16  ;;  %4835 = vmatprep.mubr.bf16.mxu0 %v4371_v23  ;;  %4852 = vmatpush3.bf16.msra.mxu1 %v5115_v26  ;;  %v2378_v5 = vrot.slane %v1758_v14, 5  ;;  %v7308_v17 = vshrl.u32 %v6123_v25, 16  ;;  %v6343_v42 = vrot.slane %v2810_v62, 11  ;;  %v5121_v41 = vld [vmem:[#allocation8 + $0x1b8] sm:$0xff]   ;;  %v5120_v62 = vld [vmem:[#allocation8 + $0x148] sm:$0xff]  }
 0x1ed   :  { %v2370_v7 = vor.u32 %v2369_v16, %v2368_v10  ;;  %4880 = vmatpush3.bf16.msra.mxu0 %v5116_v32  ;;  %4855 = vmatprep.mubr.bf16.mxu1 %v4381_v11  ;;  %v1891_v29 = vsel %vm5741_vm7, %v7309_v21, %v1890_v13  ;;  %v7310_v50 = vshll.u32 %v6123_v25, 16  ;;  %v2823_v26 = vshrl.u32 %v2714_v46, 16  ;;  %v7311_v32 = vld [vmem:[#allocation54_spill] sm:$0xff] }
 0x1ee   :  { %v6337_v39 = vrot.slane %v7307_v20, 5  ;;  %v2386_v28 = vrot.slane %v7308_v17, 4  ;;  %v7173_v51 = vshll.u32 %v6276_v38, 16  ;;  %4853 = vmatprep.subr.bf16.mxu1 %v5118_v45  ;;  %4881 = vmatprep.subr.bf16.mxu0 %v5119_v40  ;;  %v1904_v14 = vsel %vm5741_vm7, %v5832_v54, %v1903_v56  ;;  %v2720_v56 = vld [vmem:[#allocation2 + $0xc4] sm:$0xf] }
 0x1ef   :  { %v2387_v63 = vrot.slane %v7310_v50, 5  ;;  %v2349_v34 = vsel %vm5844_vm10, %v2344_v4, %v7311_v32  ;;  %v2358_v13 = vsel %vm5844_vm10, %v2353_v52, %v7312_v19  ;;  %v2843_v27 = vrot.slane %v7174_v44, 7  ;;  %v7316_v32 = vld [vmem:[#allocation56_spill] sm:$0xff] }
 0x1f0   :  { %v2362_v10 = vrot.slane %v2361_v24, 4  ;;  %v2379_v16 = vor.u32 %v2378_v5, %v2377_v8  ;;  %v7313_v23 = vshrl.u32 %v6133_v47, 16  ;;  %v2396_v54 = vrot.slane %v1784_v22, 5  ;;  %4854 = vmatpush3.bf16.msra.mxu1 %v5118_v45  ;;  %v5124_v8 = vld [vmem:[#allocation8 + $0x140] sm:$0xff]   ;;  %v5125_v5 = vld [vmem:[#allocation8 + $0x1b0] sm:$0xff]  }
 0x1f1   :  { %v2371_v11 = vrot.slane %v2370_v7, 4  ;;  %v2388_v20 = vor.u32 %v2387_v63, %v2386_v28  ;;  %v2404_v4 = vrot.slane %v1794_v55, 4  ;;  %v2405_v52 = vrot.slane %v1797_v61, 5  ;;  %4882 = vmatpush3.bf16.msra.mxu0 %v5119_v40  ;;  %4903 = vmatprep.subr.bf16.mxu1 %v5121_v41  ;;  %v6376_v7 = vld [vmem:[#allocation2 + $0xd4] sm:$0xf] }
 0x1f2   :  { %v2395_v46 = vrot.slane %v7313_v23, 4  ;;  %v4372_v17 = vcombine.low %v1891_v29, %v1904_v14  ;;  %v4382_v24 = vcombine.low %v6069_v2, %v6081_v53  ;;  %v2413_v22 = vrot.slane %v1807_v49, 4  ;;  %4883 = vmatprep.subr.bf16.mxu0 %v5120_v62  ;;  %v2717_v28 = vld [vmem:[#allocation2 + $0x94] sm:$0xf]  ;;  %v6386_v63 = vld [vmem:[#allocation2 + $0xe4] sm:$0xf] }
 0x1f3   :  { %v2414_v45 = vrot.slane %v1810_v57, 5  ;;  %v4397_v55 = vcombine.low %v2349_v34, %v2358_v13  ;;  %v7314_v61 = vshrl.u32 %v6180_v12, 16  ;;  %v6380_v21 = vrot.slane %v2823_v26, 11  ;;  %v6388_v14 = vld [vmem:[#allocation2 + $0xf4] sm:$0xf]  ;;  %v7317_v34 = vld [vmem:[#allocation57_spill] sm:$0xff] }
 0x1f4   :  { %v2849_v29 = vshrl.u32 %v2720_v56, 16  ;;  %4836 = vmatmul.mubr.bf16.gmra.mxu0 %v4372_v17  ;;  %4856 = vmatmul.mubr.bf16.vlgmr.msra.gmra.mxu1 %v4382_v24  ;;  %v4383_v2 = vcombine.low %v6100_v31, %v6123_v25  ;;  %v2380_v53 = vrot.slane %v2379_v16, 4  ;;  %v2397_v49 = vor.u32 %v2396_v54, %v2395_v46  ;;  %v5126_v13 = vld [vmem:[#allocation8 + $0x1a8] sm:$0xff]   ;;  %v7319_v24 = vld [vmem:[#allocation59_spill] sm:$0xff] }
 0x1f5   :  { %v2422_v40 = vrot.slane %v7314_v61, 4  ;;  %v7315_v57 = vshll.u32 %v6180_v12, 16  ;;  %4887 = vmatprep.mubr.bf16.mxu0 %v4397_v55  ;;  %4904 = vmatpush3.bf16.msra.mxu1 %v5121_v41  ;;  %v2367_v26 = vsel %vm5844_vm10, %v2362_v10, %v7316_v32  ;;  %v2376_v19 = vsel %vm5844_vm10, %v2371_v11, %v7317_v34  ;;  %v5127_v10 = vld [vmem:[#allocation8 + $0x1f8] sm:$0xff]  }
 0x1f6   :  { %v2389_v31 = vrot.slane %v2388_v20, 4  ;;  %v2406_v25 = vor.u32 %v2405_v52, %v2404_v4  ;;  %4884 = vmatpush3.bf16.msra.mxu0 %v5120_v62  ;;  %4859 = vmatprep.mubr.bf16.mxu1 %v4383_v2  ;;  %v2415_v16 = vor.u32 %v2414_v45, %v2413_v22  ;;  %v2836_v23 = vshrl.u32 %v2717_v28, 16  ;;  %v7318_v52 = vld [vmem:[#allocation58_spill] sm:$0xff]  ;;  %v6417_v28 = vld [vmem:[#allocation2 + $0x28] sm:$0xf] }
 0x1f7   :  { %v2423_v50 = vrot.slane %v7315_v57, 5  ;;  %v6398_v46 = vor.u32 %v7173_v51, %v2843_v27  ;;  %v2862_v41 = vshrl.u32 %v6376_v7, 16  ;;  %4885 = vmatprep.subr.bf16.mxu0 %v5124_v8  ;;  %4905 = vmatprep.subr.bf16.mxu1 %v5125_v5  ;;  %v6401_v56 = vrot.slane %v2849_v29, 11  ;;  %v6425_v57 = vld [vmem:[#allocation2 + $0x38] sm:$0xf] }
 0x1f8   :  { %v2875_v11 = vshrl.u32 %v6386_v63, 16  ;;  %v2888_v62 = vshrl.u32 %v6388_v14, 16  ;;  %v4398_v20 = vcombine.low %v2367_v26, %v2376_v19  ;;  %v4384_v4 = vcombine.low %v6133_v47, %v6143_v3 }
 0x1f9   :  { %v2424_v54 = vor.u32 %v2423_v50, %v2422_v40  ;;  %v2385_v27 = vsel %vm5844_vm10, %v2380_v53, %v7318_v52  ;;  %v2398_v17 = vrot.slane %v2397_v49, 4  ;;  %4906 = vmatpush3.bf16.msra.mxu1 %v5125_v5  ;;  %v2394_v22 = vsel %vm5844_vm10, %v2389_v31, %v7319_v24  ;;  %v5130_v50 = vld [vmem:[#allocation8 + $0x1a0] sm:$0xff]   ;;  %v5131_v31 = vld [vmem:[#allocation8 + $0x1f0] sm:$0xff]  }
 0x1fa   :  { %v2407_v45 = vrot.slane %v2406_v25, 4  ;;  %v7320_v7 = vshrl.u32 %v6202_v60, 16  ;;  %v7321_v61 = vshll.u32 %v6202_v60, 16  ;;  %4886 = vmatpush3.bf16.msra.mxu0 %v5124_v8  ;;  %4907 = vmatprep.subr.bf16.mxu1 %v5126_v13  ;;  %v2416_v47 = vrot.slane %v2415_v16, 4  ;;  %v6444_v52 = vld [vmem:[#allocation2 + $0x104] sm:$0xf] }
 0x1fb   :  { %v7322_v3 = vshrl.u32 %v6204_v15, 16  ;;  %v7323_v5 = vshll.u32 %v6204_v15, 16  ;;  %v7324_v53 = vshrl.u32 %v6228_v37, 16  ;;  %4935 = vmatprep.subr.bf16.mxu0 %v5127_v10  ;;  %v2425_v63 = vrot.slane %v2424_v54, 4 }
 0x1fc   :  { %v2431_v55 = vrot.slane %v7320_v7, 4  ;;  %v2432_v40 = vrot.slane %v7321_v61, 5  ;;  %v2450_v14 = vrot.slane %v1862_v43, 5  ;;  %v2458_v8 = vrot.slane %v1872_v6, 4  ;;  %4860 = vmatmul.mubr.bf16.gmra.mxu1 %v4384_v4  ;;  %v6459_v7 = vld [vmem:[#allocation2 + $0x48] sm:$0xf] }
 0x1fd   :  { %v2440_v29 = vrot.slane %v7322_v3, 4  ;;  %v2441_v2 = vrot.slane %v7323_v5, 5  ;;  %v2449_v49 = vrot.slane %v7324_v53, 4  ;;  %v7325_v32 = vshll.u32 %v6247_v59, 16  ;;  %4888 = vmatmul.mubr.bf16.vlgmr.msra.gmra.mxu0 %v4398_v20  ;;  %4908 = vmatpush3.bf16.msra.mxu1 %v5126_v13  ;;  %v7326_v13 = vld [vmem:[#allocation60_spill] sm:$0xff]  ;;  %v5133_v20 = vld [vmem:[#allocation8 + $0x1e8] sm:$0xff]  }
 0x1fe   :  { %v4399_v34 = vcombine.low %v2385_v27, %v2394_v22  ;;  %v4385_v19 = vcombine.low %v6160_v0, %v6180_v12  ;;  %v6435_v25 = vrot.slane %v2836_v23, 11  ;;  %v6437_v16 = vrot.slane %v2862_v41, 11  ;;  %v6446_v27 = vld [vmem:[#allocation2 + $0x114] sm:$0xf]  ;;  %4936 = vmatpush3.bf16.msra.mxu0 %v5127_v10  ;;  %v5132_v12 = vld [vmem:[#allocation8 + $0x198] sm:$0xff]   ;;  %4909 = vmatprep.subr.bf16.mxu1 %v5130_v50 }
 0x1ff   :  { %v2459_v26 = vrot.slane %v7325_v32, 5  ;;  %v2403_v43 = vsel %vm5844_vm10, %v2398_v17, %v5836_v1  ;;  %v2433_v6 = vor.u32 %v2432_v40, %v2431_v55  ;;  %v2750_v54 = vshrl.u32 %v6417_v28, 16  ;;  %v7327_v17 = vld [vmem:[#allocation61_spill] sm:$0xff]  ;;  %4937 = vmatprep.subr.bf16.mxu0 %v5131_v31  ;;  %v5136_v53 = vld [vmem:[#allocation8 + $0x190] sm:$0xff]  }
 0x200   :  { %v2763_v4 = vshrl.u32 %v6425_v57, 16  ;;  %4891 = vmatprep.mubr.bf16.mxu0 %v4399_v34  ;;  %v2412_v0 = vsel %vm5844_vm10, %v2407_v45, %v5862_v18  ;;  %v2421_v1 = vsel %vm5844_vm10, %v2416_v47, %v7326_v13  ;;  %v2442_v23 = vor.u32 %v2441_v2, %v2440_v29  ;;  %4863 = vmatprep.mubr.bf16.mxu1 %v4385_v19  ;;  %v6461_v18 = vld [vmem:[#allocation2 + $0x58] sm:$0xf]  ;;  %v6477_v5 = vld [vmem:[#allocation2 + $0x68] sm:$0xf] }
 0x201   :  { %v6454_v41 = vrot.slane %v2875_v11, 11  ;;  %v2430_v24 = vsel %vm5844_vm10, %v2425_v63, %v7327_v17  ;;  %v2451_v10 = vor.u32 %v2450_v14, %v2449_v49  ;;  %v2460_v22 = vor.u32 %v2459_v26, %v2458_v8  ;;  %4910 = vmatpush3.bf16.msra.mxu1 %v5130_v50  ;;  %v6482_v2 = vld [vmem:[#allocation2 + $0x78] sm:$0xf]  ;;  %v5137_v8 = vld [vmem:[#allocation8 + $0x1e0] sm:$0xff]  }
 0x202   :  { %v6463_v45 = vrot.slane %v2888_v62, 11  ;;  %v4386_v11 = vcombine.low %v6202_v60, %v6204_v15  ;;  %v4387_v55 = vcombine.low %v6228_v37, %v6247_v59  ;;  %v2901_v61 = vshrl.u32 %v6444_v52, 16  ;;  %4938 = vmatpush3.bf16.msra.mxu0 %v5131_v31  ;;  %4911 = vmatprep.subr.bf16.mxu1 %v5132_v12 }
 0x203   :  { %v2914_v40 = vshrl.u32 %v6446_v27, 16  ;;  %v4400_v47 = vcombine.low %v2403_v43, %v2412_v0  ;;  %v6471_v3 = vrot.slane %v2433_v6, 4  ;;  %v2752_v29 = vrot.slane %v2750_v54, 7  ;;  %4939 = vmatprep.subr.bf16.mxu0 %v5133_v20  ;;  %v5149_v27 = vld [vmem:[#allocation8 + $0x228] sm:$0xff]  }
 0x204   :  { %v2765_v62 = vrot.slane %v2763_v4, 7  ;;  %v4401_v60 = vcombine.low %v2421_v1, %v2430_v24  ;;  %v2753_v15 = vshll.u32 %v6417_v28, 16  ;;  %v2776_v37 = vshrl.u32 %v6459_v7, 16  ;;  %4864 = vmatmul.mubr.bf16.gmra.mxu1 %v4386_v11  ;;  %v7331_v24 = vld [vmem:[#allocation63_spill] sm:$0xff] }
 0x205   :  { %v2789_v59 = vshrl.u32 %v6461_v18, 16  ;;  %v2443_v49 = vrot.slane %v2442_v23, 4  ;;  %v2452_v50 = vrot.slane %v2451_v10, 4  ;;  %v2461_v63 = vrot.slane %v2460_v22, 4  ;;  %4892 = vmatmul.mubr.bf16.gmra.mxu0 %v4400_v47  ;;  %4912 = vmatpush3.bf16.msra.mxu1 %v5132_v12  ;;  %v5139_v10 = vld [vmem:[#allocation8 + $0x1d8] sm:$0xff]   ;;  %v7332_v22 = vld [vmem:[#allocation64_spill] sm:$0xff] }
 0x206   :  { %v2766_v14 = vshll.u32 %v6425_v57, 16  ;;  %v7328_v32 = vshrl.u32 %v6264_v30, 16  ;;  %v2468_v34 = vrot.slane %v1888_v48, 5  ;;  %v7329_v19 = vshrl.u32 %v6274_v35, 16  ;;  %4895 = vmatprep.mubr.bf16.mxu0 %v4401_v60  ;;  %4940 = vmatpush3.bf16.msra.mxu0 %v5133_v20  ;;  %v7330_v48 = vld [vmem:[#allocation62_spill] sm:$0xff] }
 0x207   :  { %v2477_v43 = vrot.slane %v1901_v9, 5  ;;  %v2755_v6 = vor.u32 %v2753_v15, %v2752_v29  ;;  %v7176_v0 = vshrl.u32 %v6477_v5, 16  ;;  %v7175_v13 = vshrl.u32 %v6482_v2, 16  ;;  %v5138_v9 = vld [vmem:[#allocation8 + $0x188] sm:$0xff]   ;;  %4867 = vmatprep.mubr.bf16.mxu1 %v4387_v55  ;;  %4913 = vmatprep.subr.bf16.mxu1 %v5136_v53  ;;  %v7333_v47 = vld [vmem:[#allocation66_spill] sm:$0xff] }
 0x208   :  { %v2467_v26 = vrot.slane %v7328_v32, 4  ;;  %v2476_v31 = vrot.slane %v7329_v19, 4  ;;  %v2768_v52 = vor.u32 %v2766_v14, %v2765_v62  ;;  %v2439_v1 = vsel %vm5844_vm10, %v6471_v3, %v7330_v48  ;;  %v6520_v3 = vld [vmem:[#allocation2 + $0xc8] sm:$0xf]  ;;  %4941 = vmatprep.subr.bf16.mxu0 %v5137_v8  ;;  %v6526_v32 = vld [vmem:[#allocation2 + $0xd8] sm:$0xf] }
 0x209   :  { %v4388_v12 = vcombine.low %v6264_v30, %v6274_v35  ;;  %v2778_v23 = vrot.slane %v2776_v37, 7  ;;  %v2791_v17 = vrot.slane %v2789_v59, 7  ;;  %v2448_v20 = vsel %vm5844_vm10, %v2443_v49, %v7331_v24  ;;  %v6518_v35 = vld [vmem:[#allocation2 + $0x88] sm:$0xf]  ;;  %4914 = vmatpush3.bf16.msra.mxu1 %v5136_v53  ;;  %v7335_v19 = vld [vmem:[#allocation67_spill] sm:$0xff] }
 0x20a   :  { %v2457_v11 = vsel %vm5844_vm10, %v2452_v50, %v7332_v22  ;;  %v2466_v30 = vsel %vm5844_vm10, %v2461_v63, %v7333_v47  ;;  %v6522_v29 = vrot.slane %v2901_v61, 11  ;;  %v2469_v55 = vor.u32 %v2468_v34, %v2467_v26  ;;  %v7334_v50 = vld [vmem:[#allocation65_spill] sm:$0xff]  ;;  %v6538_v34 = vld [vmem:[#allocation2 + $0x138] sm:$0xf]  ;;  %4942 = vmatpush3.bf16.msra.mxu0 %v5137_v8  ;;  %4915 = vmatprep.subr.bf16.mxu1 %v5138_v9  ;;  %v5141_v22 = vld [vmem:[#allocation8 + $0x180] sm:$0xff]  }
 0x20b   :  { %v2478_v62 = vor.u32 %v2477_v43, %v2476_v31  ;;  %v2779_v60 = vshll.u32 %v6459_v7, 16  ;;  %v2792_v49 = vshll.u32 %v6461_v18, 16  ;;  %v2756_v63 = vsel %vm5741_vm7, %v7334_v50, %v2755_v6  ;;  %4943 = vmatprep.subr.bf16.mxu0 %v5139_v10 }
 0x20c   :  { %v2769_v48 = vsel %vm5741_vm7, %v7335_v19, %v2768_v52  ;;  %v2804_v61 = vrot.slane %v7176_v0, 7  ;;  %v2817_v26 = vrot.slane %v7175_v13, 7  ;;  %v7181_v43 = vshrl.u32 %v6518_v35, 16  ;;  %v6546_v52 = vld [vmem:[#allocation2 + $0x124] sm:$0xf]  ;;  %4868 = vmatmul.mubr.bf16.gmra.mxu1 %v4388_v12  ;;  %v5142_v19 = vld [vmem:[#allocation8 + $0x1d0] sm:$0xff]  }
 0x20d   :  { %v2781_v53 = vor.u32 %v2779_v60, %v2778_v23  ;;  %v2794_v31 = vor.u32 %v2792_v49, %v2791_v17  ;;  %v7178_v6 = vshrl.u32 %v6520_v3, 16  ;;  %v4402_v24 = vcombine.low %v2439_v1, %v2448_v20  ;;  %4916 = vmatpush3.bf16.msra.mxu1 %v5138_v9  ;;  %v5144_v12 = vld [vmem:[#allocation8 + $0x238] sm:$0xff]  }
 0x20e   :  { %v7184_v47 = vshll.u32 %v6477_v5, 16  ;;  %v7183_v8 = vshll.u32 %v6482_v2, 16  ;;  %v7177_v50 = vshrl.u32 %v6526_v32, 16  ;;  %v4403_v23 = vcombine.low %v2457_v11, %v2466_v30  ;;  %4944 = vmatpush3.bf16.msra.mxu0 %v5139_v10  ;;  %v7336_v11 = vld [vmem:[#allocation68_spill] sm:$0xff]  ;;  %4917 = vmatprep.subr.bf16.mxu1 %v5141_v22 }
 0x20f   :  { %v2470_v51 = vrot.slane %v2469_v55, 4  ;;  %v2479_v17 = vrot.slane %v2478_v62, 4  ;;  %v7185_v44 = vshrl.u32 %v6538_v34, 16  ;;  %4896 = vmatmul.mubr.bf16.gmra.mxu0 %v4402_v24  ;;  %v4429_v13 = vcombine.low %v2756_v63, %v2769_v48  ;;  %v7337_v55 = vld [vmem:[#allocation70_spill] sm:$0xff]  ;;  %v5143_v48 = vld [vmem:[#allocation8 + $0x1c8] sm:$0xff]   ;;  %4945 = vmatprep.subr.bf16.mxu0 %v5142_v19 }
 0x210   :  { %v2807_v1 = vor.u32 %v7184_v47, %v2804_v61  ;;  %v2820_v20 = vor.u32 %v7183_v8, %v2817_v26  ;;  %v2927_v0 = vshrl.u32 %v6546_v52, 16  ;;  %4899 = vmatprep.mubr.bf16.mxu0 %v4403_v23  ;;  %v2782_v30 = vsel %vm5741_vm7, %v7336_v11, %v2781_v53  ;;  %v6573_v26 = vld [vmem:[#allocation2 + $0xe8] sm:$0xf]  ;;  %v6575_v53 = vld [vmem:[#allocation2 + $0xf8] sm:$0xf] }
 0x211   :  { %v2795_v9 = vsel %vm5741_vm7, %v7337_v55, %v2794_v31  ;;  %v2830_v62 = vrot.slane %v7181_v43, 7  ;;  %v2856_v63 = vrot.slane %v7178_v6, 7  ;;  %4919 = vmatprep.mubr.bf16.mxu1 %v4429_v13  ;;  %v2847_v10 = vsel %vm5741_vm7, %v6435_v25, %v6398_v46  ;;  %v7338_v31 = vld [vmem:[#allocation69_spill] sm:$0xff]  ;;  %v6587_v55 = vld [vmem:[#allocation2 + $0x118] sm:$0xf]  ;;  %4918 = vmatpush3.bf16.msra.mxu1 %v5141_v22 }
 0x212   :  { %v2869_v61 = vrot.slane %v7177_v50, 7  ;;  %v2475_v52 = vsel %vm5844_vm10, %v2470_v51, %v7338_v31  ;;  %v2484_v13 = vsel %vm5844_vm10, %v2479_v17, %v6337_v39  ;;  %v7180_v24 = vshll.u32 %v6518_v35, 16  ;;  %v6585_v11 = vld [vmem:[#allocation2 + $0x108] sm:$0xf]  ;;  %4946 = vmatpush3.bf16.msra.mxu0 %v5142_v19  ;;  %4967 = vmatprep.subr.bf16.mxu1 %v5144_v12  ;;  %v2701_v8 = vld [vmem:[#allocation2 + $0x3c] sm:$0xf] }
 0x213   :  { %v7179_v23 = vshll.u32 %v6520_v3, 16  ;;  %v4430_v50 = vcombine.low %v2782_v30, %v2795_v9  ;;  %v2808_v6 = vsel %vm5741_vm7, %v6280_v36, %v2807_v1  ;;  %v2821_v51 = vsel %vm5741_vm7, %v6343_v42, %v2820_v20  ;;  %v6602_v9 = vld [vmem:[#allocation2 + $0x134] sm:$0xf]  ;;  %v6604_v36 = vld [vmem:[#allocation2 + $0x2c] sm:$0xf]  ;;  %4947 = vmatprep.subr.bf16.mxu0 %v5143_v48  ;;  %v5146_v42 = vld [vmem:[#allocation8 + $0x1c0] sm:$0xff]  }
 0x214   :  { %v7182_v39 = vshll.u32 %v6526_v32, 16  ;;  %v2833_v17 = vor.u32 %v7180_v24, %v2830_v62  ;;  %v2880_v22 = vshrl.u32 %v6573_v26, 16  ;;  %v2893_v30 = vshrl.u32 %v6575_v53, 16  ;;  %v6616_v43 = vld [vmem:[#allocation2 + $0x128] sm:$0xf] }
 0x215   :  { %v2859_v31 = vor.u32 %v7179_v23, %v2856_v63  ;;  %v4404_v1 = vcombine.low %v2475_v52, %v2484_v13  ;;  %v7187_v20 = vshrl.u32 %v6585_v11, 16  ;;  %v7186_v62 = vshrl.u32 %v6587_v55, 16  ;;  %4920 = vmatmul.mubr.bf16.vlgmr.msra.gmra.mxu1 %v4430_v50  ;;  %v5147_v23 = vld [vmem:[#allocation8 + $0x230] sm:$0xff]   ;;  %v6665_v25 = vld [vmem:[#allocation2 + $0x6c] sm:$0xf] }
 0x216   :  { %v2872_v19 = vor.u32 %v7182_v39, %v2869_v61  ;;  %v4445_v63 = vcombine.low %v6417_v28, %v6425_v57  ;;  %v6614_v24 = vrot.slane %v2914_v40, 11  ;;  %v6618_v52 = vrot.slane %v2927_v0, 11  ;;  %4968 = vmatpush3.bf16.msra.mxu1 %v5144_v12  ;;  %4948 = vmatpush3.bf16.msra.mxu0 %v5143_v48  ;;  %v5153_v28 = vld [vmem:[#allocation8 + $0x218] sm:$0xff]  }
 0x217   :  { %v2948_v13 = vshll.u32 %v6538_v34, 16  ;;  %4900 = vmatmul.mubr.bf16.gmra.mxu0 %v4404_v1  ;;  %v4431_v61 = vcombine.low %v2808_v6, %v2821_v51  ;;  %v2940_v39 = vshrl.u32 %v6602_v9, 16  ;;  %v2947_v50 = vrot.slane %v7185_v44, 7  ;;  %4949 = vmatprep.subr.bf16.mxu0 %v5146_v42 }
 0x218   :  { %v3393_v47 = vshll.u32 %v6604_v36, 16  ;;  %4951 = vmatprep.mubr.bf16.mxu0 %v4445_v63  ;;  %v2834_v40 = vsel %vm5741_vm7, %v6380_v21, %v2833_v17  ;;  %v2860_v0 = vsel %vm5741_vm7, %v6401_v56, %v2859_v31  ;;  %v2882_v6 = vrot.slane %v2880_v22, 7  ;;  %v6643_v17 = vld [vmem:[#allocation2 + $0x4c] sm:$0xf]  ;;  %4969 = vmatprep.subr.bf16.mxu1 %v5147_v23 }
 0x219   :  { %v2895_v12 = vrot.slane %v2893_v30, 7  ;;  %4923 = vmatprep.mubr.bf16.mxu1 %v4431_v61  ;;  %v2873_v48 = vsel %vm5741_vm7, %v6437_v16, %v2872_v19  ;;  %v2908_v51 = vrot.slane %v7187_v20, 7  ;;  %v2921_v21 = vrot.slane %v7186_v62, 7  ;;  %v444_v16 = vld [vmem:[#allocation2 + $0x9c] sm:$0x1] }
 0x21a   :  { %v7189_v56 = vshrl.u32 %v6616_v43, 16  ;;  %v4446_v31 = vcombine.low %v6459_v7, %v6461_v18  ;;  %v2883_v9 = vshll.u32 %v6573_v26, 16  ;;  %v7188_v36 = vshll.u32 %v6575_v53, 16  ;;  %4970 = vmatpush3.bf16.msra.mxu1 %v5147_v23  ;;  %4950 = vmatpush3.bf16.msra.mxu0 %v5146_v42  ;;  %v6662_v20 = vld [vmem:[#allocation2 + $0x5c] sm:$0xf] }
 0x21b   :  { %v3402_v1 = vshll.u32 %v2701_v8, 16  ;;  %v4432_v19 = vcombine.low %v2834_v40, %v2847_v10  ;;  %v4447_v63 = vcombine.low %v6477_v5, %v6482_v2  ;;  %v2909_v61 = vshll.u32 %v6585_v11, 16  ;;  %4971 = vmatprep.subr.bf16.mxu1 %v5149_v27  ;;  %v5151_v10 = vld [vmem:[#allocation8 + $0x220] sm:$0xff]  }
 0x21c   :  { %v2922_v44 = vshll.u32 %v6587_v55, 16  ;;  %v4433_v62 = vcombine.low %v2860_v0, %v2873_v48  ;;  %v2885_v8 = vor.u32 %v2883_v9, %v2882_v6  ;;  %v2898_v23 = vor.u32 %v7188_v36, %v2895_v12 }
 0x21d   :  { %v3411_v46 = vshll.u32 %v6643_v17, 16  ;;  %v2911_v40 = vor.u32 %v2909_v61, %v2908_v51  ;;  %v2934_v0 = vrot.slane %v7189_v56, 7  ;;  %v445_v48 = vsel %vm5455_vm5, 0, %v444_v16  ;;  %4924 = vmatmul.mubr.bf16.gmra.mxu1 %v4432_v19 }
 0x21e   :  { %v2924_v42 = vor.u32 %v2922_v44, %v2921_v21  ;;  %v3388_v12 = vrot.slane %v2750_v54, 4  ;;  %v3389_v17 = vrot.slane %v2753_v15, 5  ;;  %v3397_v36 = vrot.slane %v2763_v4, 4  ;;  %446 = vst [vmem:[#allocation2 + $0x9c] sm:$0x1] %v445_v48  ;;  %4972 = vmatpush3.bf16.msra.mxu1 %v5149_v27  ;;  %4927 = vmatprep.mubr.bf16.mxu1 %v4433_v62 }
 0x21f   :  { %v3398_v51 = vrot.slane %v2766_v14, 5  ;;  %4952 = vmatmul.mubr.bf16.vlgmr.msra.gmra.mxu0 %v4446_v31  ;;  %v2935_v21 = vshll.u32 %v6616_v43, 16  ;;  %v4428_v56 = vrot.slane %v2940_v39, 11  ;;  %v3420_v16 = vshll.u32 %v6662_v20, 16  ;;  %4973 = vmatprep.subr.bf16.mxu1 %v5151_v10  ;;  %v2713_v62 = vld [vmem:[#allocation2 + $0x7c] sm:$0xf] }
 0x220   :  { %v3429_v19 = vshll.u32 %v6665_v25, 16  ;;  %4955 = vmatprep.mubr.bf16.mxu0 %v4447_v63  ;;  %v2886_v54 = vsel %vm5741_vm7, %v6454_v41, %v2885_v8  ;;  %v2950_v57 = vor.u32 %v2948_v13, %v2947_v50  ;;  %v6691_v4 = vrot.slane %v3393_v47, 5 }
 0x221   :  { %v6693_v15 = vrot.slane %v3402_v1, 5  ;;  %v2899_v14 = vsel %vm5741_vm7, %v6463_v45, %v2898_v23  ;;  %v2912_v39 = vsel %vm5741_vm7, %v6522_v29, %v2911_v40  ;;  %v2937_v20 = vor.u32 %v2935_v21, %v2934_v0 }
 0x222   :  { %v3406_v41 = vrot.slane %v2776_v37, 4  ;;  %v2925_v47 = vsel %vm5741_vm7, %v6614_v24, %v2924_v42  ;;  %v3390_v50 = vor.u32 %v3389_v17, %v3388_v12  ;;  %v3399_v27 = vor.u32 %v3398_v51, %v3397_v36  ;;  %4974 = vmatpush3.bf16.msra.mxu1 %v5151_v10  ;;  %v5155_v10 = vld [vmem:[#allocation8 + $0x210] sm:$0xff]   ;;  %v5157_v17 = vld [vmem:[#allocation8 + $0x208] sm:$0xff]  }
 0x223   :  { %v3407_v45 = vrot.slane %v2779_v60, 5  ;;  %v3415_v29 = vrot.slane %v2789_v59, 4  ;;  %v3416_v31 = vrot.slane %v2792_v49, 5  ;;  %v7340_v1 = vshrl.u32 %v6477_v5, 16  ;;  %4975 = vmatprep.subr.bf16.mxu1 %v5153_v28 }
 0x224   :  { %v7341_v63 = vshll.u32 %v6477_v5, 16  ;;  %v4434_v24 = vcombine.low %v2886_v54, %v2899_v14  ;;  %v7342_v36 = vshrl.u32 %v6482_v2, 16  ;;  %v7343_v7 = vshll.u32 %v6482_v2, 16 }
 0x225   :  { %v3424_v37 = vrot.slane %v7340_v1, 4  ;;  %v3438_v25 = vshll.u32 %v2713_v62, 16  ;;  %v4448_v59 = vcombine.low %v6518_v35, %v6276_v38  ;;  %v4449_v18 = vcombine.low %v6520_v3, %v6526_v32  ;;  %v2722_v1 = vld [vmem:[#allocation2 + $0xcc] sm:$0xf] }
 0x226   :  { %v3425_v8 = vrot.slane %v7341_v63, 5  ;;  %v3433_v23 = vrot.slane %v7342_v36, 4  ;;  %v3434_v60 = vrot.slane %v7343_v7, 5  ;;  %v4435_v49 = vcombine.low %v2912_v39, %v2925_v47  ;;  %4928 = vmatmul.mubr.bf16.gmra.mxu1 %v4434_v24  ;;  %v2716_v47 = vld [vmem:[#allocation2 + $0x8c] sm:$0xf] }
 0x227   :  { %v2951_v5 = vsel %vm5741_vm7, %v4428_v56, %v2950_v57  ;;  %v2938_v40 = vsel %vm5741_vm7, %v6618_v52, %v2937_v20  ;;  %v3391_v42 = vrot.slane %v3390_v50, 4  ;;  %v3400_v2 = vrot.slane %v3399_v27, 4  ;;  %4956 = vmatmul.mubr.bf16.gmra.mxu0 %v4448_v59  ;;  %4976 = vmatpush3.bf16.msra.mxu1 %v5153_v28 }
 0x228   :  { %v3408_v0 = vor.u32 %v3407_v45, %v3406_v41  ;;  %v3417_v48 = vor.u32 %v3416_v31, %v3415_v29  ;;  %v3426_v12 = vor.u32 %v3425_v8, %v3424_v37  ;;  %4959 = vmatprep.mubr.bf16.mxu0 %v4449_v18  ;;  %4931 = vmatprep.mubr.bf16.mxu1 %v4435_v49  ;;  %v3413_v51 = vrot.slane %v3411_v46, 5  ;;  %v451_v41 = vld [vmem:[#allocation2 + $0x13c] sm:$0x1]  ;;  %v5159_v8 = vld [vmem:[#allocation8 + $0x200] sm:$0xff]  }
 0x229   :  { %v3435_v54 = vor.u32 %v3434_v60, %v3433_v23  ;;  %4977 = vmatprep.subr.bf16.mxu1 %v5155_v10  ;;  %v4450_v56 = vcombine.low %v6573_v26, %v6575_v53  ;;  %v4436_v57 = vcombine.low %v2938_v40, %v2951_v5  ;;  %v3422_v14 = vrot.slane %v3420_v16, 5  ;;  %v2719_v18 = vld [vmem:[#allocation2 + $0x9c] sm:$0xf] }
 0x22a   :  { %v3431_v33 = vrot.slane %v3429_v19, 5  ;;  %v3396_v52 = vsel %vm5844_vm10, %v3391_v42, %v6691_v4  ;;  %v3405_v28 = vsel %vm5844_vm10, %v3400_v2, %v6693_v15  ;;  %v3409_v39 = vrot.slane %v3408_v0, 4 }
 0x22b   :  { %v3440_v20 = vrot.slane %v3438_v25, 5  ;;  %4978 = vmatpush3.bf16.msra.mxu1 %v5155_v10  ;;  %v3418_v46 = vrot.slane %v3417_v48, 4  ;;  %v3427_v62 = vrot.slane %v3426_v12, 4  ;;  %v7344_v50 = vshrl.u32 %v6518_v35, 16  ;;  %v2725_v10 = vld [vmem:[#allocation2 + $0xdc] sm:$0xf] }
 0x22c   :  { %v7345_v16 = vshll.u32 %v6518_v35, 16  ;;  %4979 = vmatprep.subr.bf16.mxu1 %v5157_v17  ;;  %v3436_v45 = vrot.slane %v3435_v54, 4  ;;  %v7346_v4 = vshrl.u32 %v6276_v38, 16  ;;  %v7347_v15 = vshll.u32 %v6276_v38, 16 }
 0x22d   :  { %v3442_v27 = vrot.slane %v7344_v50, 4  ;;  %v7348_v37 = vshrl.u32 %v6520_v3, 16  ;;  %v7349_v24 = vshll.u32 %v6520_v3, 16  ;;  %v7350_v23 = vshrl.u32 %v6526_v32, 16 }
 0x22e   :  { %v3443_v19 = vrot.slane %v7345_v16, 5  ;;  %v3451_v29 = vrot.slane %v7346_v4, 4  ;;  %v3452_v31 = vrot.slane %v7347_v15, 5  ;;  %v7351_v7 = vshll.u32 %v6526_v32, 16  ;;  %4932 = vmatmul.mubr.bf16.gmra.mxu1 %v4436_v57  ;;  %v2734_v15 = vld [vmem:[#allocation2 + $0x10c] sm:$0xf] }
 0x22f   :  { %v3460_v63 = vrot.slane %v7348_v37, 4  ;;  %v3461_v36 = vrot.slane %v7349_v24, 5  ;;  %v3469_v35 = vrot.slane %v7350_v23, 4  ;;  %v452_v25 = vsel %vm5455_vm5, 0, %v451_v41  ;;  %4960 = vmatmul.mubr.bf16.gmra.mxu0 %v4450_v56  ;;  %4980 = vmatpush3.bf16.msra.mxu1 %v5157_v17 }
 0x230   :  { %v3470_v60 = vrot.slane %v7351_v7, 5  ;;  %v4451_v38 = vcombine.low %v6585_v11, %v6587_v55  ;;  %v4461_v59 = vcombine.low %v3396_v52, %v3405_v28  ;;  %v3447_v49 = vshll.u32 %v2716_v47, 16  ;;  %453 = vst [vmem:[#allocation2 + $0x13c] sm:$0x1] %v452_v25  ;;  %4981 = vmatprep.subr.bf16.mxu1 %v5159_v8 }
 0x231   :  { %v3414_v3 = vsel %vm5844_vm10, %v3409_v39, %v3413_v51  ;;  %v3423_v32 = vsel %vm5844_vm10, %v3418_v46, %v3422_v14  ;;  %v3444_v5 = vor.u32 %v3443_v19, %v3442_v27  ;;  %v3432_v6 = vsel %vm5844_vm10, %v3427_v62, %v3431_v33  ;;  %v2731_v19 = vld [vmem:[#allocation2 + $0xfc] sm:$0xf] }
 0x232   :  { %4963 = vmatprep.mubr.bf16.mxu0 %v4451_v38  ;;  %4983 = vmatprep.mubr.bf16.mxu1 %v4461_v59  ;;  %v3441_v40 = vsel %vm5844_vm10, %v3436_v45, %v3440_v20  ;;  %v3453_v42 = vor.u32 %v3452_v31, %v3451_v29  ;;  %v3465_v2 = vshll.u32 %v2722_v1, 16  ;;  %v3456_v0 = vshll.u32 %v2719_v18, 16  ;;  %v2728_v20 = vld [vmem:[#allocation2 + $0xec] sm:$0xf]  ;;  %v2737_v31 = vld [vmem:[#allocation2 + $0x11c] sm:$0xf] }
 0x233   :  { %v3462_v48 = vor.u32 %v3461_v36, %v3460_v63  ;;  %v3471_v12 = vor.u32 %v3470_v60, %v3469_v35  ;;  %v3474_v17 = vshll.u32 %v2725_v10, 16  ;;  %v4452_v51 = vcombine.low %v6616_v43, %v6538_v34  ;;  %4982 = vmatpush3.bf16.msra.mxu1 %v5159_v8  ;;  %v2740_v59 = vld [vmem:[#allocation2 + $0x12c] sm:$0xf] }
 0x234   :  { %v4462_v54 = vcombine.low %v3414_v3, %v3423_v32  ;;  %v3449_v56 = vrot.slane %v3447_v49, 5  ;;  %v4463_v57 = vcombine.low %v3432_v6, %v3441_v40  ;;  %v3445_v14 = vrot.slane %v3444_v5, 4 }
 0x235   :  { %v3478_v33 = vrot.slane %v2880_v22, 4  ;;  %v3479_v52 = vrot.slane %v2883_v9, 5  ;;  %v3454_v28 = vrot.slane %v3453_v42, 4  ;;  %v3467_v39 = vrot.slane %v3465_v2, 5 }
 0x236   :  { %v3487_v41 = vrot.slane %v2893_v30, 4  ;;  %v7352_v46 = vshll.u32 %v6575_v53, 16  ;;  %v3458_v47 = vrot.slane %v3456_v0, 5  ;;  %v3463_v50 = vrot.slane %v3462_v48, 4  ;;  %4984 = vmatmul.mubr.bf16.vlgmr.msra.gmra.mxu1 %v4462_v54 }
 0x237   :  { %v3472_v27 = vrot.slane %v3471_v12, 4  ;;  %v3476_v16 = vrot.slane %v3474_v17, 5  ;;  %v7353_v22 = vshrl.u32 %v6585_v11, 16  ;;  %v3497_v26 = vrot.slane %v2909_v61, 5  ;;  %4964 = vmatmul.mubr.bf16.gmra.mxu0 %v4452_v51  ;;  %4987 = vmatprep.mubr.bf16.mxu1 %v4463_v57  ;;  %v2743_v0 = vld [vmem:[#allocation2 + $0x13c] sm:$0xf] }
 0x238   :  { %v3488_v62 = vrot.slane %v7352_v46, 5  ;;  %v7354_v9 = vshrl.u32 %v6587_v55, 16  ;;  %v3506_v30 = vrot.slane %v2922_v44, 5  ;;  %v3480_v53 = vor.u32 %v3479_v52, %v3478_v33 }
 0x239   :  { %v3496_v45 = vrot.slane %v7353_v22, 4  ;;  %v3483_v29 = vshll.u32 %v2728_v20, 16  ;;  %v3492_v37 = vshll.u32 %v2731_v19, 16  ;;  %v3450_v63 = vsel %vm5844_vm10, %v3445_v14, %v3449_v56 }
 0x23a   :  { %v3505_v4 = vrot.slane %v7354_v9, 4  ;;  %v3489_v1 = vor.u32 %v3488_v62, %v3487_v41  ;;  %v3459_v11 = vsel %vm5844_vm10, %v3454_v28, %v3458_v47  ;;  %v3468_v61 = vsel %vm5844_vm10, %v3463_v50, %v3467_v39 }
 0x23b   :  { %v3477_v44 = vsel %vm5844_vm10, %v3472_v27, %v3476_v16  ;;  %v3498_v55 = vor.u32 %v3497_v26, %v3496_v45  ;;  %v3501_v8 = vshll.u32 %v2734_v15, 16  ;;  %v3510_v36 = vshll.u32 %v2737_v31, 16 }
 0x23c   :  { %v3507_v24 = vor.u32 %v3506_v30, %v3505_v4  ;;  %v3481_v23 = vrot.slane %v3480_v53, 4  ;;  %v3485_v35 = vrot.slane %v3483_v29, 5  ;;  %v4464_v7 = vcombine.low %v3450_v63, %v3459_v11 }
 0x23d   :  { %v4465_v60 = vcombine.low %v3468_v61, %v3477_v44  ;;  %v3490_v25 = vrot.slane %v3489_v1, 4  ;;  %v3494_v38 = vrot.slane %v3492_v37, 5  ;;  %v7355_v18 = vshrl.u32 %v6616_v43, 16 }
 0x23e   :  { %v3515_v10 = vrot.slane %v2935_v21, 5  ;;  %v7356_v3 = vshrl.u32 %v6538_v34, 16  ;;  %v3524_v5 = vrot.slane %v2948_v13, 5  ;;  %4988 = vmatmul.mubr.bf16.gmra.mxu1 %v4464_v7  ;;  %v3499_v6 = vrot.slane %v3498_v55, 4 }
 0x23f   :  { %v3514_v49 = vrot.slane %v7355_v18, 4  ;;  %v3503_v40 = vrot.slane %v3501_v8, 5  ;;  %v3508_v42 = vrot.slane %v3507_v24, 4  ;;  %v3512_v2 = vrot.slane %v3510_v36, 5  ;;  %4991 = vmatprep.mubr.bf16.mxu1 %v4465_v60 }
 0x240   :  { %v3523_v32 = vrot.slane %v7356_v3, 4  ;;  %v3486_v48 = vsel %vm5844_vm10, %v3481_v23, %v3485_v35  ;;  %v3519_v12 = vshll.u32 %v2740_v59, 16  ;;  %v3495_v43 = vsel %vm5844_vm10, %v3490_v25, %v3494_v38 }
 0x241   :  { %v3516_v21 = vor.u32 %v3515_v10, %v3514_v49  ;;  %v3528_v51 = vshll.u32 %v2743_v0, 16  ;;  %v3504_v34 = vsel %vm5844_vm10, %v3499_v6, %v3503_v40  ;;  %v3513_v13 = vsel %vm5844_vm10, %v3508_v42, %v3512_v2 }
 0x242   :  { %v3525_v17 = vor.u32 %v3524_v5, %v3523_v32  ;;  %v4466_v54 = vcombine.low %v3486_v48, %v3495_v43  ;;  %v3521_v56 = vrot.slane %v3519_v12, 5  ;;  %v4467_v57 = vcombine.low %v3504_v34, %v3513_v13 }
 0x243   :  { %v3517_v14 = vrot.slane %v3516_v21, 4  ;;  %v3530_v52 = vrot.slane %v3528_v51, 5 }
 0x244   :  { %v3526_v33 = vrot.slane %v3525_v17, 4 }
 0x245   :  { %v3522_v28 = vsel %vm5844_vm10, %v3517_v14, %v3521_v56 }
 0x246   :  { %4992 = vmatmul.mubr.bf16.gmra.mxu1 %v4466_v54  ;;  %v3531_v39 = vsel %vm5844_vm10, %v3526_v33, %v3530_v52 }
 0x247   :  { %4995 = vmatprep.mubr.bf16.mxu1 %v4467_v57  ;;  %v4468_v20 = vcombine.low %v3522_v28, %v3531_v39 }
 0x24e   :  { %4996 = vmatmul.mubr.bf16.gmra.mxu1 %v4468_v20 }
 0x273   :  { %v4729_v41 = vpop.f32.mrf.mxu1 }
 0x275   :  { %v1052_v46 = vpop.f32.mrf.mxu1 }
 0x277   :  { %v4730_v62 = vpop.f32.mrf.mxu1 }
 0x279   :  { %v1055_v47 = vpop.f32.mrf.mxu1 }
 0x27a   :  { %v4761_v50 = vpop.f32.mrf.mxu0 }
 0x27b   :  { %v1238_v27 = vadd.f32 %v4761_v50, %v4729_v41  ;;  %v4733_v16 = vpop.f32.mrf.mxu1 }
 0x27c   :  { %v1229_v19 = vpop.f32.mrf.mxu0 }
 0x27d   :  { %v1230_v22 = vadd.f32 %v1229_v19, %v1052_v46  ;;  %v1068_v45 = vpop.f32.mrf.mxu1 }
 0x27e   :  { %v4762_v26 = vpop.f32.mrf.mxu0 }
 0x27f   :  { %v1241_v9 = vadd.f32 %v4762_v26, %v4730_v62  ;;  %v4734_v4 = vpop.f32.mrf.mxu1 }
 0x280   :  { %v1232_v30 = vpop.f32.mrf.mxu0 }
 0x281   :  { %v1233_v53 = vadd.f32 %v1232_v30, %v1055_v47  ;;  %v1071_v29 = vpop.f32.mrf.mxu1 }
 0x282   :  { %v4765_v58 = vpop.f32.mrf.mxu0 }
 0x283   :  { %v1254_v15 = vadd.f32 %v4765_v58, %v4733_v16  ;;  %v4737_v31 = vpop.f32.mrf.mxu1 }
 0x284   :  { %v1245_v1 = vpop.f32.mrf.mxu0 }
 0x285   :  { %v1246_v37 = vadd.f32 %v1245_v1, %v1068_v45  ;;  %v1084_v63 = vpop.f32.mrf.mxu1 }
 0x286   :  { %v4766_v11 = vpop.f32.mrf.mxu0 }
 0x287   :  { %v1257_v61 = vadd.f32 %v4766_v11, %v4734_v4  ;;  %v4738_v44 = vpop.f32.mrf.mxu1 }
 0x288   :  { %v1248_v55 = vpop.f32.mrf.mxu0 }
 0x289   :  { %v1249_v8 = vadd.f32 %v1248_v55, %v1071_v29  ;;  %v1087_v24 = vpop.f32.mrf.mxu1 }
 0x28a   :  { %v4769_v36 = vpop.f32.mrf.mxu0 }
 0x28b   :  { %v1270_v23 = vadd.f32 %v4769_v36, %v4737_v31  ;;  %v4741_v35 = vpop.f32.mrf.mxu1 }
 0x28c   :  { %v1261_v7 = vpop.f32.mrf.mxu0 }
 0x28d   :  { %v1262_v60 = vadd.f32 %v1261_v7, %v1084_v63  ;;  %v1100_v25 = vpop.f32.mrf.mxu1 }
 0x28e   :  { %v4770_v38 = vpop.f32.mrf.mxu0 }
 0x28f   :  { %v1273_v59 = vadd.f32 %v4770_v38, %v4738_v44  ;;  %v4742_v18 = vpop.f32.mrf.mxu1 }
 0x290   :  { %v1264_v49 = vpop.f32.mrf.mxu0 }
 0x291   :  { %v1265_v10 = vadd.f32 %v1264_v49, %v1087_v24  ;;  %v1103_v3 = vpop.f32.mrf.mxu1 }
 0x292   :  { %v4773_v32 = vpop.f32.mrf.mxu0 }
 0x293   :  { %v1286_v5 = vadd.f32 %v4773_v32, %v4741_v35  ;;  %v4793_v6 = vpop.f32.mrf.mxu1 }
 0x294   :  { %v1635_v40 = vadd.f32 %v4793_v6, %v1238_v27  ;;  %v1277_v42 = vpop.f32.mrf.mxu0 }
 0x295   :  { %v1278_v2 = vadd.f32 %v1277_v42, %v1100_v25  ;;  %v1570_v0 = vpop.f32.mrf.mxu1 }
 0x296   :  { %v6813_v48 = vadd.f32 %v1570_v0, %v1230_v22  ;;  %v4774_v12 = vpop.f32.mrf.mxu0 }
 0x297   :  { %v1289_v43 = vadd.f32 %v4774_v12, %v4742_v18  ;;  %v4794_v21 = vpop.f32.mrf.mxu1 }
 0x298   :  { %v6815_v17 = vadd.f32 %v4794_v21, %v1241_v9  ;;  %v1280_v51 = vpop.f32.mrf.mxu0 }
 0x299   :  { %v1281_v34 = vadd.f32 %v1280_v51, %v1103_v3  ;;  %v1573_v13 = vpop.f32.mrf.mxu1 }
 0x29a   :  { %v6817_v54 = vadd.f32 %v1573_v13, %v1233_v53 }
 0x29b   :  { %v4825_v56 = vpop.f32.mrf.mxu0  ;;  %v4797_v57 = vpop.f32.mrf.mxu1 }
 0x29c   :  { %v2101_v14 = vadd.f32 %v4825_v56, %v1635_v40  ;;  %v1639_v33 = vadd.f32 %v4797_v57, %v1254_v15 }
 0x29d   :  { %v6819_v52 = vpop.f32.mrf.mxu0  ;;  %v1586_v28 = vpop.f32.mrf.mxu1 }
 0x29e   :  { %v6821_v39 = vadd.f32 %v1586_v28, %v1246_v37 }
 0x29f   :  { %v6823_v20 = vpop.f32.mrf.mxu0  ;;  %v4798_v41 = vpop.f32.mrf.mxu1 }
 0x2a0   :  { %v6825_v46 = vadd.f32 %v4798_v41, %v1257_v61 }
 0x2a1   :  { %v6827_v62 = vpop.f32.mrf.mxu0  ;;  %v1589_v47 = vpop.f32.mrf.mxu1 }
 0x2a2   :  { %v6829_v50 = vadd.f32 %v1589_v47, %v1249_v8 }
 0x2a3   :  { %v4829_v27 = vpop.f32.mrf.mxu0  ;;  %v4801_v16 = vpop.f32.mrf.mxu1 }
 0x2a4   :  { %v2105_v19 = vadd.f32 %v4829_v27, %v1639_v33  ;;  %v1643_v22 = vadd.f32 %v4801_v16, %v1270_v23 }
 0x2a5   :  { %v6831_v45 = vpop.f32.mrf.mxu0  ;;  %v1602_v26 = vpop.f32.mrf.mxu1 }
 0x2a6   :  { %v6833_v9 = vadd.f32 %v1602_v26, %v1262_v60 }
 0x2a7   :  { %v6835_v4 = vpop.f32.mrf.mxu0  ;;  %v4802_v30 = vpop.f32.mrf.mxu1 }
 0x2a8   :  { %v6837_v53 = vadd.f32 %v4802_v30, %v1273_v59 }
 0x2a9   :  { %v6839_v29 = vpop.f32.mrf.mxu0  ;;  %v1605_v58 = vpop.f32.mrf.mxu1 }
 0x2aa   :  { %v6841_v15 = vadd.f32 %v1605_v58, %v1265_v10 }
 0x2ab   :  { %v4833_v31 = vpop.f32.mrf.mxu0  ;;  %v4805_v1 = vpop.f32.mrf.mxu1 }
 0x2ac   :  { %v2109_v37 = vadd.f32 %v4833_v31, %v1643_v22  ;;  %v1647_v63 = vadd.f32 %v4805_v1, %v1286_v5 }
 0x2ad   :  { %v6843_v11 = vpop.f32.mrf.mxu0  ;;  %v1618_v61 = vpop.f32.mrf.mxu1 }
 0x2ae   :  { %v6845_v44 = vadd.f32 %v1618_v61, %v1278_v2 }
 0x2af   :  { %v6847_v55 = vpop.f32.mrf.mxu0  ;;  %v4806_v8 = vpop.f32.mrf.mxu1 }
 0x2b0   :  { %7357 = vst [vmem:[#allocation18_spill] sm:$0xff] %v6845_v44  ;;  %v6849_v24 = vadd.f32 %v4806_v8, %v1289_v43 }
 0x2b1   :  { %v6851_v36 = vpop.f32.mrf.mxu0  ;;  %v1621_v23 = vpop.f32.mrf.mxu1 }
 0x2b2   :  { %7358 = vst [vmem:[#allocation19_spill] sm:$0xff] %v6849_v24  ;;  %v6853_v35 = vadd.f32 %v1621_v23, %v1281_v34 }
 0x2b4   :  { %7359 = vst [vmem:[#allocation20_spill] sm:$0xff] %v6853_v35  ;;  %v4837_v7 = vpop.f32.mrf.mxu0  ;;  %v4857_v60 = vpop.f32.mrf.mxu1  ;;  %v2100_v35 = vadd.f32 %v6827_v62, %v6817_v54  ;;  %v2103_v62 = vadd.f32 %v6831_v45, %v6821_v39 }
 0x2b5   :  { %v2113_v25 = vadd.f32 %v4837_v7, %v1647_v63  ;;  %v6855_v38 = vadd.f32 %v4857_v60, %v2101_v14 }
 0x2b6   :  { %v6857_v59 = vpop.f32.mrf.mxu0  ;;  %v6859_v18 = vpop.f32.mrf.mxu1 }
 0x2b7   :  { %7360 = vst [vmem:[#allocation21_spill] sm:$0xff] %v6857_v59  ;;  %v5161_v59 = vld [vmem:[#allocation9 + $0x38] sm:$0xff]  }
 0x2b8   :  { %v6861_v49 = vpop.f32.mrf.mxu0  ;;  %v6863_v10 = vpop.f32.mrf.mxu1  ;;  %4999 = vmatprep.subr.bf16.mxu0 %v5161_v59  ;;  %5031 = vmatprep.subr.bf16.mxu1 %v5161_v59 }
 0x2b9   :  { %7361 = vst [vmem:[#allocation22_spill] sm:$0xff] %v6861_v49  ;;  %5000 = vmatpush3.bf16.msra.mxu0 %v5161_v59  ;;  %5039 = vmatpush3.bf16.msra.mxu1 %v5161_v59  ;;  %v2104_v59 = vadd.f32 %v6839_v29, %v6829_v50 }
 0x2ba   :  { %v6865_v3 = vpop.f32.mrf.mxu0  ;;  %v2265_v32 = vpop.f32.mrf.mxu1 }
 0x2bb   :  { %7362 = vst [vmem:[#allocation25_spill] sm:$0xff] %v6865_v3 }
 0x2bc   :  { %v4861_v5 = vpop.f32.mrf.mxu1 }
 0x2bd   :  { %v6867_v6 = vpop.f32.mrf.mxu0  ;;  %v6869_v40 = vadd.f32 %v4861_v5, %v2105_v19 }
 0x2be   :  { %v6871_v42 = vpop.f32.mrf.mxu1 }
 0x2bf   :  { %v6873_v2 = vpop.f32.mrf.mxu0 }
 0x2c0   :  { %v6875_v0 = vpop.f32.mrf.mxu1 }
 0x2c1   :  { %v6877_v12 = vpop.f32.mrf.mxu0 }
 0x2c2   :  { %v6879_v43 = vpop.f32.mrf.mxu1 }
 0x2c3   :  { %v2619_v21 = vpop.f32.mrf.mxu0 }
 0x2c4   :  { %v4865_v51 = vpop.f32.mrf.mxu1 }
 0x2c5   :  { %v6881_v34 = vpop.f32.mrf.mxu0  ;;  %v6883_v13 = vadd.f32 %v4865_v51, %v2109_v37 }
 0x2c6   :  { %v6885_v56 = vpop.f32.mrf.mxu1 }
 0x2c7   :  { %7363 = vst [vmem:[#allocation23_spill] sm:$0xff] %v6883_v13  ;;  %v6887_v57 = vpop.f32.mrf.mxu0 }
 0x2c8   :  { %v6889_v14 = vpop.f32.mrf.mxu1 }
 0x2c9   :  { %7364 = vst [vmem:[#allocation24_spill] sm:$0xff] %v6889_v14  ;;  %v6891_v33 = vpop.f32.mrf.mxu0 }
 0x2ca   :  { %v6893_v28 = vpop.f32.mrf.mxu1 }
 0x2cb   :  { %v6895_v41 = vpop.f32.mrf.mxu0 }
 0x2cc   :  { %v4869_v47 = vpop.f32.mrf.mxu1 }
 0x2cd   :  { %v6899_v16 = vadd.f32 %v4869_v47, %v2113_v25 }
 0x2ce   :  { %v6901_v19 = vpop.f32.mrf.mxu1 }
 0x2cf   :  { %v6897_v27 = vpop.f32.mrf.mxu0  ;;  %7366 = vst [vmem:[#allocation28_spill] sm:$0xff] %v6899_v16  ;;  %7367 = vst [vmem:[#allocation29_spill] sm:$0xff] %v6901_v19 }
 0x2d0   :  { %7365 = vst [vmem:[#allocation26_spill] sm:$0xff] %v6897_v27  ;;  %v6905_v26 = vpop.f32.mrf.mxu1 }
 0x2d1   :  { %v6903_v22 = vpop.f32.mrf.mxu0  ;;  %7368 = vst [vmem:[#allocation27_spill] sm:$0xff] %v6905_v26 }
 0x2d2   :  { %v6909_v58 = vpop.f32.mrf.mxu1 }
 0x2d3   :  { %v6907_v30 = vpop.f32.mrf.mxu0  ;;  %7370 = vst [vmem:[#allocation31_spill] sm:$0xff] %v6909_v58 }
 0x2d4   :  { %7369 = vst [vmem:[#allocation30_spill] sm:$0xff] %v6907_v30 }
 0x2d5   :  { %v6911_v31 = vpop.f32.mrf.mxu0  ;;  %v4921_v1 = vpop.f32.mrf.mxu1 }
 0x2d7   :  { %v6913_v37 = vpop.f32.mrf.mxu0  ;;  %v3083_v63 = vpop.f32.mrf.mxu1 }
 0x2d8   :  { %7371 = vst [vmem:[#allocation32_spill] sm:$0xff] %v6913_v37 }
 0x2d9   :  { %v6915_v61 = vpop.f32.mrf.mxu0  ;;  %v6917_v8 = vpop.f32.mrf.mxu1 }
 0x2da   :  { %7372 = vst [vmem:[#allocation39_spill] sm:$0xff] %v6915_v61 }
 0x2db   :  { %v6919_v23 = vpop.f32.mrf.mxu0  ;;  %v3086_v7 = vpop.f32.mrf.mxu1 }
 0x2dc   :  { %7373 = vst [vmem:[#allocation33_spill] sm:$0xff] %v6919_v23 }
 0x2dd   :  { %v6921_v60 = vpop.f32.mrf.mxu0  ;;  %v6923_v25 = vpop.f32.mrf.mxu1 }
 0x2de   :  { %7374 = vst [vmem:[#allocation42_spill] sm:$0xff] %v6921_v60 }
 0x2df   :  { %v4953_v5 = vpop.f32.mrf.mxu0  ;;  %v6925_v51 = vpop.f32.mrf.mxu1 }
 0x2e1   :  { %v3309_v47 = vpop.f32.mrf.mxu0  ;;  %v6927_v16 = vpop.f32.mrf.mxu1 }
 0x2e3   :  { %v6929_v26 = vpop.f32.mrf.mxu0  ;;  %v6931_v37 = vpop.f32.mrf.mxu1 }
 0x2e5   :  { %v3312_v49 = vpop.f32.mrf.mxu0 }
 0x2e6   :  { %v6933_v24 = vpop.f32.mrf.mxu1 }
 0x2e7   :  { %7375 = vst [vmem:[#allocation34_spill] sm:$0xff] %v6933_v24  ;;  %v6935_v61 = vpop.f32.mrf.mxu0  ;;  %v2099_v24 = vadd.f32 %v6819_v52, %v6813_v48  ;;  %v5163_v52 = vld [vmem:[#allocation9 + $0x28] sm:$0xff]  }
 0x2e8   :  { %v6937_v23 = vpop.f32.mrf.mxu1 }
 0x2e9   :  { %v6939_v60 = vpop.f32.mrf.mxu0 }
 0x2ea   :  { %v6941_v58 = vpop.f32.mrf.mxu1 }
 0x2eb   :  { %7376 = vst [vmem:[#allocation43_spill] sm:$0xff] %v6941_v58  ;;  %v6943_v30 = vpop.f32.mrf.mxu0  ;;  %v5162_v58 = vld [vmem:[#allocation9 + $0x30] sm:$0xff]  }
 0x2ec   :  { %7377 = vst [vmem:[#allocation35_spill] sm:$0xff] %v6943_v30  ;;  %v6945_v19 = vpop.f32.mrf.mxu1  ;;  %5001 = vmatprep.subr.bf16.mxu0 %v5162_v58  ;;  %5032 = vmatprep.subr.bf16.mxu1 %v5162_v58 }
 0x2ed   :  { %7378 = vst [vmem:[#allocation45_spill] sm:$0xff] %v6945_v19  ;;  %v6949_v13 = vpop.f32.mrf.mxu0  ;;  %v2326_v19 = vadd.f32 %v2265_v32, %v2100_v35  ;;  %5002 = vmatpush3.bf16.msra.mxu0 %v5162_v58  ;;  %5040 = vmatpush3.bf16.msra.mxu1 %v5162_v58 }
 0x2ee   :  { %v6947_v27 = vpop.f32.mrf.mxu1  ;;  %5003 = vmatprep.subr.bf16.mxu0 %v5163_v52  ;;  %5033 = vmatprep.subr.bf16.mxu1 %v5163_v52 }
 0x2ef   :  { %7379 = vst [vmem:[#allocation36_spill] sm:$0xff] %v6947_v27  ;;  %v6959_v44 = vpop.f32.mrf.mxu0  ;;  %v2325_v27 = vadd.f32 %v6859_v18, %v2099_v24  ;;  %v2680_v54 = vadd.f32 %v2619_v21, %v2326_v19 }
 0x2f0   :  { %v6951_v14 = vpop.f32.mrf.mxu1 }
 0x2f1   :  { %7380 = vst [vmem:[#allocation46_spill] sm:$0xff] %v6951_v14  ;;  %v2679_v48 = vadd.f32 %v6873_v2, %v2325_v27  ;;  %v6970_v35 = vpop.f32.mrf.mxu0  ;;  %v3147_v32 = vadd.f32 %v3086_v7, %v2680_v54  ;;  %v2329_v2 = vadd.f32 %v6871_v42, %v2103_v62  ;;  %5004 = vmatpush3.bf16.msra.mxu0 %v5163_v52 }
 0x2f2   :  { %v6953_v3 = vpop.f32.mrf.mxu1  ;;  %5041 = vmatpush3.bf16.msra.mxu1 %v5163_v52 }
 0x2f3   :  { %7381 = vst [vmem:[#allocation44_spill] sm:$0xff] %v6953_v3  ;;  %v2102_v3 = vadd.f32 %v6823_v20, %v6815_v17  ;;  %v2681_v17 = vadd.f32 %v6867_v6, %v6855_v38  ;;  %v3146_v20 = vadd.f32 %v3083_v63, %v2679_v48  ;;  %v2330_v38 = vadd.f32 %v6879_v43, %v2104_v59  ;;  %v6980_v19 = vpop.f32.mrf.mxu0 }
 0x2f4   :  { %v6961_v30 = vpop.f32.mrf.mxu1  ;;  %v2683_v6 = vadd.f32 %v6887_v57, %v2329_v2 }
 0x2f5   :  { %v2328_v24 = vadd.f32 %v6863_v10, %v2102_v3  ;;  %v3148_v39 = vadd.f32 %v4921_v1, %v2681_v17  ;;  %v3372_v45 = vadd.f32 %v3309_v47, %v3146_v20  ;;  %v3373_v10 = vadd.f32 %v3312_v49, %v3147_v32  ;;  %v5164_v3 = vld [vmem:[#allocation9 + $0x20] sm:$0xff]  }
 0x2f6   :  { %v4985_v14 = vpop.f32.mrf.mxu1  ;;  %v2106_v49 = vadd.f32 %v6835_v4, %v6825_v46  ;;  %v2684_v58 = vadd.f32 %v6895_v41, %v2330_v38  ;;  %v3150_v1 = vadd.f32 %v6925_v51, %v2683_v6  ;;  %5005 = vmatprep.subr.bf16.mxu0 %v5164_v3  ;;  %5034 = vmatprep.subr.bf16.mxu1 %v5164_v3 }
 0x2f7   :  { %v2682_v21 = vadd.f32 %v6877_v12, %v2328_v24  ;;  %v3374_v42 = vadd.f32 %v4953_v5, %v3148_v39  ;;  %v5165_v5 = vld [vmem:[#allocation9 + $0x18] sm:$0xff]   ;;  %v2107_v46 = vadd.f32 %v6843_v11, %v6833_v9  ;;  %v2108_v4 = vadd.f32 %v6851_v36, %v6841_v15  ;;  %5006 = vmatpush3.bf16.msra.mxu0 %v5164_v3 }
 0x2f8   :  { %v3663_v18 = vpop.f32.mrf.mxu1  ;;  %v2332_v41 = vadd.f32 %v6875_v0, %v2106_v49  ;;  %v2685_v51 = vadd.f32 %v6881_v34, %v6869_v40  ;;  %v3151_v47 = vadd.f32 %v6931_v37, %v2684_v58  ;;  %v3376_v48 = vadd.f32 %v6939_v60, %v3150_v1  ;;  %5042 = vmatpush3.bf16.msra.mxu1 %v5164_v3  ;;  %v5166_v37 = vld [vmem:[#allocation9 + $0x10] sm:$0xff]  }
 0x2f9   :  { %v3149_v29 = vadd.f32 %v6917_v8, %v2682_v21  ;;  %v6983_v12 = vadd.f32 %v3663_v18, %v3372_v45  ;;  %v6992_v7 = vadd.f32 %v4985_v14, %v3374_v42  ;;  %v2333_v9 = vadd.f32 %v6885_v56, %v2107_v46  ;;  %5007 = vmatprep.subr.bf16.mxu0 %v5165_v5  ;;  %v7383_v21 = vld [vmem:[#allocation18_spill] sm:$0xff]  ;;  %v7387_v45 = vld [vmem:[#allocation24_spill] sm:$0xff] }
 0x2fa   :  { %v4986_v27 = vpop.f32.mrf.mxu1  ;;  %v2686_v11 = vadd.f32 %v6891_v33, %v2332_v41  ;;  %v3152_v15 = vadd.f32 %v6923_v25, %v2685_v51  ;;  %v3377_v40 = vadd.f32 %v6949_v13, %v3151_v47  ;;  %5035 = vmatprep.subr.bf16.mxu1 %v5165_v5  ;;  %v2334_v60 = vadd.f32 %v6893_v28, %v2108_v4  ;;  %v7389_v3 = vld [vmem:[#allocation26_spill] sm:$0xff] }
 0x2fb   :  { %v3375_v57 = vadd.f32 %v6929_v26, %v3149_v29  ;;  %v3344_v26 = vpop.f32.mrf.mxu0  ;;  %v2687_v56 = vadd.f32 %v6903_v22, %v2333_v9  ;;  %v2110_v17 = vadd.f32 %v6847_v55, %v6837_v53  ;;  %5008 = vmatpush3.bf16.msra.mxu0 %v5165_v5  ;;  %v7382_v22 = vld [vmem:[#allocation35_spill] sm:$0xff]  ;;  %v7385_v53 = vld [vmem:[#allocation20_spill] sm:$0xff]  ;;  %v7386_v55 = vld [vmem:[#allocation25_spill] sm:$0xff] }
 0x2fc   :  { %v3666_v50 = vpop.f32.mrf.mxu1  ;;  %v3153_v25 = vadd.f32 %v6927_v16, %v2686_v11  ;;  %v3378_v24 = vadd.f32 %v6935_v61, %v3152_v15  ;;  %v2688_v20 = vadd.f32 %v6911_v31, %v2334_v60  ;;  %5043 = vmatpush3.bf16.msra.mxu1 %v5165_v5  ;;  %5009 = vmatprep.subr.bf16.mxu0 %v5166_v37  ;;  %v5167_v61 = vld [vmem:[#allocation9 + $0x8] sm:$0xff]   ;;  %v7393_v46 = vld [vmem:[#allocation34_spill] sm:$0xff]  ;;  %v7395_v9 = vld [vmem:[#allocation39_spill] sm:$0xff] }
 0x2fd   :  { %v6985_v63 = vadd.f32 %v3666_v50, %v3373_v10  ;;  %v7005_v54 = vadd.f32 %v4986_v27, %v3375_v57  ;;  %v7017_v62 = vpop.f32.mrf.mxu0  ;;  %v3154_v28 = vadd.f32 %v6937_v23, %v2687_v56  ;;  %5036 = vmatprep.subr.bf16.mxu1 %v5166_v37  ;;  %v7384_v27 = vld [vmem:[#allocation21_spill] sm:$0xff]  ;;  %v2112_v31 = vadd.f32 %v7386_v55, %v7385_v53  ;;  %v7388_v10 = vld [vmem:[#allocation23_spill] sm:$0xff] }
 0x2fe   :  { %v4989_v43 = vpop.f32.mrf.mxu1  ;;  %v3379_v59 = vadd.f32 %v7382_v22, %v3153_v25  ;;  %v2111_v39 = vadd.f32 %v7384_v27, %v7383_v21  ;;  %v2336_v23 = vadd.f32 %v7387_v45, %v2110_v17  ;;  %v2689_v38 = vadd.f32 %v7389_v3, %v7388_v10  ;;  %v7390_v29 = vld [vmem:[#allocation45_spill] sm:$0xff]  ;;  %v7397_v56 = vld [vmem:[#allocation19_spill] sm:$0xff]  ;;  %v7400_v17 = vld [vmem:[#allocation46_spill] sm:$0xff] }
 0x2ff   :  { %v3744_v8 = vadd.f32 %v6985_v63, %v6983_v12  ;;  %v7029_v2 = vadd.f32 %v4989_v43, %v3378_v24  ;;  %v3357_v6 = vpop.f32.mrf.mxu0  ;;  %v3155_v42 = vadd.f32 %v7390_v29, %v2688_v20  ;;  %v3380_v49 = vadd.f32 %v6970_v35, %v3154_v28  ;;  %v7391_v43 = vld [vmem:[#allocation29_spill] sm:$0xff]  ;;  %5010 = vmatpush3.bf16.msra.mxu0 %v5166_v37  ;;  %v5168_v35 = vld [vmem:[#allocation9] sm:$0xff]   ;;  %v7399_v24 = vld [vmem:[#allocation42_spill] sm:$0xff] }
 0x300   :  { %v3679_v14 = vpop.f32.mrf.mxu1  ;;  %v2337_v57 = vadd.f32 %v7391_v43, %v2111_v39  ;;  %v3156_v4 = vadd.f32 %v7393_v46, %v2689_v38  ;;  %5044 = vmatpush3.bf16.msra.mxu1 %v5166_v37  ;;  %5011 = vmatprep.subr.bf16.mxu0 %v5167_v61  ;;  %v7402_v27 = vld [vmem:[#allocation28_spill] sm:$0xff]  ;;  %v7404_v38 = vld [vmem:[#allocation33_spill] sm:$0xff] }
 0x301   :  { %v3745_v52 = vadd.f32 %v3744_v8, %v6992_v7  ;;  %v7012_v0 = vadd.f32 %v3679_v14, %v3376_v48  ;;  %v7392_v8 = vld [vmem:[#allocation30_spill] sm:$0xff]  ;;  %v3381_v51 = vadd.f32 %v3344_v26, %v3155_v42  ;;  %5037 = vmatprep.subr.bf16.mxu1 %v5167_v61  ;;  %v7394_v48 = vld [vmem:[#allocation31_spill] sm:$0xff]  ;;  %v4966_v15 = vpop.f32.mrf.mxu0  ;;  %v7403_v39 = vld [vmem:[#allocation32_spill] sm:$0xff] }
 0x302   :  { %v4990_v36 = vpop.f32.mrf.mxu1  ;;  %v2690_v5 = vadd.f32 %v7392_v8, %v2336_v23  ;;  %v2691_v11 = vadd.f32 %v7395_v9, %v2337_v57  ;;  %v3382_v60 = vadd.f32 %v6959_v44, %v3156_v4  ;;  %v7401_v44 = vld [vmem:[#allocation27_spill] sm:$0xff]  ;;  %v2693_v53 = vadd.f32 %v7403_v39, %v7402_v27  ;;  %v7406_v43 = vld [vmem:[#allocation44_spill] sm:$0xff] }
 0x303   :  { %v3746_v34 = vadd.f32 %v3745_v52, %v7005_v54  ;;  %v7041_v58 = vadd.f32 %v4990_v36, %v3379_v59  ;;  %v2338_v52 = vadd.f32 %v7394_v48, %v2112_v31  ;;  %5012 = vmatpush3.bf16.msra.mxu0 %v5167_v61  ;;  %v3360_v55 = vpop.f32.mrf.mxu0 }
 0x304   :  { %v3682_v33 = vpop.f32.mrf.mxu1  ;;  %v3158_v20 = vadd.f32 %v7400_v17, %v2691_v11  ;;  %5045 = vmatpush3.bf16.msra.mxu1 %v5167_v61  ;;  %5013 = vmatprep.subr.bf16.mxu0 %v5168_v35 }
 0x305   :  { %v3747_v13 = vadd.f32 %v3746_v34, %v7012_v0  ;;  %v7022_v18 = vadd.f32 %v3682_v33, %v3377_v40  ;;  %v7396_v40 = vld [vmem:[#allocation43_spill] sm:$0xff]  ;;  %v7398_v33 = vld [vmem:[#allocation22_spill] sm:$0xff]  ;;  %5038 = vmatprep.subr.bf16.mxu1 %v5168_v35 }
 0x306   :  { %v4993_v32 = vpop.f32.mrf.mxu1  ;;  %v3157_v34 = vadd.f32 %v7396_v40, %v2690_v5  ;;  %v2114_v25 = vadd.f32 %v7398_v33, %v7397_v56  ;;  %v3384_v23 = vadd.f32 %v3357_v6, %v3158_v20 }
 0x307   :  { %v3748_v16 = vadd.f32 %v3747_v13, %v7022_v18  ;;  %v2692_v13 = vadd.f32 %v7399_v24, %v2338_v52  ;;  %v3736_v59 = vadd.f32 %v4993_v32, %v3382_v60  ;;  %5014 = vmatpush3.bf16.msra.mxu0 %v5168_v35 }
 0x308   :  { %v3695_v50 = vpop.f32.mrf.mxu1  ;;  %v3383_v22 = vadd.f32 %v6980_v19, %v3157_v34  ;;  %v2340_v21 = vadd.f32 %v7401_v44, %v2114_v25  ;;  %5046 = vmatpush3.bf16.msra.mxu1 %v5168_v35  ;;  %v7405_v19 = vld [vmem:[#allocation36_spill] sm:$0xff] }
 0x309   :  { %v3749_v1 = vadd.f32 %v3748_v16, %v7029_v2  ;;  %v7047_v14 = vadd.f32 %v3695_v50, %v3380_v49  ;;  %v3159_v45 = vadd.f32 %v6961_v30, %v2692_v13  ;;  %v3160_v32 = vadd.f32 %v7405_v19, %v2693_v53 }
 0x30a   :  { %v4994_v41 = vpop.f32.mrf.mxu1  ;;  %v2694_v61 = vadd.f32 %v7404_v38, %v2340_v21 }
 0x30b   :  { %v3750_v47 = vadd.f32 %v3749_v1, %v7041_v58  ;;  %v3737_v10 = vadd.f32 %v4994_v41, %v3383_v22  ;;  %v3385_v29 = vadd.f32 %v3360_v55, %v3159_v45  ;;  %v3386_v8 = vadd.f32 %v7017_v62, %v3160_v32 }
 0x30c   :  { %v3698_v36 = vpop.f32.mrf.mxu1  ;;  %v3161_v57 = vadd.f32 %v7406_v43, %v2694_v61 }
 0x30d   :  { %v3751_v37 = vadd.f32 %v3750_v47, %v7047_v14  ;;  %v3735_v26 = vadd.f32 %v3698_v36, %v3381_v51 }
 0x30e   :  { %v4997_v28 = vpop.f32.mrf.mxu1  ;;  %v3387_v6 = vadd.f32 %v4966_v15, %v3161_v57 }
 0x30f   :  { %v3752_v16 = vadd.f32 %v3751_v37, %v3735_v26  ;;  %v3740_v46 = vadd.f32 %v4997_v28, %v3386_v8 }
 0x310   :  { %v3711_v31 = vpop.f32.mrf.mxu1 }
 0x311   :  { %v3753_v3 = vadd.f32 %v3752_v16, %v3736_v59  ;;  %v3738_v42 = vadd.f32 %v3711_v31, %v3384_v23 }
 0x312   :  { %v4998_v50 = vpop.f32.mrf.mxu1 }
 0x313   :  { %v3754_v49 = vadd.f32 %v3753_v3, %v3737_v10  ;;  %v3741_v41 = vadd.f32 %v4998_v50, %v3387_v6 }
 0x314   :  { %v3714_v1 = vpop.f32.mrf.mxu1 }
 0x315   :  { %v3755_v5 = vadd.f32 %v3754_v49, %v3738_v42  ;;  %v3739_v30 = vadd.f32 %v3714_v1, %v3385_v29 }
 0x317   :  { %v3756_v4 = vadd.f32 %v3755_v5, %v3739_v30 }
 0x319   :  { %v3757_v51 = vadd.f32 %v3756_v4, %v3740_v46 }
 0x31b   :  { %v3758_v47 = vadd.f32 %v3757_v51, %v3741_v41  ;;  %v3742_v51 = vld [vmem:[%s7147_s5] sm:$0x1] }
 0x31d   :  { %v3759_v48 = vrot.slane %v3758_v47, 4 }
 0x31f   :  { %v3760_v35 = vadd.f32 %v3759_v48, %v3758_v47 }
 0x321   :  { %v3761_v52 = vrot.slane %v3760_v35, 2 }
 0x323   :  { %v3762_v9 = vadd.f32 %v3761_v52, %v3760_v35  ;;  %v7407_v35 = vld [vmem:[#allocation17_spill] sm:$0xff] }
 0x325   :  { %v3763_v11 = vrot.slane %v3762_v9, 1 }
 0x327   :  { %v3764_v36 = vadd.f32 %v3763_v11, %v3762_v9  ;;  %v4477_v9 = vld [vmem:[%s7148_s6] ss:$0 sm:$0xff] }
 0x329   :  { %v3765_v40 = vmul.f32 0.0078125, %v3764_v36 }
 0x32b   :  { %v3766_v34 = vsub.f32 %v6983_v12, %v3765_v40  ;;  %v3767_v60 = vsub.f32 %v6985_v63, %v3765_v40  ;;  %v7071_v62 = vsub.f32 %v6992_v7, %v3765_v40  ;;  %v7074_v15 = vsub.f32 %v7005_v54, %v3765_v40 }
 0x32c   :  { %v7077_v37 = vsub.f32 %v7012_v0, %v3765_v40  ;;  %v7080_v56 = vsub.f32 %v7022_v18, %v3765_v40  ;;  %v7083_v33 = vsub.f32 %v7029_v2, %v3765_v40  ;;  %v7086_v25 = vsub.f32 %v7041_v58, %v3765_v40 }
 0x32d   :  { %v3774_v12 = vsub.f32 %v7047_v14, %v3765_v40  ;;  %v3775_v63 = vsub.f32 %v3735_v26, %v3765_v40  ;;  %v3776_v7 = vsub.f32 %v3736_v59, %v3765_v40  ;;  %v3777_v24 = vsub.f32 %v3737_v10, %v3765_v40 }
 0x32e   :  { %v7089_v13 = vsub.f32 %v3738_v42, %v3765_v40  ;;  %v3779_v54 = vsub.f32 %v3739_v30, %v3765_v40  ;;  %v7091_v17 = vsub.f32 %v3740_v46, %v3765_v40  ;;  %v7093_v0 = vsub.f32 %v3741_v41, %v3765_v40 }
 0x32f   :  { %v3782_v18 = vmul.f32 %v3766_v34, %v3766_v34  ;;  %v3783_v20 = vmul.f32 %v3767_v60, %v3767_v60  ;;  %v3784_v2 = vmul.f32 %v7071_v62, %v7071_v62  ;;  %v3785_v58 = vmul.f32 %v7074_v15, %v7074_v15 }
 0x330   :  { %v3786_v26 = vmul.f32 %v7077_v37, %v7077_v37  ;;  %v3787_v59 = vmul.f32 %v7080_v56, %v7080_v56  ;;  %v3788_v44 = vmul.f32 %v7083_v33, %v7083_v33  ;;  %v3789_v27 = vmul.f32 %v7086_v25, %v7086_v25 }
 0x331   :  { %v3798_v28 = vadd.f32 %v3783_v20, %v3782_v18  ;;  %v3790_v53 = vmul.f32 %v3774_v12, %v3774_v12  ;;  %v3791_v31 = vmul.f32 %v3775_v63, %v3775_v63  ;;  %v3792_v23 = vmul.f32 %v3776_v7, %v3776_v7 }
 0x332   :  { %v3793_v3 = vmul.f32 %v3777_v24, %v3777_v24  ;;  %v3794_v61 = vmul.f32 %v7089_v13, %v7089_v13  ;;  %v3795_v19 = vmul.f32 %v3779_v54, %v3779_v54  ;;  %v3796_v29 = vmul.f32 %v7091_v17, %v7091_v17 }
 0x333   :  { %v3799_v14 = vadd.f32 %v3798_v28, %v3784_v2  ;;  %v3797_v49 = vmul.f32 %v7093_v0, %v7093_v0 }
 0x335   :  { %v3800_v22 = vadd.f32 %v3799_v14, %v3785_v58 }
 0x337   :  { %v3801_v16 = vadd.f32 %v3800_v22, %v3786_v26 }
 0x339   :  { %v3802_v21 = vadd.f32 %v3801_v16, %v3787_v59 }
 0x33b   :  { %v3803_v39 = vadd.f32 %v3802_v21, %v3788_v44 }
 0x33d   :  { %v3804_v55 = vadd.f32 %v3803_v39, %v3789_v27 }
 0x33f   :  { %v3805_v45 = vadd.f32 %v3804_v55, %v3790_v53 }
 0x341   :  { %v3806_v10 = vadd.f32 %v3805_v45, %v3791_v31 }
 0x343   :  { %v3807_v38 = vadd.f32 %v3806_v10, %v3792_v23 }
 0x345   :  { %v3808_v50 = vadd.f32 %v3807_v38, %v3793_v3 }
 0x347   :  { %v3809_v32 = vadd.f32 %v3808_v50, %v3794_v61 }
 0x349   :  { %v3810_v42 = vadd.f32 %v3809_v32, %v3795_v19 }
 0x34b   :  { %v3811_v1 = vadd.f32 %v3810_v42, %v3796_v29 }
 0x34d   :  { %v3812_v43 = vadd.f32 %v3811_v1, %v3797_v49 }
 0x34f   :  { %v3813_v57 = vrot.slane %v3812_v43, 4 }
 0x351   :  { %v3814_v8 = vadd.f32 %v3813_v57, %v3812_v43 }
 0x353   :  { %v3815_v5 = vrot.slane %v3814_v8, 2 }
 0x355   :  { %v3816_v30 = vadd.f32 %v3815_v5, %v3814_v8 }
 0x357   :  { %v3817_v6 = vrot.slane %v3816_v30, 1 }
 0x359   :  { %v3818_v46 = vadd.f32 %v3817_v6, %v3816_v30 }
 0x35b   :  { %v3819_v4 = vmul.f32 0.0078125, %v3818_v46 }
 0x35d   :  { %v3820_v41 = vadd.f32 1e-05, %v3819_v4 }
 0x35f   :  { %5171 = vrsqrt.f32 %v3820_v41 }
 0x36c   :  { %v5172_v47 = vpop.eup %5171 }
 0x36d   :  { %v3822_v48 = vmul.f32 %v5172_v47, %v3742_v51 }
 0x36f   :  { %v3827_v52 = vrot.slane %v3822_v48, %v7407_v35 }
 0x371   :  { %v3842_v11 = vmul.f32 %v3827_v52, %v3779_v54  ;;  %v3829_v36 = vmul.f32 %v3827_v52, %v3766_v34  ;;  %v3830_v40 = vmul.f32 %v3827_v52, %v3767_v60  ;;  %v3837_v18 = vmul.f32 %v3827_v52, %v3774_v12 }
 0x372   :  { %v3838_v20 = vmul.f32 %v3827_v52, %v3775_v63  ;;  %v3831_v2 = vmul.f32 %v3827_v52, %v7071_v62  ;;  %v3832_v28 = vmul.f32 %v3827_v52, %v7074_v15  ;;  %v3839_v58 = vmul.f32 %v3827_v52, %v3776_v7 }
 0x373   :  { %v3851_v14 = vadd.f32 %v4477_v9, %v3829_v36  ;;  %v3852_v26 = vadd.f32 %v4477_v9, %v3830_v40  ;;  %v3859_v22 = vadd.f32 %v4477_v9, %v3837_v18  ;;  %v3840_v59 = vmul.f32 %v3827_v52, %v3777_v24 }
 0x374   :  { %v3860_v16 = vadd.f32 %v4477_v9, %v3838_v20  ;;  %v3853_v44 = vadd.f32 %v4477_v9, %v3831_v2  ;;  %v3854_v21 = vadd.f32 %v4477_v9, %v3832_v28  ;;  %v3861_v27 = vadd.f32 %v4477_v9, %v3839_v58 }
 0x375   :  { %v3867_v39 = vmax.f32 %v3851_v14, 0.0  ;;  %v3868_v53 = vmax.f32 %v3852_v26, 0.0  ;;  %v3875_v54 = vmax.f32 %v3859_v22, 0.0  ;;  %v3862_v34 = vadd.f32 %v4477_v9, %v3840_v59 }
 0x376   :  { %v3876_v60 = vmax.f32 %v3860_v16, 0.0  ;;  %v3869_v12 = vmax.f32 %v3853_v44, 0.0  ;;  %v3870_v63 = vmax.f32 %v3854_v21, 0.0  ;;  %v3877_v55 = vmax.f32 %v3861_v27, 0.0 }
 0x377   :  { %v3883_v62 = vpack.c.bf16 %v3868_v53, %v3867_v39  ;;  %v3878_v31 = vmax.f32 %v3862_v34, 0.0  ;;  %v3833_v15 = vmul.f32 %v3827_v52, %v7077_v37  ;;  %v3834_v7 = vmul.f32 %v3827_v52, %v7080_v56 }
 0x378   :  { %v3887_v45 = vpack.c.bf16 %v3876_v60, %v3875_v54  ;;  %v3884_v24 = vpack.c.bf16 %v3870_v63, %v3869_v12  ;;  %v3841_v23 = vmul.f32 %v3827_v52, %v7089_v13  ;;  %v3864_v10 = vadd.f32 %v4477_v9, %v3842_v11 }
 0x379   :  { %5015 = vmatprep.mubr.bf16.mxu0 %v3883_v62  ;;  %v3888_v3 = vpack.c.bf16 %v3878_v31, %v3877_v55  ;;  %v3855_v38 = vadd.f32 %v4477_v9, %v3833_v15  ;;  %v3856_v61 = vadd.f32 %v4477_v9, %v3834_v7  ;;  %v3835_v50 = vmul.f32 %v3827_v52, %v7083_v33 }
 0x37a   :  { %5023 = vmatprep.mubr.bf16.mxu1 %v3887_v45  ;;  %5016 = vmatmul.mubr.bf16.vlgmr.msra.gmra.mxu0 %v3884_v24  ;;  %v3863_v19 = vadd.f32 %v4477_v9, %v3841_v23  ;;  %v3880_v32 = vmax.f32 %v3864_v10, 0.0  ;;  %v3836_v29 = vmul.f32 %v3827_v52, %v7086_v25  ;;  %v3843_v37 = vmul.f32 %v3827_v52, %v7091_v17 }
 0x37b   :  { %5024 = vmatmul.mubr.bf16.vlgmr.msra.gmra.mxu1 %v3888_v3  ;;  %v3871_v56 = vmax.f32 %v3855_v38, 0.0  ;;  %v3872_v42 = vmax.f32 %v3856_v61, 0.0  ;;  %v3857_v49 = vadd.f32 %v4477_v9, %v3835_v50  ;;  %v3844_v13 = vmul.f32 %v3827_v52, %v7093_v0 }
 0x37c   :  { %v3879_v1 = vmax.f32 %v3863_v19, 0.0  ;;  %v3858_v43 = vadd.f32 %v4477_v9, %v3836_v29  ;;  %v3865_v57 = vadd.f32 %v4477_v9, %v3843_v37 }
 0x37d   :  { %v3885_v8 = vpack.c.bf16 %v3872_v42, %v3871_v56  ;;  %v3873_v5 = vmax.f32 %v3857_v49, 0.0  ;;  %v3866_v33 = vadd.f32 %v4477_v9, %v3844_v13 }
 0x37e   :  { %v3889_v30 = vpack.c.bf16 %v3880_v32, %v3879_v1  ;;  %v3874_v6 = vmax.f32 %v3858_v43, 0.0  ;;  %v3881_v46 = vmax.f32 %v3865_v57, 0.0 }
 0x37f   :  { %5019 = vmatprep.mubr.bf16.mxu0 %v3885_v8  ;;  %v3882_v4 = vmax.f32 %v3866_v33, 0.0 }
 0x380   :  { %5027 = vmatprep.mubr.bf16.mxu1 %v3889_v30  ;;  %v3886_v25 = vpack.c.bf16 %v3874_v6, %v3873_v5 }
 0x381   :  { %v3890_v17 = vpack.c.bf16 %v3882_v4, %v3881_v46 }
 0x382   :  { %5020 = vmatmul.mubr.bf16.gmra.mxu0 %v3886_v25 }
 0x383   :  { %5028 = vmatmul.mubr.bf16.gmra.mxu1 %v3890_v17 }
 0x43a   :  { %v5017_v41 = vpop.f32.mrf.mxu0 }
 0x43b   :  { %v5025_v51 = vpop.f32.mrf.mxu1 }
 0x43c   :  { %v3989_v47 = vpop.f32.mrf.mxu0 }
 0x43d   :  { %v4021_v48 = vpop.f32.mrf.mxu1 }
 0x43e   :  { %v5018_v0 = vpop.f32.mrf.mxu0 }
 0x43f   :  { %v5026_v9 = vpop.f32.mrf.mxu1 }
 0x440   :  { %v3992_v52 = vpop.f32.mrf.mxu0 }
 0x441   :  { %v4054_v11 = vadd.f32 %v3992_v52, %v3989_v47  ;;  %v4024_v58 = vpop.f32.mrf.mxu1 }
 0x442   :  { %v5021_v36 = vpop.f32.mrf.mxu0 }
 0x443   :  { %v4055_v40 = vadd.f32 %v5017_v41, %v4054_v11  ;;  %v5029_v59 = vpop.f32.mrf.mxu1 }
 0x444   :  { %v4005_v18 = vpop.f32.mrf.mxu0 }
 0x445   :  { %v4056_v20 = vadd.f32 %v5018_v0, %v4055_v40  ;;  %v4037_v21 = vpop.f32.mrf.mxu1 }
 0x446   :  { %v5022_v2 = vpop.f32.mrf.mxu0 }
 0x447   :  { %v4057_v28 = vadd.f32 %v4056_v20, %v4005_v18  ;;  %v5030_v53 = vpop.f32.mrf.mxu1 }
 0x448   :  { %v4008_v14 = vpop.f32.mrf.mxu0 }
 0x449   :  { %v4058_v26 = vadd.f32 %v4057_v28, %v4008_v14  ;;  %v4040_v60 = vpop.f32.mrf.mxu1 }
 0x44b   :  { %v4059_v22 = vadd.f32 %v5021_v36, %v4058_v26 }
 0x44d   :  { %v4060_v16 = vadd.f32 %v5022_v2, %v4059_v22 }
 0x44f   :  { %v4061_v44 = vadd.f32 %v4060_v16, %v4021_v48 }
 0x451   :  { %v4062_v27 = vadd.f32 %v4061_v44, %v4024_v58 }
 0x453   :  { %v4063_v39 = vadd.f32 %v5025_v51, %v4062_v27 }
 0x455   :  { %v4064_v54 = vadd.f32 %v5026_v9, %v4063_v39 }
 0x457   :  { %v4065_v34 = vadd.f32 %v4064_v54, %v4037_v21 }
 0x459   :  { %v4066_v12 = vadd.f32 %v4065_v34, %v4040_v60 }
 0x45b   :  { %v4067_v63 = vadd.f32 %v5029_v59, %v4066_v12 }
 0x45d   :  { %v4068_v55 = vadd.f32 %v5030_v53, %v4067_v63 }
 0x45f   :  { %v4069_v62 = vrot.slane %v4068_v55, 4 }
 0x461   :  { %v4070_v31 = vadd.f32 %v4069_v62, %v4068_v55 }
 0x463   :  { %v4071_v15 = vrot.slane %v4070_v31, 2 }
 0x465   :  { %v4072_v7 = vadd.f32 %v4071_v15, %v4070_v31 }
 0x467   :  { %v4073_v45 = vrot.slane %v4072_v7, 1 }
 0x469   :  { %v4074_v24 = vadd.f32 %v4073_v45, %v4072_v7 }
 0x46b   :  { %v4075_v23 = vmul.f32 0.0078125, %v4074_v24 }
 0x46d   :  { %v4076_v10 = vsub.f32 %v3989_v47, %v4075_v23  ;;  %v4077_v3 = vsub.f32 %v3992_v52, %v4075_v23  ;;  %v4078_v38 = vsub.f32 %v5017_v41, %v4075_v23  ;;  %v4079_v19 = vsub.f32 %v5018_v0, %v4075_v23 }
 0x46e   :  { %v4080_v32 = vsub.f32 %v4005_v18, %v4075_v23  ;;  %v4081_v56 = vsub.f32 %v4008_v14, %v4075_v23  ;;  %v4082_v13 = vsub.f32 %v5021_v36, %v4075_v23  ;;  %v4083_v57 = vsub.f32 %v5022_v2, %v4075_v23 }
 0x46f   :  { %v4092_v61 = vmul.f32 %v4076_v10, %v4076_v10  ;;  %v4093_v50 = vmul.f32 %v4077_v3, %v4077_v3  ;;  %v4094_v29 = vmul.f32 %v4078_v38, %v4078_v38  ;;  %v4095_v42 = vmul.f32 %v4079_v19, %v4079_v19 }
 0x470   :  { %v4096_v1 = vmul.f32 %v4080_v32, %v4080_v32  ;;  %v4097_v8 = vmul.f32 %v4081_v56, %v4081_v56  ;;  %v4084_v33 = vsub.f32 %v4021_v48, %v4075_v23  ;;  %v4098_v30 = vmul.f32 %v4082_v13, %v4082_v13 }
 0x471   :  { %v4108_v37 = vadd.f32 %v4093_v50, %v4092_v61  ;;  %v4085_v46 = vsub.f32 %v4024_v58, %v4075_v23  ;;  %v4099_v4 = vmul.f32 %v4083_v57, %v4083_v57  ;;  %v4086_v17 = vsub.f32 %v5025_v51, %v4075_v23  ;;  %v4486_v61 = vld [vmem:[%s7151_s9] ss:$0 sm:$0xff] }
 0x472   :  { %v4100_v41 = vmul.f32 %v4084_v33, %v4084_v33  ;;  %v4087_v0 = vsub.f32 %v5026_v9, %v4075_v23  ;;  %v4088_v40 = vsub.f32 %v4037_v21, %v4075_v23  ;;  %v4089_v20 = vsub.f32 %v4040_v60, %v4075_v23 }
 0x473   :  { %v4109_v49 = vadd.f32 %v4108_v37, %v4094_v29  ;;  %v4101_v52 = vmul.f32 %v4085_v46, %v4085_v46  ;;  %v4102_v18 = vmul.f32 %v4086_v17, %v4086_v17  ;;  %v4090_v14 = vsub.f32 %v5029_v59, %v4075_v23  ;;  %v4052_v59 = vld [vmem:[%s7150_s8] sm:$0x1]  ;;  %s5294_s8 = smov [#allocation11]  }
 0x474   :  { %v4103_v28 = vmul.f32 %v4087_v0, %v4087_v0  ;;  %v4104_v26 = vmul.f32 %v4088_v40, %v4088_v40  ;;  %v4091_v22 = vsub.f32 %v5030_v53, %v4075_v23  ;;  %v4105_v16 = vmul.f32 %v4089_v20, %v4089_v20  ;;  %s4246_s9 = sshll.u32 %s5294_s8, 4  ;;  %s4247_s9 = int_to_ptr.vmem [resolvable:$true] %s4246_s9 }
 0x475   :  { %v4110_v43 = vadd.f32 %v4109_v49, %v4095_v42  ;;  %v4106_v44 = vmul.f32 %v4090_v14, %v4090_v14  ;;  %s5257_s21 = scalar_lea.vmem %s4247_s9, 2048  ;;  %p5262_p7 = scmp.lt.s32.totalorder %s4247_s9, %s4247_s9 }
 0x476   :  { %v4107_v51 = vmul.f32 %v4091_v22, %v4091_v22  ;;  %p5258_p6 = scmp.ne.s32.totalorder %s4247_s9, %s5257_s21  ;;  %p5263_p8 = scmp.lt.s32.totalorder %s5257_s21, %s5257_s21 }
 0x477   :  { %v4111_v5 = vadd.f32 %v4110_v43, %v4096_v1 }
 0x478   :  { %p5264_p9 = por %p5263_p8, %p5262_p7 }
 0x479   :  { %v4112_v6 = vadd.f32 %v4111_v5, %v4097_v8 }
 0x47a   :  { %p5265_p10 = pnand %p5264_p9, %p5258_p6 }
 0x47b   :  { %v4113_v25 = vadd.f32 %v4112_v6, %v4098_v30 }
 0x47d   :  { %v4114_v47 = vadd.f32 %v4113_v25, %v4099_v4  ;;  %v4178_v25 = vld [vmem:[#allocation3 + $0x8] sm:$0xff] }
 0x47f   :  { %v4115_v11 = vadd.f32 %v4114_v47, %v4100_v41  ;;  %v4179_v41 = vld [vmem:[#allocation3 + $0x10] sm:$0xff]  ;;  %v4180_v47 = vld [vmem:[#allocation3 + $0x18] sm:$0xff] }
 0x481   :  { %v4116_v36 = vadd.f32 %v4115_v11, %v4101_v52 }
 0x483   :  { %v4117_v2 = vadd.f32 %v4116_v36, %v4102_v18  ;;  %v4184_v18 = vld [vmem:[#allocation3 + $0x38] sm:$0xff]  ;;  %v4185_v36 = vld [vmem:[#allocation3 + $0x40] sm:$0xff] }
 0x485   :  { %v4118_v48 = vadd.f32 %v4117_v2, %v4103_v28 }
 0x487   :  { %v4119_v58 = vadd.f32 %v4118_v48, %v4104_v26  ;;  %v4187_v48 = vld [vmem:[#allocation3 + $0x50] sm:$0xff] }
 0x489   :  { %v4120_v27 = vadd.f32 %v4119_v58, %v4105_v16  ;;  %v4189_v16 = vld [vmem:[#allocation3 + $0x60] sm:$0xff]  ;;  %v4190_v58 = vld [vmem:[#allocation3 + $0x68] sm:$0xff] }
 0x48b   :  { %v4121_v39 = vadd.f32 %v4120_v27, %v4106_v44  ;;  %v4191_v44 = vld [vmem:[#allocation3 + $0x70] sm:$0xff]  ;;  %v4192_v27 = vld [vmem:[#allocation3 + $0x78] sm:$0xff] }
 0x48d   :  { %v4122_v54 = vadd.f32 %v4121_v39, %v4107_v51 }
 0x48f   :  { %v4123_v9 = vrot.slane %v4122_v54, 4 }
 0x491   :  { %v4124_v34 = vadd.f32 %v4123_v9, %v4122_v54 }
 0x493   :  { %v4125_v12 = vrot.slane %v4124_v34, 2 }
 0x495   :  { %v4126_v21 = vadd.f32 %v4125_v12, %v4124_v34 }
 0x497   :  { %v4127_v63 = vrot.slane %v4126_v21, 1 }
 0x499   :  { %v4128_v55 = vadd.f32 %v4127_v63, %v4126_v21 }
 0x49b   :  { %v4129_v60 = vmul.f32 0.0078125, %v4128_v55 }
 0x49d   :  { %v4130_v62 = vadd.f32 1e-05, %v4129_v60 }
 0x49f   :  { %5173 = vrsqrt.f32 %v4130_v62 }
 0x4ac   :  { %v5174_v53 = vpop.eup %5173 }
 0x4ad   :  { %v4132_v31 = vmul.f32 %v5174_v53, %v4052_v59 }
 0x4af   :  { %v4137_v15 = vrot.slane %v4132_v31, %v7407_v35 }
 0x4b1   :  { %v4139_v7 = vmul.f32 %v4137_v15, %v4076_v10  ;;  %v4140_v45 = vmul.f32 %v4137_v15, %v4077_v3  ;;  %v4141_v24 = vmul.f32 %v4137_v15, %v4078_v38  ;;  %v4142_v23 = vmul.f32 %v4137_v15, %v4079_v19  ;;  %v4177_v10 = vld [vmem:[#allocation3] sm:$0xff] }
 0x4b2   :  { %v4143_v50 = vmul.f32 %v4137_v15, %v4080_v32  ;;  %v4144_v29 = vmul.f32 %v4137_v15, %v4081_v56  ;;  %v4145_v37 = vmul.f32 %v4137_v15, %v4082_v13  ;;  %v4146_v42 = vmul.f32 %v4137_v15, %v4083_v57 }
 0x4b3   :  { %v4147_v49 = vmul.f32 %v4137_v15, %v4084_v33  ;;  %v4148_v1 = vmul.f32 %v4137_v15, %v4085_v46  ;;  %v4149_v43 = vmul.f32 %v4137_v15, %v4086_v17  ;;  %v4150_v8 = vmul.f32 %v4137_v15, %v4087_v0  ;;  %v4181_v33 = vld [vmem:[#allocation3 + $0x20] sm:$0xff]  ;;  %v4182_v46 = vld [vmem:[#allocation3 + $0x28] sm:$0xff]  ;;  %v4183_v17 = vld [vmem:[#allocation3 + $0x30] sm:$0xff] }
 0x4b4   :  { %v4151_v5 = vmul.f32 %v4137_v15, %v4088_v40  ;;  %v4152_v30 = vmul.f32 %v4137_v15, %v4089_v20  ;;  %v4153_v6 = vmul.f32 %v4137_v15, %v4090_v14  ;;  %v4154_v35 = vmul.f32 %v4137_v15, %v4091_v22  ;;  %v4186_v20 = vld [vmem:[#allocation3 + $0x48] sm:$0xff]  ;;  %v4188_v22 = vld [vmem:[#allocation3 + $0x58] sm:$0xff] }
 0x4b5   :  { %v4161_v3 = vadd.f32 %v4486_v61, %v4139_v7  ;;  %v4162_v38 = vadd.f32 %v4486_v61, %v4140_v45  ;;  %v4163_v19 = vadd.f32 %v4486_v61, %v4141_v24  ;;  %v4164_v4 = vadd.f32 %v4486_v61, %v4142_v23 }
 0x4b6   :  { %v4165_v32 = vadd.f32 %v4486_v61, %v4143_v50  ;;  %v4166_v56 = vadd.f32 %v4486_v61, %v4144_v29  ;;  %v4167_v13 = vadd.f32 %v4486_v61, %v4145_v37  ;;  %v4168_v57 = vadd.f32 %v4486_v61, %v4146_v42 }
 0x4b7   :  { %v4169_v0 = vadd.f32 %v4486_v61, %v4147_v49  ;;  %v4170_v52 = vadd.f32 %v4486_v61, %v4148_v1  ;;  %v4171_v11 = vadd.f32 %v4486_v61, %v4149_v43  ;;  %v4172_v40 = vadd.f32 %v4486_v61, %v4150_v8 }
 0x4b8   :  { %v4173_v28 = vadd.f32 %v4486_v61, %v4151_v5  ;;  %v4174_v2 = vadd.f32 %v4486_v61, %v4152_v30  ;;  %v4175_v14 = vadd.f32 %v4486_v61, %v4153_v6  ;;  %v4176_v26 = vadd.f32 %v4486_v61, %v4154_v35 }
 0x4b9   :  { %v4193_v51 = vadd.f32 %v4177_v10, %v4161_v3  ;;  %v4194_v39 = vadd.f32 %v4178_v25, %v4162_v38  ;;  %v4195_v54 = vadd.f32 %v4179_v41, %v4163_v19  ;;  %v4196_v9 = vadd.f32 %v4180_v47, %v4164_v4 }
 0x4ba   :  { %v4197_v34 = vadd.f32 %v4181_v33, %v4165_v32  ;;  %v4198_v12 = vadd.f32 %v4182_v46, %v4166_v56  ;;  %v4199_v21 = vadd.f32 %v4183_v17, %v4167_v13  ;;  %v4200_v63 = vadd.f32 %v4184_v18, %v4168_v57 }
 0x4bb   :  { %v4201_v55 = vadd.f32 %v4185_v36, %v4169_v0  ;;  %v4202_v60 = vadd.f32 %v4186_v20, %v4170_v52  ;;  %v4203_v62 = vadd.f32 %v4187_v48, %v4171_v11  ;;  %v4204_v59 = vadd.f32 %v4188_v22, %v4172_v40 }
 0x4bc   :  { %v4205_v53 = vadd.f32 %v4189_v16, %v4173_v28  ;;  %v4206_v31 = vadd.f32 %v4190_v58, %v4174_v2  ;;  %v4207_v15 = vadd.f32 %v4191_v44, %v4175_v14  ;;  %v4208_v7 = vadd.f32 %v4192_v27, %v4176_v26 }
 0x4bd   :  { %v4209_v45 = vmax.f32 %v4193_v51, 0.0  ;;  %v4210_v24 = vmax.f32 %v4194_v39, 0.0  ;;  %v4211_v23 = vmax.f32 %v4195_v54, 0.0  ;;  %v4212_v61 = vmax.f32 %v4196_v9, 0.0 }
 0x4be   :  { %v4213_v50 = vmax.f32 %v4197_v34, 0.0  ;;  %v4214_v29 = vmax.f32 %v4198_v12, 0.0  ;;  %v4215_v37 = vmax.f32 %v4199_v21, 0.0  ;;  %v4216_v42 = vmax.f32 %v4200_v63, 0.0 }
 0x4bf   :  { %v4217_v49 = vmax.f32 %v4201_v55, 0.0  ;;  %v4218_v1 = vmax.f32 %v4202_v60, 0.0  ;;  %v4219_v43 = vmax.f32 %v4203_v62, 0.0  ;;  %v4220_v8 = vmax.f32 %v4204_v59, 0.0  ;;  %4225 = vst [vmem:[#allocation11] sm:$0xff] %v4209_v45  ;;  %4226 = vst [vmem:[#allocation11 + $0x8] sm:$0xff] %v4210_v24 }
 0x4c0   :  { %4227 = vst [vmem:[#allocation11 + $0x10] sm:$0xff] %v4211_v23  ;;  %4228 = vst [vmem:[#allocation11 + $0x18] sm:$0xff] %v4212_v61  ;;  %v4221_v5 = vmax.f32 %v4205_v53, 0.0  ;;  %v4222_v30 = vmax.f32 %v4206_v31, 0.0  ;;  %v4223_v6 = vmax.f32 %v4207_v15, 0.0  ;;  %v4224_v35 = vmax.f32 %v4208_v7, 0.0 }
 0x4c1   :  { %4229 = vst [vmem:[#allocation11 + $0x20] sm:$0xff] %v4213_v50  ;;  %4230 = vst [vmem:[#allocation11 + $0x28] sm:$0xff] %v4214_v29 }
 0x4c2   :  { %4231 = vst [vmem:[#allocation11 + $0x30] sm:$0xff] %v4215_v37  ;;  %4232 = vst [vmem:[#allocation11 + $0x38] sm:$0xff] %v4216_v42 }
 0x4c3   :  { %4233 = vst [vmem:[#allocation11 + $0x40] sm:$0xff] %v4217_v49  ;;  %4234 = vst [vmem:[#allocation11 + $0x48] sm:$0xff] %v4218_v1 }
 0x4c4   :  { %4235 = vst [vmem:[#allocation11 + $0x50] sm:$0xff] %v4219_v43  ;;  %4236 = vst [vmem:[#allocation11 + $0x58] sm:$0xff] %v4220_v8 }
 0x4c5   :  { %4237 = vst [vmem:[#allocation11 + $0x60] sm:$0xff] %v4221_v5  ;;  %4238 = vst [vmem:[#allocation11 + $0x68] sm:$0xff] %v4222_v30 }
 0x4c6   :  { %4239 = vst [vmem:[#allocation11 + $0x70] sm:$0xff] %v4223_v6  ;;  %4240 = vst [vmem:[#allocation11 + $0x78] sm:$0xff] %v4224_v35 }
 0x4c7   :  { %5268 = shalt.err (!%p5265_p10)
}
 0x4c8   :  { %4252 = dma.vmem_to_hbm [thread:$0]  %s4247_s9, 2048, %s7152_s10, [#allocation5], %s5289_s23, %s5289_s23, %s5290_s24  }
 0x4c9   :  { %5283 = dma.done.wait [#allocation5], 2048  }
 0x4ca   :  { %5284 = vsyncadd [#allocation5], 4294965248 }
 0x4cb   :  { %4256 = vsyncpa [#allocation4], 1 }
 0x4cc   :  { %4257 = vsyncpa [#allocation7], 1 }
 0x4cd   :  { %4258 = vsyncpa [#allocation10], 1 }
 0x4ce   :  { %4259 = vsyncpa [#allocation5], 1 }

</bundles_post_ra>
